<compile_context>
chip_gen: v7x
topology: tpu7x:2x2x1
jax: 0.10.0
libtpu: 0.0.40
codegen_flags: <defaults>
</compile_context>

<pallas_src>
import functools

import jax
import jax.numpy as jnp
from jax import lax
from jax.experimental import pallas as pl
from jax.experimental.pallas import tpu as pltpu

HIDDEN = 1024
LN_EPS = 1e-5
NEG_SLOPE = 0.01
LANE = 128          # TPU lane width: head output padded to a multiple of this
BLOCK_B = 256       # max batch-tile rows per grid step (matches 256-wide MXU)


def _round_up(n, m):
    return (n + m - 1) // m * m


def _layernorm(h, gamma, beta):
    # Single-pass moments: both reductions depend only on h (no serial chain).
    mean = jnp.mean(h, axis=-1, keepdims=True)
    msq = jnp.mean(h * h, axis=-1, keepdims=True)
    var = msq - mean * mean
    return (h - mean) * lax.rsqrt(var + LN_EPS) * gamma + beta


def _leaky_relu(h):
    return jnp.where(h > 0, h, NEG_SLOPE * h)


def dqn_kernel(
    x_ref,
    w1_ref, b1_ref, g1_ref, be1_ref,
    w2_ref, s2_ref, b2_ref, g2_ref, be2_ref,
    w3_ref, s3_ref, b3_ref, g3_ref, be3_ref,
    w4_ref, b4_ref,
    out_ref,
):
    # --- block 1: fc1 (bf16 weights) -> ln1 -> leaky_relu -> (dropout = id) ---
    h = jnp.dot(x_ref[...].astype(jnp.bfloat16), w1_ref[...],
                preferred_element_type=jnp.float32) + b1_ref[...]
    h = _leaky_relu(_layernorm(h, g1_ref[...], be1_ref[...]))

    # --- block 2: fc2 (int8 weights, per-out-channel f32 scale) ---
    w2 = w2_ref[...].astype(jnp.bfloat16)          # int8 -> bf16 is exact
    h = jnp.dot(h.astype(jnp.bfloat16), w2,
                preferred_element_type=jnp.float32) * s2_ref[...] + b2_ref[...]
    h = _leaky_relu(_layernorm(h, g2_ref[...], be2_ref[...]))

    # --- block 3: fc3 (int8 weights, per-out-channel f32 scale) ---
    w3 = w3_ref[...].astype(jnp.bfloat16)
    h = jnp.dot(h.astype(jnp.bfloat16), w3,
                preferred_element_type=jnp.float32) * s3_ref[...] + b3_ref[...]
    h = _leaky_relu(_layernorm(h, g3_ref[...], be3_ref[...]))

    # --- head: fc4 (no activation), lane-dense padded bf16 output ---
    out = jnp.dot(h.astype(jnp.bfloat16), w4_ref[...],
                  preferred_element_type=jnp.float32) + b4_ref[...]
    out_ref[...] = out.astype(out_ref.dtype)


@functools.partial(jax.jit, static_argnames=("out_dim",))
def dqn_forward(x, kparams, out_dim):
    """x: [B, input_dim] float32 -> [B, out_dim] float32.

    kparams must come from prepare_kernel_params (bf16 fc1/fc4, int8+scale
    fc2/fc3, 128-lane-padded head, f32 bias/LN params).
    """
    B, in_dim = x.shape
    out_pad = kparams["w4"].shape[1]

    # Batch tiling: tile rows in multiples of 8 (sublane), up to BLOCK_B.
    tb = min(BLOCK_B, _round_up(B, 8))
    b_pad = _round_up(B, tb)
    if b_pad != B:
        x = jnp.pad(x, ((0, b_pad - B), (0, 0)))
    num_tiles = b_pad // tb
    grid = (num_tiles,)

    args = (
        x,
        kparams["w1"], kparams["b1"], kparams["g1"], kparams["be1"],
        kparams["w2"], kparams["s2"], kparams["b2"], kparams["g2"], kparams["be2"],
        kparams["w3"], kparams["s3"], kparams["b3"], kparams["g3"], kparams["be3"],
        kparams["w4"], kparams["b4"],
    )

    def resident(a):
        # Constant block index -> param stays VMEM-resident across grid steps
        # (single HBM load per call, amortized over the whole batch).
        return pl.BlockSpec(a.shape, lambda i: (0, 0))

    in_specs = [pl.BlockSpec((tb, in_dim), lambda i: (i, 0))]
    in_specs += [resident(a) for a in args[1:]]
    out_specs = pl.BlockSpec((tb, out_pad), lambda i: (i, 0))

    # Megacore policy (only matters on v7x, 2 TCs): when weight-bound (few
    # tiles), don't shard the grid across cores or each core re-streams the
    # full weight set from HBM; only go parallel for compute-bound batches.
    semantics = ("arbitrary",) if num_tiles <= 2 else ("parallel",)

    flops = 2 * b_pad * (in_dim * HIDDEN + 2 * HIDDEN * HIDDEN + HIDDEN * out_pad)
    param_bytes = sum(int(a.size) * a.dtype.itemsize for a in args[1:])
    bytes_accessed = param_bytes + b_pad * in_dim * 4 + b_pad * out_pad * 2
    cost = pl.CostEstimate(flops=flops,
                           transcendentals=3 * b_pad,
                           bytes_accessed=bytes_accessed)

    out = pl.pallas_call(
        dqn_kernel,
        out_shape=jax.ShapeDtypeStruct((b_pad, out_pad), jnp.bfloat16),
        grid=grid,
        in_specs=in_specs,
        out_specs=out_specs,
        compiler_params=pltpu.CompilerParams(
            dimension_semantics=semantics,
            vmem_limit_bytes=32 << 20,
        ),
        cost_estimate=cost,
    )(*args)
    return out[:B, :out_dim].astype(jnp.float32)


def init_params(key, input_dim, output_dim):
    """f32 master params mimicking nn.Linear (uniform +/- 1/sqrt(fan_in)) and
    nn.LayerNorm (gamma=1, beta=0). Weights stored as [in, out]."""
    dims = [(input_dim, HIDDEN), (HIDDEN, HIDDEN), (HIDDEN, HIDDEN),
            (HIDDEN, output_dim)]
    params = {}
    for i, (fan_in, fan_out) in enumerate(dims, start=1):
        key, kw, kb = jax.random.split(key, 3)
        bound = 1.0 / (fan_in ** 0.5)
        params[f"w{i}"] = jax.random.uniform(
            kw, (fan_in, fan_out), jnp.float32, -bound, bound)
        params[f"b{i}"] = jax.random.uniform(
            kb, (1, fan_out), jnp.float32, -bound, bound)
    for i in (1, 2, 3):
        params[f"g{i}"] = jnp.ones((1, HIDDEN), jnp.float32)
        params[f"be{i}"] = jnp.zeros((1, HIDDEN), jnp.float32)
    return params


def _quantize_int8(w):
    """Symmetric per-output-channel int8 quantization of an [in, out] weight."""
    absmax = jnp.max(jnp.abs(w), axis=0, keepdims=True)          # (1, out)
    scale = jnp.where(absmax > 0, absmax / 127.0, 1.0).astype(jnp.float32)
    q = jnp.clip(jnp.round(w / scale), -127, 127).astype(jnp.int8)
    return q, scale


def prepare_kernel_params(params):
    """One-time packing for the kernel:
      * fc1 / fc4 weights -> bf16 (fc4 lane-padded to a multiple of 128)
      * fc2 / fc3 weights -> int8 + per-output-channel f32 scale (halves the
        dominant HBM weight stream)
      * biases / LayerNorm params stay f32."""
    out_dim = params["w4"].shape[1]
    out_pad = _round_up(out_dim, LANE)
    kp = {}
    kp["w1"] = params["w1"].astype(jnp.bfloat16)
    kp["b1"] = params["b1"]
    for i in (2, 3):
        q, s = _quantize_int8(params[f"w{i}"])
        kp[f"w{i}"] = q
        kp[f"s{i}"] = s
        kp[f"b{i}"] = params[f"b{i}"]
    for i in (1, 2, 3):
        kp[f"g{i}"] = params[f"g{i}"]
        kp[f"be{i}"] = params[f"be{i}"]
    kp["w4"] = jnp.pad(params["w4"],
                       ((0, 0), (0, out_pad - out_dim))).astype(jnp.bfloat16)
    kp["b4"] = jnp.pad(params["b4"], ((0, 0), (0, out_pad - out_dim)))
    return kp, out_dim


def dqn_reference(x, kparams, out_dim):
    """Pure-JAX reference mirroring the kernel's numerics (bf16 activation /
    weight rounding, int8+scale fc2/fc3, f32 LayerNorm & accumulation) except
    the final bf16 output store. Used for a tight tolerance check."""
    def bf(v):
        return v.astype(jnp.bfloat16).astype(jnp.float32)

    def ln(h, g, b):
        mean = jnp.mean(h, axis=-1, keepdims=True)
        var = jnp.mean((h - mean) ** 2, axis=-1, keepdims=True)
        return (h - mean) / jnp.sqrt(var + LN_EPS) * g + b

    def lrelu(h):
        return jnp.where(h > 0, h, NEG_SLOPE * h)

    h = bf(x) @ bf(kparams["w1"]) + kparams["b1"]
    h = lrelu(ln(h, kparams["g1"], kparams["be1"]))
    for i in (2, 3):
        w = kparams[f"w{i}"].astype(jnp.float32)      # int values, exact
        h = bf(h) @ w * kparams[f"s{i}"] + kparams[f"b{i}"]
        h = lrelu(ln(h, kparams[f"g{i}"], kparams[f"be{i}"]))
    out = bf(h) @ bf(kparams["w4"]) + kparams["b4"]
    return out[:, :out_dim]


def dqn_reference_f32(x, params):
    """Full-precision reference of the original PyTorch forward (eval mode),
    used as a loose sanity check on the quantized kernel."""
    h = x
    for i in (1, 2, 3):
        h = h @ params[f"w{i}"] + params[f"b{i}"]
        mean = jnp.mean(h, axis=-1, keepdims=True)
        var = jnp.mean((h - mean) ** 2, axis=-1, keepdims=True)
        h = (h - mean) / jnp.sqrt(var + LN_EPS) * params[f"g{i}"] + params[f"be{i}"]
        h = jnp.where(h > 0, h, NEG_SLOPE * h)
    return h @ params["w4"] + params["b4"]


if __name__ == "__main__":
    INPUT_DIM = 32   # snake state-feature vector size (generic input_dim)
    OUTPUT_DIM = 4   # 4 actions
    BATCH = 8

    key = jax.random.PRNGKey(0)
    key, kx, kparam, kx2 = jax.random.split(key, 4)
    params = init_params(kparam, INPUT_DIM, OUTPUT_DIM)
    kparams, out_dim = prepare_kernel_params(params)

    # Small single-tile batch (acting / greedy policy eval) -> grid=(1,),
    # "arbitrary" semantics (weight-bound regime).
    x = jax.random.normal(kx, (BATCH, INPUT_DIM), jnp.float32)
    out = jax.block_until_ready(dqn_forward(x, kparams, out_dim))
    ref = dqn_reference(x, kparams, out_dim)
    ref32 = dqn_reference_f32(x, params)
    assert out.shape == (BATCH, OUTPUT_DIM), out.shape
    assert jnp.allclose(out, ref, atol=2e-3, rtol=1e-2), (
        float(jnp.max(jnp.abs(out - ref))))
    assert jnp.allclose(out, ref32, atol=1.5e-1), (
        float(jnp.max(jnp.abs(out - ref32))))

    # Larger batch exercising padding + multi-tile grid + "parallel" semantics
    # (replay-buffer eval): 600 rows -> pads to 768 -> 3 tiles of 256.
    B2 = 600
    x2 = jax.random.normal(kx2, (B2, INPUT_DIM), jnp.float32)
    out2 = jax.block_until_ready(dqn_forward(x2, kparams, out_dim))
    ref2 = dqn_reference(x2, kparams, out_dim)
    ref2_32 = dqn_reference_f32(x2, params)
    assert out2.shape == (B2, OUTPUT_DIM), out2.shape
    assert jnp.allclose(out2, ref2, atol=2e-3, rtol=1e-2), (
        float(jnp.max(jnp.abs(out2 - ref2))))
    assert jnp.allclose(out2, ref2_32, atol=1.5e-1), (
        float(jnp.max(jnp.abs(out2 - ref2_32))))

    print("KERNEL_OK")
</pallas_src>

<mosaic_0001>
module attributes {stable_mosaic.version = 11 : i64} {
  func.func @dqn_kernel(%arg0: i32, %arg1: memref<8x32xf32, #tpu.memory_space<vmem>>, %arg2: memref<32x1024xbf16, #tpu.memory_space<vmem>>, %arg3: memref<1x1024xf32, #tpu.memory_space<vmem>>, %arg4: memref<1x1024xf32, #tpu.memory_space<vmem>>, %arg5: memref<1x1024xf32, #tpu.memory_space<vmem>>, %arg6: memref<1024x1024xi8, #tpu.memory_space<vmem>>, %arg7: memref<1x1024xf32, #tpu.memory_space<vmem>>, %arg8: memref<1x1024xf32, #tpu.memory_space<vmem>>, %arg9: memref<1x1024xf32, #tpu.memory_space<vmem>>, %arg10: memref<1x1024xf32, #tpu.memory_space<vmem>>, %arg11: memref<1024x1024xi8, #tpu.memory_space<vmem>>, %arg12: memref<1x1024xf32, #tpu.memory_space<vmem>>, %arg13: memref<1x1024xf32, #tpu.memory_space<vmem>>, %arg14: memref<1x1024xf32, #tpu.memory_space<vmem>>, %arg15: memref<1x1024xf32, #tpu.memory_space<vmem>>, %arg16: memref<1024x128xbf16, #tpu.memory_space<vmem>>, %arg17: memref<1x128xf32, #tpu.memory_space<vmem>>, %arg18: memref<8x128xbf16, #tpu.memory_space<vmem>>) attributes {dimension_semantics = [#tpu.dimension_semantics<arbitrary>], iteration_bounds = array<i64: 1>, scalar_prefetch = 0 : i64, scratch_operands = 0 : i64, tpu.core_type = #tpu.core_type<tc>, window_params = [{transform_indices = @transform_0, window_bounds = array<i64: 8, 32>}, {pipeline_mode = #tpu.pipeline_mode<synchronous>, transform_indices = @transform_1, window_bounds = array<i64: 32, 1024>}, {pipeline_mode = #tpu.pipeline_mode<synchronous>, transform_indices = @transform_2, window_bounds = array<i64: 1, 1024>}, {pipeline_mode = #tpu.pipeline_mode<synchronous>, transform_indices = @transform_3, window_bounds = array<i64: 1, 1024>}, {pipeline_mode = #tpu.pipeline_mode<synchronous>, transform_indices = @transform_4, window_bounds = array<i64: 1, 1024>}, {pipeline_mode = #tpu.pipeline_mode<synchronous>, transform_indices = @transform_5, window_bounds = array<i64: 1024, 1024>}, {pipeline_mode = #tpu.pipeline_mode<synchronous>, transform_indices = @transform_6, window_bounds = array<i64: 1, 1024>}, {pipeline_mode = #tpu.pipeline_mode<synchronous>, transform_indices = @transform_7, window_bounds = array<i64: 1, 1024>}, {pipeline_mode = #tpu.pipeline_mode<synchronous>, transform_indices = @transform_8, window_bounds = array<i64: 1, 1024>}, {pipeline_mode = #tpu.pipeline_mode<synchronous>, transform_indices = @transform_9, window_bounds = array<i64: 1, 1024>}, {pipeline_mode = #tpu.pipeline_mode<synchronous>, transform_indices = @transform_10, window_bounds = array<i64: 1024, 1024>}, {pipeline_mode = #tpu.pipeline_mode<synchronous>, transform_indices = @transform_11, window_bounds = array<i64: 1, 1024>}, {pipeline_mode = #tpu.pipeline_mode<synchronous>, transform_indices = @transform_12, window_bounds = array<i64: 1, 1024>}, {pipeline_mode = #tpu.pipeline_mode<synchronous>, transform_indices = @transform_13, window_bounds = array<i64: 1, 1024>}, {pipeline_mode = #tpu.pipeline_mode<synchronous>, transform_indices = @transform_14, window_bounds = array<i64: 1, 1024>}, {pipeline_mode = #tpu.pipeline_mode<synchronous>, transform_indices = @transform_15, window_bounds = array<i64: 1024, 128>}, {pipeline_mode = #tpu.pipeline_mode<synchronous>, transform_indices = @transform_16, window_bounds = array<i64: 1, 128>}, {transform_indices = @transform_17, window_bounds = array<i64: 8, 128>}]} {
    %c0 = arith.constant 0 : index
    %c0_0 = arith.constant 0 : index
    %0 = vector.load %arg1[%c0, %c0_0] : memref<8x32xf32, #tpu.memory_space<vmem>>, vector<8x32xf32>
    %1 = arith.truncf %0 : vector<8x32xf32> to vector<8x32xbf16>
    %c0_1 = arith.constant 0 : index
    %c0_2 = arith.constant 0 : index
    %2 = vector.load %arg2[%c0_1, %c0_2] : memref<32x1024xbf16, #tpu.memory_space<vmem>>, vector<32x1024xbf16>
    %cst = arith.constant dense<0.000000e+00> : vector<8x1024xf32>
    %3 = tpu.matmul %1, %2, %cst {dimension_numbers = #tpu.dot_dimension_numbers<[1], [0], [0], [1], [0, 0, 1, 1], [], []>} : vector<8x32xbf16>, vector<32x1024xbf16>, vector<8x1024xf32> -> vector<8x1024xf32>
    %c0_3 = arith.constant 0 : index
    %c0_4 = arith.constant 0 : index
    %4 = vector.load %arg3[%c0_3, %c0_4] : memref<1x1024xf32, #tpu.memory_space<vmem>>, vector<1x1024xf32>
    %5 = vector.broadcast %4 : vector<1x1024xf32> to vector<8x1024xf32>
    %6 = arith.addf %3, %5 : vector<8x1024xf32>
    %c0_5 = arith.constant 0 : index
    %c0_6 = arith.constant 0 : index
    %7 = vector.load %arg4[%c0_5, %c0_6] : memref<1x1024xf32, #tpu.memory_space<vmem>>, vector<1x1024xf32>
    %c0_7 = arith.constant 0 : index
    %c0_8 = arith.constant 0 : index
    %8 = vector.load %arg5[%c0_7, %c0_8] : memref<1x1024xf32, #tpu.memory_space<vmem>>, vector<1x1024xf32>
    %cst_9 = arith.constant dense<0.000000e+00> : vector<8xf32>
    %9 = vector.multi_reduction <add>, %6, %cst_9 [1] : vector<8x1024xf32> to vector<8xf32>
    %10 = vector.shape_cast %9 : vector<8xf32> to vector<8x1xf32>
    %cst_10 = arith.constant 1.024000e+03 : f32
    %11 = vector.broadcast %cst_10 : f32 to vector<8x1xf32>
    %12 = arith.divf %10, %11 : vector<8x1xf32>
    %13 = arith.mulf %6, %6 : vector<8x1024xf32>
    %cst_11 = arith.constant dense<0.000000e+00> : vector<8xf32>
    %14 = vector.multi_reduction <add>, %13, %cst_11 [1] : vector<8x1024xf32> to vector<8xf32>
    %15 = vector.shape_cast %14 : vector<8xf32> to vector<8x1xf32>
    %cst_12 = arith.constant 1.024000e+03 : f32
    %16 = vector.broadcast %cst_12 : f32 to vector<8x1xf32>
    %17 = arith.divf %15, %16 : vector<8x1xf32>
    %18 = arith.mulf %12, %12 : vector<8x1xf32>
    %19 = arith.subf %17, %18 : vector<8x1xf32>
    %20 = vector.broadcast %12 : vector<8x1xf32> to vector<8x1024xf32>
    %21 = arith.subf %6, %20 : vector<8x1024xf32>
    %cst_13 = arith.constant 9.99999974E-6 : f32
    %22 = vector.broadcast %cst_13 : f32 to vector<8x1xf32>
    %23 = arith.addf %19, %22 : vector<8x1xf32>
    %24 = math.rsqrt %23 : vector<8x1xf32>
    %25 = vector.broadcast %24 : vector<8x1xf32> to vector<8x1024xf32>
    %26 = arith.mulf %21, %25 : vector<8x1024xf32>
    %27 = vector.broadcast %7 : vector<1x1024xf32> to vector<8x1024xf32>
    %28 = arith.mulf %26, %27 : vector<8x1024xf32>
    %29 = vector.broadcast %8 : vector<1x1024xf32> to vector<8x1024xf32>
    %30 = arith.addf %28, %29 : vector<8x1024xf32>
    %cst_14 = arith.constant 0.000000e+00 : f32
    %31 = vector.broadcast %cst_14 : f32 to vector<8x1024xf32>
    %32 = arith.cmpf ogt, %30, %31 : vector<8x1024xf32>
    %cst_15 = arith.constant 0.00999999977 : f32
    %33 = vector.broadcast %cst_15 : f32 to vector<8x1024xf32>
    %34 = arith.mulf %33, %30 : vector<8x1024xf32>
    %35 = arith.select %32, %30, %34 : vector<8x1024xi1>, vector<8x1024xf32>
    %c0_16 = arith.constant 0 : index
    %c0_17 = arith.constant 0 : index
    %36 = vector.load %arg6[%c0_16, %c0_17] : memref<1024x1024xi8, #tpu.memory_space<vmem>>, vector<1024x1024xi8>
    %37 = arith.sitofp %36 : vector<1024x1024xi8> to vector<1024x1024xbf16>
    %38 = arith.truncf %35 : vector<8x1024xf32> to vector<8x1024xbf16>
    %cst_18 = arith.constant dense<0.000000e+00> : vector<8x1024xf32>
    %39 = tpu.matmul %38, %37, %cst_18 {dimension_numbers = #tpu.dot_dimension_numbers<[1], [0], [0], [1], [0, 0, 1, 1], [], []>} : vector<8x1024xbf16>, vector<1024x1024xbf16>, vector<8x1024xf32> -> vector<8x1024xf32>
    %c0_19 = arith.constant 0 : index
    %c0_20 = arith.constant 0 : index
    %40 = vector.load %arg7[%c0_19, %c0_20] : memref<1x1024xf32, #tpu.memory_space<vmem>>, vector<1x1024xf32>
    %41 = vector.broadcast %40 : vector<1x1024xf32> to vector<8x1024xf32>
    %42 = arith.mulf %39, %41 : vector<8x1024xf32>
    %c0_21 = arith.constant 0 : index
    %c0_22 = arith.constant 0 : index
    %43 = vector.load %arg8[%c0_21, %c0_22] : memref<1x1024xf32, #tpu.memory_space<vmem>>, vector<1x1024xf32>
    %44 = vector.broadcast %43 : vector<1x1024xf32> to vector<8x1024xf32>
    %45 = arith.addf %42, %44 : vector<8x1024xf32>
    %c0_23 = arith.constant 0 : index
    %c0_24 = arith.constant 0 : index
    %46 = vector.load %arg9[%c0_23, %c0_24] : memref<1x1024xf32, #tpu.memory_space<vmem>>, vector<1x1024xf32>
    %c0_25 = arith.constant 0 : index
    %c0_26 = arith.constant 0 : index
    %47 = vector.load %arg10[%c0_25, %c0_26] : memref<1x1024xf32, #tpu.memory_space<vmem>>, vector<1x1024xf32>
    %cst_27 = arith.constant dense<0.000000e+00> : vector<8xf32>
    %48 = vector.multi_reduction <add>, %45, %cst_27 [1] : vector<8x1024xf32> to vector<8xf32>
    %49 = vector.shape_cast %48 : vector<8xf32> to vector<8x1xf32>
    %cst_28 = arith.constant 1.024000e+03 : f32
    %50 = vector.broadcast %cst_28 : f32 to vector<8x1xf32>
    %51 = arith.divf %49, %50 : vector<8x1xf32>
    %52 = arith.mulf %45, %45 : vector<8x1024xf32>
    %cst_29 = arith.constant dense<0.000000e+00> : vector<8xf32>
    %53 = vector.multi_reduction <add>, %52, %cst_29 [1] : vector<8x1024xf32> to vector<8xf32>
    %54 = vector.shape_cast %53 : vector<8xf32> to vector<8x1xf32>
    %cst_30 = arith.constant 1.024000e+03 : f32
    %55 = vector.broadcast %cst_30 : f32 to vector<8x1xf32>
    %56 = arith.divf %54, %55 : vector<8x1xf32>
    %57 = arith.mulf %51, %51 : vector<8x1xf32>
    %58 = arith.subf %56, %57 : vector<8x1xf32>
    %59 = vector.broadcast %51 : vector<8x1xf32> to vector<8x1024xf32>
    %60 = arith.subf %45, %59 : vector<8x1024xf32>
    %cst_31 = arith.constant 9.99999974E-6 : f32
    %61 = vector.broadcast %cst_31 : f32 to vector<8x1xf32>
    %62 = arith.addf %58, %61 : vector<8x1xf32>
    %63 = math.rsqrt %62 : vector<8x1xf32>
    %64 = vector.broadcast %63 : vector<8x1xf32> to vector<8x1024xf32>
    %65 = arith.mulf %60, %64 : vector<8x1024xf32>
    %66 = vector.broadcast %46 : vector<1x1024xf32> to vector<8x1024xf32>
    %67 = arith.mulf %65, %66 : vector<8x1024xf32>
    %68 = vector.broadcast %47 : vector<1x1024xf32> to vector<8x1024xf32>
    %69 = arith.addf %67, %68 : vector<8x1024xf32>
    %cst_32 = arith.constant 0.000000e+00 : f32
    %70 = vector.broadcast %cst_32 : f32 to vector<8x1024xf32>
    %71 = arith.cmpf ogt, %69, %70 : vector<8x1024xf32>
    %cst_33 = arith.constant 0.00999999977 : f32
    %72 = vector.broadcast %cst_33 : f32 to vector<8x1024xf32>
    %73 = arith.mulf %72, %69 : vector<8x1024xf32>
    %74 = arith.select %71, %69, %73 : vector<8x1024xi1>, vector<8x1024xf32>
    %c0_34 = arith.constant 0 : index
    %c0_35 = arith.constant 0 : index
    %75 = vector.load %arg11[%c0_34, %c0_35] : memref<1024x1024xi8, #tpu.memory_space<vmem>>, vector<1024x1024xi8>
    %76 = arith.sitofp %75 : vector<1024x1024xi8> to vector<1024x1024xbf16>
    %77 = arith.truncf %74 : vector<8x1024xf32> to vector<8x1024xbf16>
    %cst_36 = arith.constant dense<0.000000e+00> : vector<8x1024xf32>
    %78 = tpu.matmul %77, %76, %cst_36 {dimension_numbers = #tpu.dot_dimension_numbers<[1], [0], [0], [1], [0, 0, 1, 1], [], []>} : vector<8x1024xbf16>, vector<1024x1024xbf16>, vector<8x1024xf32> -> vector<8x1024xf32>
    %c0_37 = arith.constant 0 : index
    %c0_38 = arith.constant 0 : index
    %79 = vector.load %arg12[%c0_37, %c0_38] : memref<1x1024xf32, #tpu.memory_space<vmem>>, vector<1x1024xf32>
    %80 = vector.broadcast %79 : vector<1x1024xf32> to vector<8x1024xf32>
    %81 = arith.mulf %78, %80 : vector<8x1024xf32>
    %c0_39 = arith.constant 0 : index
    %c0_40 = arith.constant 0 : index
    %82 = vector.load %arg13[%c0_39, %c0_40] : memref<1x1024xf32, #tpu.memory_space<vmem>>, vector<1x1024xf32>
    %83 = vector.broadcast %82 : vector<1x1024xf32> to vector<8x1024xf32>
    %84 = arith.addf %81, %83 : vector<8x1024xf32>
    %c0_41 = arith.constant 0 : index
    %c0_42 = arith.constant 0 : index
    %85 = vector.load %arg14[%c0_41, %c0_42] : memref<1x1024xf32, #tpu.memory_space<vmem>>, vector<1x1024xf32>
    %c0_43 = arith.constant 0 : index
    %c0_44 = arith.constant 0 : index
    %86 = vector.load %arg15[%c0_43, %c0_44] : memref<1x1024xf32, #tpu.memory_space<vmem>>, vector<1x1024xf32>
    %cst_45 = arith.constant dense<0.000000e+00> : vector<8xf32>
    %87 = vector.multi_reduction <add>, %84, %cst_45 [1] : vector<8x1024xf32> to vector<8xf32>
    %88 = vector.shape_cast %87 : vector<8xf32> to vector<8x1xf32>
    %cst_46 = arith.constant 1.024000e+03 : f32
    %89 = vector.broadcast %cst_46 : f32 to vector<8x1xf32>
    %90 = arith.divf %88, %89 : vector<8x1xf32>
    %91 = arith.mulf %84, %84 : vector<8x1024xf32>
    %cst_47 = arith.constant dense<0.000000e+00> : vector<8xf32>
    %92 = vector.multi_reduction <add>, %91, %cst_47 [1] : vector<8x1024xf32> to vector<8xf32>
    %93 = vector.shape_cast %92 : vector<8xf32> to vector<8x1xf32>
    %cst_48 = arith.constant 1.024000e+03 : f32
    %94 = vector.broadcast %cst_48 : f32 to vector<8x1xf32>
    %95 = arith.divf %93, %94 : vector<8x1xf32>
    %96 = arith.mulf %90, %90 : vector<8x1xf32>
    %97 = arith.subf %95, %96 : vector<8x1xf32>
    %98 = vector.broadcast %90 : vector<8x1xf32> to vector<8x1024xf32>
    %99 = arith.subf %84, %98 : vector<8x1024xf32>
    %cst_49 = arith.constant 9.99999974E-6 : f32
    %100 = vector.broadcast %cst_49 : f32 to vector<8x1xf32>
    %101 = arith.addf %97, %100 : vector<8x1xf32>
    %102 = math.rsqrt %101 : vector<8x1xf32>
    %103 = vector.broadcast %102 : vector<8x1xf32> to vector<8x1024xf32>
    %104 = arith.mulf %99, %103 : vector<8x1024xf32>
    %105 = vector.broadcast %85 : vector<1x1024xf32> to vector<8x1024xf32>
    %106 = arith.mulf %104, %105 : vector<8x1024xf32>
    %107 = vector.broadcast %86 : vector<1x1024xf32> to vector<8x1024xf32>
    %108 = arith.addf %106, %107 : vector<8x1024xf32>
    %cst_50 = arith.constant 0.000000e+00 : f32
    %109 = vector.broadcast %cst_50 : f32 to vector<8x1024xf32>
    %110 = arith.cmpf ogt, %108, %109 : vector<8x1024xf32>
    %cst_51 = arith.constant 0.00999999977 : f32
    %111 = vector.broadcast %cst_51 : f32 to vector<8x1024xf32>
    %112 = arith.mulf %111, %108 : vector<8x1024xf32>
    %113 = arith.select %110, %108, %112 : vector<8x1024xi1>, vector<8x1024xf32>
    %114 = arith.truncf %113 : vector<8x1024xf32> to vector<8x1024xbf16>
    %c0_52 = arith.constant 0 : index
    %c0_53 = arith.constant 0 : index
    %115 = vector.load %arg16[%c0_52, %c0_53] : memref<1024x128xbf16, #tpu.memory_space<vmem>>, vector<1024x128xbf16>
    %cst_54 = arith.constant dense<0.000000e+00> : vector<8x128xf32>
    %116 = tpu.matmul %114, %115, %cst_54 {dimension_numbers = #tpu.dot_dimension_numbers<[1], [0], [0], [1], [0, 0, 1, 1], [], []>} : vector<8x1024xbf16>, vector<1024x128xbf16>, vector<8x128xf32> -> vector<8x128xf32>
    %c0_55 = arith.constant 0 : index
    %c0_56 = arith.constant 0 : index
    %117 = vector.load %arg17[%c0_55, %c0_56] : memref<1x128xf32, #tpu.memory_space<vmem>>, vector<1x128xf32>
    %118 = vector.broadcast %117 : vector<1x128xf32> to vector<8x128xf32>
    %119 = arith.addf %116, %118 : vector<8x128xf32>
    %120 = arith.truncf %119 : vector<8x128xf32> to vector<8x128xbf16>
    %c0_57 = arith.constant 0 : index
    %c0_58 = arith.constant 0 : index
    %121 = vector.load %arg18[%c0_57, %c0_58] : memref<8x128xbf16, #tpu.memory_space<vmem>>, vector<8x128xbf16>
    tpu.vector_store %arg18[%c0_57, %c0_58], %120 {strides = array<i32>} : memref<8x128xbf16, #tpu.memory_space<vmem>>, vector<8x128xbf16>,
    return
  }
  func.func @transform_0(%arg0: i32) -> (i32, i32) {
    %c0_i32 = arith.constant 0 : i32
    %c0_i32_0 = arith.constant 0 : i32
    return %arg0, %c0_i32 : i32, i32
  }
  func.func @transform_1(%arg0: i32) -> (i32, i32) {
    %c0_i32 = arith.constant 0 : i32
    %c0_i32_0 = arith.constant 0 : i32
    %c0_i32_1 = arith.constant 0 : i32
    return %c0_i32, %c0_i32_0 : i32, i32
  }
  func.func @transform_2(%arg0: i32) -> (i32, i32) {
    %c0_i32 = arith.constant 0 : i32
    %c0_i32_0 = arith.constant 0 : i32
    %c0_i32_1 = arith.constant 0 : i32
    return %c0_i32, %c0_i32_0 : i32, i32
  }
  func.func @transform_3(%arg0: i32) -> (i32, i32) {
    %c0_i32 = arith.constant 0 : i32
    %c0_i32_0 = arith.constant 0 : i32
    %c0_i32_1 = arith.constant 0 : i32
    return %c0_i32, %c0_i32_0 : i32, i32
  }
  func.func @transform_4(%arg0: i32) -> (i32, i32) {
    %c0_i32 = arith.constant 0 : i32
    %c0_i32_0 = arith.constant 0 : i32
    %c0_i32_1 = arith.constant 0 : i32
    return %c0_i32, %c0_i32_0 : i32, i32
  }
  func.func @transform_5(%arg0: i32) -> (i32, i32) {
    %c0_i32 = arith.constant 0 : i32
    %c0_i32_0 = arith.constant 0 : i32
    %c0_i32_1 = arith.constant 0 : i32
    return %c0_i32, %c0_i32_0 : i32, i32
  }
  func.func @transform_6(%arg0: i32) -> (i32, i32) {
    %c0_i32 = arith.constant 0 : i32
    %c0_i32_0 = arith.constant 0 : i32
    %c0_i32_1 = arith.constant 0 : i32
    return %c0_i32, %c0_i32_0 : i32, i32
  }
  func.func @transform_7(%arg0: i32) -> (i32, i32) {
    %c0_i32 = arith.constant 0 : i32
    %c0_i32_0 = arith.constant 0 : i32
    %c0_i32_1 = arith.constant 0 : i32
    return %c0_i32, %c0_i32_0 : i32, i32
  }
  func.func @transform_8(%arg0: i32) -> (i32, i32) {
    %c0_i32 = arith.constant 0 : i32
    %c0_i32_0 = arith.constant 0 : i32
    %c0_i32_1 = arith.constant 0 : i32
    return %c0_i32, %c0_i32_0 : i32, i32
  }
  func.func @transform_9(%arg0: i32) -> (i32, i32) {
    %c0_i32 = arith.constant 0 : i32
    %c0_i32_0 = arith.constant 0 : i32
    %c0_i32_1 = arith.constant 0 : i32
    return %c0_i32, %c0_i32_0 : i32, i32
  }
  func.func @transform_10(%arg0: i32) -> (i32, i32) {
    %c0_i32 = arith.constant 0 : i32
    %c0_i32_0 = arith.constant 0 : i32
    %c0_i32_1 = arith.constant 0 : i32
    return %c0_i32, %c0_i32_0 : i32, i32
  }
  func.func @transform_11(%arg0: i32) -> (i32, i32) {
    %c0_i32 = arith.constant 0 : i32
    %c0_i32_0 = arith.constant 0 : i32
    %c0_i32_1 = arith.constant 0 : i32
    return %c0_i32, %c0_i32_0 : i32, i32
  }
  func.func @transform_12(%arg0: i32) -> (i32, i32) {
    %c0_i32 = arith.constant 0 : i32
    %c0_i32_0 = arith.constant 0 : i32
    %c0_i32_1 = arith.constant 0 : i32
    return %c0_i32, %c0_i32_0 : i32, i32
  }
  func.func @transform_13(%arg0: i32) -> (i32, i32) {
    %c0_i32 = arith.constant 0 : i32
    %c0_i32_0 = arith.constant 0 : i32
    %c0_i32_1 = arith.constant 0 : i32
    return %c0_i32, %c0_i32_0 : i32, i32
  }
  func.func @transform_14(%arg0: i32) -> (i32, i32) {
    %c0_i32 = arith.constant 0 : i32
    %c0_i32_0 = arith.constant 0 : i32
    %c0_i32_1 = arith.constant 0 : i32
    return %c0_i32, %c0_i32_0 : i32, i32
  }
  func.func @transform_15(%arg0: i32) -> (i32, i32) {
    %c0_i32 = arith.constant 0 : i32
    %c0_i32_0 = arith.constant 0 : i32
    %c0_i32_1 = arith.constant 0 : i32
    return %c0_i32, %c0_i32_0 : i32, i32
  }
  func.func @transform_16(%arg0: i32) -> (i32, i32) {
    %c0_i32 = arith.constant 0 : i32
    %c0_i32_0 = arith.constant 0 : i32
    %c0_i32_1 = arith.constant 0 : i32
    return %c0_i32, %c0_i32_0 : i32, i32
  }
  func.func @transform_17(%arg0: i32) -> (i32, i32) {
    %c0_i32 = arith.constant 0 : i32
    %c0_i32_0 = arith.constant 0 : i32
    return %arg0, %c0_i32 : i32, i32
  }
}

</mosaic_0001>

<bundles_post_ra>
// kernel: dqn_forward.1
= control target key start
LH: loop header
LB: loop body
LE: loop exit
PB: predicated region body
PF: predicated region fallthrough
CT: control target
= control target key end

     0   :  { %s6202_s0 = inlined_call_operand.hbm [shape: f32[8,32], index: 0, kind: input, shape index: {}]   ;;  %s6203_s1 = inlined_call_operand.hbm [shape: bf16[32,1024], index: 1, kind: input, shape index: {}]   ;;  %s6204_s2 = inlined_call_operand.hbm [shape: f32[1,1024], index: 2, kind: input, shape index: {}]   ;;  %s6205_s3 = inlined_call_operand.vmem [shape: f32[1,1024], index: 3, kind: input, shape index: {}]   ;;  %s6206_s4 = inlined_call_operand.vmem [shape: f32[1,1024], index: 4, kind: input, shape index: {}]   ;;  %s6207_s5 = inlined_call_operand.hbm [shape: s8[1024,1024], index: 5, kind: input, shape index: {}]   ;;  %s6208_s6 = inlined_call_operand.vmem [shape: f32[1,1024], index: 6, kind: input, shape index: {}]   ;;  %s6209_s7 = inlined_call_operand.hbm [shape: f32[1,1024], index: 7, kind: input, shape index: {}]   ;;  %s6210_s8 = inlined_call_operand.vmem [shape: f32[1,1024], index: 8, kind: input, shape index: {}]   ;;  %s6211_s9 = inlined_call_operand.hbm [shape: f32[1,1024], index: 9, kind: input, shape index: {}]   ;;  %s6212_s10 = inlined_call_operand.hbm [shape: s8[1024,1024], index: 10, kind: input, shape index: {}]   ;;  %s6213_s11 = inlined_call_operand.vmem [shape: f32[1,1024], index: 11, kind: input, shape index: {}]   ;;  %s6214_s12 = inlined_call_operand.hbm [shape: f32[1,1024], index: 12, kind: input, shape index: {}]   ;;  %s6215_s13 = inlined_call_operand.hbm [shape: f32[1,1024], index: 13, kind: input, shape index: {}]   ;;  %s6216_s14 = inlined_call_operand.hbm [shape: f32[1,1024], index: 14, kind: input, shape index: {}]   ;;  %s6217_s15 = inlined_call_operand.hbm [shape: bf16[1024,128], index: 15, kind: input, shape index: {}]   ;;  %s6218_s16 = inlined_call_operand.vmem [shape: f32[1,128], index: 16, kind: input, shape index: {}]   ;;  %s6219_s17 = inlined_call_operand.vmem [shape: bf16[8,128], index: 17, kind: output, shape index: {}]  }
   0x1   :  { %6222 = sst [smem:[#allocation25_spill]] %s6202_s0 }
   0x2   :  { %6223 = sst [smem:[#allocation26_spill]] %s6203_s1 }
   0x3   :  { %6224 = sst [smem:[#allocation27_spill]] %s6219_s17 }
   0x4   :  { %22 = vsyncpa [#allocation3], 0 }
   0x5   :  { %23 = vsyncpa [#allocation5], 0 }
   0x6   :  { %24 = vsyncpa [#allocation8], 0 }
   0x7   :  { %25 = vsyncpa [#allocation11], 0 }
   0x8   :  { %26 = vsyncpa [#allocation14], 0 }
   0x9   :  { %27 = vsyncpa [#allocation17], 0  ;;  %s5390_s24 = smov [#allocation4]   ;;  %s6225_s28 = sld [smem:[#allocation26_spill]] }
   0xa   :  { %s43_s25 = sshll.u32 %s5390_s24, 4  ;;  %s44_s25 = int_to_ptr.vmem [resolvable:$true] %s43_s25 }
   0xf   :  { %s5136_s29 = scalar_lea.hbm %s6225_s28, 2048 }
  0x10   :  { %p5137_p0 = scmp.ne.s32.totalorder %s6225_s28, %s5136_s29  ;;  %p5140_p1 = scmp.lt.u32.totalorder %s5136_s29, %s6225_s28 }
  0x12   :  { %p5142_p2 = pnand %p5140_p1, %p5137_p0 }
  0x14   :  { %5145 = shalt.err (!%p5142_p2)
}
  0x15   :  { %s5146_s1 = scalar_lea.vmem %s44_s25, 2048  ;;  %p5151_p4 = scmp.lt.s32.totalorder %s44_s25, %s44_s25 }
  0x16   :  { %p5147_p3 = scmp.ne.s32.totalorder %s44_s25, %s5146_s1  ;;  %p5152_p5 = scmp.lt.s32.totalorder %s5146_s1, %s5146_s1 }
  0x18   :  { %p5153_p6 = por %p5152_p5, %p5151_p4 }
  0x1a   :  { %p5154_p7 = pnand %p5153_p6, %p5147_p3 }
  0x1c   :  { %5157 = shalt.err (!%p5154_p7)
}
  0x1d   :  { %s5391_s20 = smov 512   ;;  %s5392_s21 = smov 32  }
  0x1e   :  { %49 = dma.hbm_to_vmem [thread:$0]  %s6225_s28, 2048, %s44_s25, [#allocation5], %s5391_s20, %s5391_s20, %s5392_s21  }
  0x1f   :  { %s5393_s24 = smov [#allocation7]   ;;  %s5158_s0 = scalar_lea.hbm %s6207_s5, 32768 }
  0x20   :  { %s69_s26 = sshll.u32 %s5393_s24, 4  ;;  %p5159_p8 = scmp.ne.s32.totalorder %s6207_s5, %s5158_s0  ;;  %s70_s26 = int_to_ptr.vmem [resolvable:$true] %s69_s26 }
  0x21   :  { %p5162_p9 = scmp.lt.u32.totalorder %s5158_s0, %s6207_s5 }
  0x23   :  { %p5164_p10 = pnand %p5162_p9, %p5159_p8 }
  0x25   :  { %5167 = shalt.err (!%p5164_p10)
}
  0x26   :  { %s5168_s17 = scalar_lea.vmem %s70_s26, 32768  ;;  %p5173_p12 = scmp.lt.s32.totalorder %s70_s26, %s70_s26 }
  0x27   :  { %p5169_p11 = scmp.ne.s32.totalorder %s70_s26, %s5168_s17  ;;  %p5174_p13 = scmp.lt.s32.totalorder %s5168_s17, %s5168_s17 }
  0x29   :  { %p5175_p0 = por %p5174_p13, %p5173_p12 }
  0x2b   :  { %p5176_p1 = pnand %p5175_p0, %p5169_p11 }
  0x2d   :  { %5179 = shalt.err (!%p5176_p1)
}
  0x2e   :  { %s5394_s25 = smov 1024   ;;  %s5395_s28 = smov 64  }
  0x2f   :  { %75 = dma.hbm_to_vmem [thread:$0]  %s6207_s5, 32768, %s70_s26, [#allocation8], %s5394_s25, %s5394_s25, %s5395_s28  }
  0x30   :  { %s5396_s22 = smov [#allocation10]   ;;  %s5397_s24 = smov [#allocation13]  }
  0x31   :  { %s96_s23 = sshll.u32 %s5396_s22, 4  ;;  %s120_s27 = sshll.u32 %s5397_s24, 4  ;;  %s97_s23 = int_to_ptr.vmem [resolvable:$true] %s96_s23  ;;  %s121_s27 = int_to_ptr.vmem [resolvable:$true] %s120_s27 }
  0x32   :  { %s5180_s0 = scalar_lea.hbm %s6211_s9, 128 }
  0x33   :  { %p5181_p2 = scmp.ne.s32.totalorder %s6211_s9, %s5180_s0  ;;  %p5184_p3 = scmp.lt.u32.totalorder %s5180_s0, %s6211_s9 }
  0x35   :  { %p5186_p4 = pnand %p5184_p3, %p5181_p2 }
  0x37   :  { %5189 = shalt.err (!%p5186_p4)
}
  0x38   :  { %s5190_s5 = scalar_lea.vmem %s97_s23, 128  ;;  %p5195_p6 = scmp.lt.s32.totalorder %s97_s23, %s97_s23 }
  0x39   :  { %p5191_p5 = scmp.ne.s32.totalorder %s97_s23, %s5190_s5  ;;  %p5196_p7 = scmp.lt.s32.totalorder %s5190_s5, %s5190_s5 }
  0x3b   :  { %p5197_p8 = por %p5196_p7, %p5195_p6 }
  0x3d   :  { %p5198_p9 = pnand %p5197_p8, %p5191_p5 }
  0x3f   :  { %5201 = shalt.err (!%p5198_p9)
}
  0x40   :  { %99 = dma.hbm_to_vmem [thread:$0]  %s6211_s9, 128, %s97_s23, [#allocation11]  }
  0x41   :  { %s5202_s24 = scalar_lea.hbm %s6214_s12, 128 }
  0x42   :  { %p5203_p10 = scmp.ne.s32.totalorder %s6214_s12, %s5202_s24  ;;  %p5206_p11 = scmp.lt.u32.totalorder %s5202_s24, %s6214_s12 }
  0x44   :  { %p5208_p12 = pnand %p5206_p11, %p5203_p10 }
  0x46   :  { %5211 = shalt.err (!%p5208_p12)
}
  0x47   :  { %s5212_s18 = scalar_lea.vmem %s121_s27, 128  ;;  %p5217_p0 = scmp.lt.s32.totalorder %s121_s27, %s121_s27 }
  0x48   :  { %p5213_p13 = scmp.ne.s32.totalorder %s121_s27, %s5212_s18  ;;  %p5218_p1 = scmp.lt.s32.totalorder %s5212_s18, %s5212_s18 }
  0x4a   :  { %p5219_p2 = por %p5218_p1, %p5217_p0 }
  0x4c   :  { %p5220_p3 = pnand %p5219_p2, %p5213_p13 }
  0x4e   :  { %5223 = shalt.err (!%p5220_p3)
}
  0x4f   :  { %123 = dma.hbm_to_vmem [thread:$0]  %s6214_s12, 128, %s121_s27, [#allocation14]  }
  0x50   :  { %s5398_s19 = smov [#allocation16]   ;;  %s5399_s5 = smov [#allocation2]  }
  0x51   :  { %s140_s1 = sshll.u32 %s5398_s19, 4  ;;  %s34_s26 = sshll.u32 %s5399_s5, 4  ;;  %s141_s1 = int_to_ptr.vmem [resolvable:$true] %s140_s1  ;;  %s35_s26 = int_to_ptr.vmem [resolvable:$true] %s34_s26 }
  0x52   :  { %s5224_s22 = scalar_lea.hbm %s6216_s14, 128 }
  0x53   :  { %p5225_p4 = scmp.ne.s32.totalorder %s6216_s14, %s5224_s22  ;;  %p5228_p5 = scmp.lt.u32.totalorder %s5224_s22, %s6216_s14 }
  0x55   :  { %p5230_p6 = pnand %p5228_p5, %p5225_p4 }
  0x57   :  { %5233 = shalt.err (!%p5230_p6)
}
  0x58   :  { %s5234_s12 = scalar_lea.vmem %s141_s1, 128  ;;  %p5239_p8 = scmp.lt.s32.totalorder %s141_s1, %s141_s1 }
  0x59   :  { %p5235_p7 = scmp.ne.s32.totalorder %s141_s1, %s5234_s12  ;;  %p5240_p9 = scmp.lt.s32.totalorder %s5234_s12, %s5234_s12 }
  0x5b   :  { %p5241_p10 = por %p5240_p9, %p5239_p8 }
  0x5d   :  { %p5242_p11 = pnand %p5241_p10, %p5235_p7 }
  0x5f   :  { %5245 = shalt.err (!%p5242_p11)
}
  0x60   :  { %143 = dma.hbm_to_vmem [thread:$0]  %s6216_s14, 128, %s141_s1, [#allocation17]  }
  0x61   :  { %s6226_s23 = sld [smem:[#allocation25_spill]] }
  0x67   :  { %s5246_s19 = scalar_lea.hbm %s6226_s23, 128 }
  0x68   :  { %p5247_p12 = scmp.ne.s32.totalorder %s6226_s23, %s5246_s19  ;;  %p5250_p13 = scmp.lt.u32.totalorder %s5246_s19, %s6226_s23 }
  0x6a   :  { %p5252_p0 = pnand %p5250_p13, %p5247_p12 }
  0x6c   :  { %5255 = shalt.err (!%p5252_p0)
}
  0x6d   :  { %s5256_s24 = scalar_lea.vmem %s35_s26, 128  ;;  %p5261_p2 = scmp.lt.s32.totalorder %s35_s26, %s35_s26 }
  0x6e   :  { %p5257_p1 = scmp.ne.s32.totalorder %s35_s26, %s5256_s24  ;;  %p5262_p3 = scmp.lt.s32.totalorder %s5256_s24, %s5256_s24 }
  0x70   :  { %p5263_p4 = por %p5262_p3, %p5261_p2 }
  0x72   :  { %p5264_p5 = pnand %p5263_p4, %p5257_p1 }
  0x74   :  { %5267 = shalt.err (!%p5264_p5)
}
  0x75   :  { %37 = dma.hbm_to_vmem [thread:$0]  %s6226_s23, 128, %s35_s26, [#allocation3]  }
  0x76   :  { %s5400_s29 = smov [#allocation6]   ;;  %s5401_s0 = smov [#allocation9]  }
  0x77   :  { %s56_s17 = sshll.u32 %s5400_s29, 4  ;;  %s84_s12 = sshll.u32 %s5401_s0, 4  ;;  %s57_s17 = int_to_ptr.vmem [resolvable:$true] %s56_s17  ;;  %s85_s12 = int_to_ptr.vmem [resolvable:$true] %s84_s12 }
  0x78   :  { %s5268_s18 = scalar_lea.hbm %s6204_s2, 128 }
  0x79   :  { %p5269_p6 = scmp.ne.s32.totalorder %s6204_s2, %s5268_s18  ;;  %p5272_p7 = scmp.lt.u32.totalorder %s5268_s18, %s6204_s2 }
  0x7b   :  { %p5274_p8 = pnand %p5272_p7, %p5269_p6 }
  0x7d   :  { %5277 = shalt.err (!%p5274_p8)
}
  0x7e   :  { %s5278_s26 = scalar_lea.vmem %s57_s17, 128  ;;  %p5283_p10 = scmp.lt.s32.totalorder %s57_s17, %s57_s17 }
  0x7f   :  { %p5279_p9 = scmp.ne.s32.totalorder %s57_s17, %s5278_s26  ;;  %p5284_p11 = scmp.lt.s32.totalorder %s5278_s26, %s5278_s26 }
  0x81   :  { %p5285_p12 = por %p5284_p11, %p5283_p10 }
  0x83   :  { %p5286_p13 = pnand %p5285_p12, %p5279_p9 }
  0x85   :  { %5289 = shalt.err (!%p5286_p13)
}
  0x86   :  { %59 = dma.hbm_to_vmem [thread:$0]  %s6204_s2, 128, %s57_s17, [#allocation5]  }
  0x87   :  { %s5290_s14 = scalar_lea.hbm %s6209_s7, 128 }
  0x88   :  { %p5291_p0 = scmp.ne.s32.totalorder %s6209_s7, %s5290_s14  ;;  %p5294_p1 = scmp.lt.u32.totalorder %s5290_s14, %s6209_s7 }
  0x8a   :  { %p5296_p2 = pnand %p5294_p1, %p5291_p0 }
  0x8c   :  { %5299 = shalt.err (!%p5296_p2)
}
  0x8d   :  { %s5300_s30 = scalar_lea.vmem %s85_s12, 128  ;;  %p5305_p4 = scmp.lt.s32.totalorder %s85_s12, %s85_s12 }
  0x8e   :  { %p5301_p3 = scmp.ne.s32.totalorder %s85_s12, %s5300_s30  ;;  %p5306_p5 = scmp.lt.s32.totalorder %s5300_s30, %s5300_s30 }
  0x90   :  { %p5307_p6 = por %p5306_p5, %p5305_p4 }
  0x92   :  { %p5308_p7 = pnand %p5307_p6, %p5301_p3 }
  0x94   :  { %5311 = shalt.err (!%p5308_p7)
}
  0x95   :  { %87 = dma.hbm_to_vmem [thread:$0]  %s6209_s7, 128, %s85_s12, [#allocation8]  }
  0x96   :  { %s5402_s18 = smov [#allocation12]   ;;  %s5403_s19 = smov [#allocation15]  }
  0x97   :  { %s105_s9 = sshll.u32 %s5402_s18, 4  ;;  %s130_s5 = sshll.u32 %s5403_s19, 4  ;;  %s106_s9 = int_to_ptr.vmem [resolvable:$true] %s105_s9  ;;  %s131_s5 = int_to_ptr.vmem [resolvable:$true] %s130_s5 }
  0x98   :  { %s5312_s23 = scalar_lea.hbm %s6212_s10, 32768 }
  0x99   :  { %p5313_p8 = scmp.ne.s32.totalorder %s6212_s10, %s5312_s23  ;;  %p5316_p9 = scmp.lt.u32.totalorder %s5312_s23, %s6212_s10 }
  0x9b   :  { %p5318_p10 = pnand %p5316_p9, %p5313_p8 }
  0x9d   :  { %5321 = shalt.err (!%p5318_p10)
}
  0x9e   :  { %s5322_s7 = scalar_lea.vmem %s106_s9, 32768  ;;  %p5327_p12 = scmp.lt.s32.totalorder %s106_s9, %s106_s9 }
  0x9f   :  { %p5323_p11 = scmp.ne.s32.totalorder %s106_s9, %s5322_s7  ;;  %p5328_p13 = scmp.lt.s32.totalorder %s5322_s7, %s5322_s7 }
  0xa1   :  { %p5329_p0 = por %p5328_p13, %p5327_p12 }
  0xa3   :  { %p5330_p1 = pnand %p5329_p0, %p5323_p11 }
  0xa5   :  { %5333 = shalt.err (!%p5330_p1)
}
  0xa6   :  { %111 = dma.hbm_to_vmem [thread:$0]  %s6212_s10, 32768, %s106_s9, [#allocation11], %s5394_s25, %s5394_s25, %s5395_s28  }
  0xa7   :  { %s5334_s27 = scalar_lea.hbm %s6215_s13, 128 }
  0xa8   :  { %p5335_p2 = scmp.ne.s32.totalorder %s6215_s13, %s5334_s27  ;;  %p5338_p3 = scmp.lt.u32.totalorder %s5334_s27, %s6215_s13 }
  0xaa   :  { %p5340_p4 = pnand %p5338_p3, %p5335_p2 }
  0xac   :  { %5343 = shalt.err (!%p5340_p4)
}
  0xad   :  { %s5344_s19 = scalar_lea.vmem %s131_s5, 128  ;;  %p5349_p6 = scmp.lt.s32.totalorder %s131_s5, %s131_s5 }
  0xae   :  { %p5345_p5 = scmp.ne.s32.totalorder %s131_s5, %s5344_s19  ;;  %p5350_p7 = scmp.lt.s32.totalorder %s5344_s19, %s5344_s19 }
  0xb0   :  { %p5351_p8 = por %p5350_p7, %p5349_p6 }
  0xb2   :  { %p5352_p9 = pnand %p5351_p8, %p5345_p5 }
  0xb4   :  { %5355 = shalt.err (!%p5352_p9)
}
  0xb5   :  { %133 = dma.hbm_to_vmem [thread:$0]  %s6215_s13, 128, %s131_s5, [#allocation14]  }
  0xb6   :  { %s5404_s9 = smov [#allocation18]   ;;  %s5356_s21 = scalar_lea.hbm %s6217_s15, 8192 }
  0xb7   :  { %s149_s20 = sshll.u32 %s5404_s9, 4  ;;  %p5357_p10 = scmp.ne.s32.totalorder %s6217_s15, %s5356_s21  ;;  %s150_s20 = int_to_ptr.vmem [resolvable:$true] %s149_s20 }
  0xb8   :  { %p5360_p11 = scmp.lt.u32.totalorder %s5356_s21, %s6217_s15 }
  0xba   :  { %p5362_p12 = pnand %p5360_p11, %p5357_p10 }
  0xbc   :  { %5365 = shalt.err (!%p5362_p12)
}
  0xbd   :  { %s5366_s12 = scalar_lea.vmem %s150_s20, 8192  ;;  %p5371_p0 = scmp.lt.s32.totalorder %s150_s20, %s150_s20 }
  0xbe   :  { %p5367_p13 = scmp.ne.s32.totalorder %s150_s20, %s5366_s12  ;;  %p5372_p1 = scmp.lt.s32.totalorder %s5366_s12, %s5366_s12 }
  0xc0   :  { %p5373_p2 = por %p5372_p1, %p5371_p0 }
  0xc2   :  { %p5374_p3 = pnand %p5373_p2, %p5367_p13 }
  0xc4   :  { %5377 = shalt.err (!%p5374_p3)
}
  0xc5   :  { %s5405_s13 = smov 4  }
  0xc6   :  { %155 = dma.hbm_to_vmem [thread:$0]  %s6217_s15, 8192, %s150_s20, [#allocation17], %s5395_s28, %s5395_s28, %s5405_s13  }
  0xc7   :  { %5378 = dma.done.wait [#allocation3], 128  }
  0xc8   :  { %5379 = vsyncadd [#allocation3], 4294967168 }
  0xc9   :  { %5380 = dma.done.wait [#allocation5], 2176  }
  0xca   :  { %5381 = vsyncadd [#allocation5], 4294965120 }
  0xcb   :  { %5382 = dma.done.wait [#allocation8], 32896  }
  0xcc   :  { %5383 = vsyncadd [#allocation8], 4294934400 }
  0xcd   :  { %5384 = dma.done.wait [#allocation11], 32896  }
  0xce   :  { %5385 = vsyncadd [#allocation11], 4294934400 }
  0xcf   :  { %5386 = dma.done.wait [#allocation14], 256  }
  0xd0   :  { %5387 = vsyncadd [#allocation14], 4294967040 }
  0xd1   :  { %5388 = dma.done.wait [#allocation17], 8320  }
  0xd2   :  { %5389 = vsyncadd [#allocation17], 4294958976  ;;  %v5406_v0 = vmov 0   ;;  %v194_v1 = vld [vmem:[#allocation4] sm:$0xff]  ;;  %v195_v3 = vld [vmem:[#allocation4 + $0x8] sm:$0xff]  ;;  %vm332_vm0 = vcmask 261120  }
  0xd3   :  { %368 = vmatprep.mubr.bf16.mxu0 %v5406_v0  ;;  %409 = vmatprep.mubr.bf16.mxu1 %v5406_v0  ;;  %v198_v2 = vld [vmem:[#allocation4 + $0x20] sm:$0xff]  ;;  %v199_v6 = vld [vmem:[#allocation4 + $0x28] sm:$0xff]  ;;  %v196_v15 = vld [vmem:[#allocation4 + $0x10] sm:$0xff]  ;;  %s6227_s18 = sld [smem:[#allocation27_spill]] }
  0xd4   :  { %v4781_v4 = vcombine.high %v194_v1, %v198_v2  ;;  %v4780_v5 = vcombine.low %v194_v1, %v198_v2  ;;  %v202_v7 = vld [vmem:[#allocation4 + $0x40] sm:$0xff]  ;;  %v4783_v9 = vcombine.high %v195_v3, %v199_v6  ;;  %v4782_v10 = vcombine.low %v195_v3, %v199_v6  ;;  %v203_v12 = vld [vmem:[#allocation4 + $0x48] sm:$0xff]  ;;  %v200_v16 = vld [vmem:[#allocation4 + $0x30] sm:$0xff] }
  0xd5   :  { %v206_v8 = vld [vmem:[#allocation4 + $0x60] sm:$0xff]  ;;  %v207_v13 = vld [vmem:[#allocation4 + $0x68] sm:$0xff]  ;;  %v197_v17 = vld [vmem:[#allocation4 + $0x18] sm:$0xff]  ;;  %v4785_v23 = vcombine.high %v196_v15, %v200_v16  ;;  %v4784_v29 = vcombine.low %v196_v15, %v200_v16 }
  0xd6   :  { %v4789_v11 = vcombine.high %v202_v7, %v206_v8  ;;  %336 = vmatprep.subr.bf16.mxu0 %v4781_v4  ;;  %v4791_v14 = vcombine.high %v203_v12, %v207_v13  ;;  %377 = vmatprep.subr.bf16.mxu1 %v4783_v9  ;;  %v4788_v18 = vcombine.low %v202_v7, %v206_v8  ;;  %v192_v19 = vld [vmem:[#allocation2] sm:$0xff]  ;;  %v204_v21 = vld [vmem:[#allocation4 + $0x50] sm:$0xff]  ;;  %v676_v36 = vld [vmem:[#allocation7 + $0x18] sm:$0xff] }
  0xd7   :  { %337 = vmatpush1.bf16.msra.mxu0 %v4780_v5  ;;  %v201_v20 = vld [vmem:[#allocation4 + $0x38] sm:$0xff]  ;;  %378 = vmatpush1.bf16.msra.mxu1 %v4782_v10  ;;  %v4790_v22 = vcombine.low %v203_v12, %v207_v13  ;;  %v208_v24 = vld [vmem:[#allocation4 + $0x70] sm:$0xff]  ;;  %v193_v28 = vpack.c.bf16 %v192_v19, %v192_v19  ;;  %v673_v37 = vld [vmem:[#allocation7] sm:$0xff]  ;;  %v932_v39 = vunpack.c.l.s8.bf16 %v676_v36  ;;  %v940_v44 = vunpack.c.h.s8.bf16 %v676_v36 }
  0xd8   :  { %338 = vmatprep.subr.bf16.mxu0 %v4789_v11  ;;  %v205_v25 = vld [vmem:[#allocation4 + $0x58] sm:$0xff]  ;;  %379 = vmatprep.subr.bf16.mxu1 %v4791_v14  ;;  %v4787_v27 = vcombine.high %v197_v17, %v201_v20  ;;  %v4786_v30 = vcombine.low %v197_v17, %v201_v20  ;;  %v4793_v31 = vcombine.high %v204_v21, %v208_v24  ;;  %v674_v35 = vld [vmem:[#allocation7 + $0x8] sm:$0xff]  ;;  %v929_v40 = vunpack.c.l.s8.bf16 %v673_v37  ;;  %v684_v46 = vld [vmem:[#allocation7 + $0x58] sm:$0xff] }
  0xd9   :  { %v209_v26 = vld [vmem:[#allocation4 + $0x78] sm:$0xff]  ;;  %v4792_v33 = vcombine.low %v204_v21, %v208_v24  ;;  %v930_v38 = vunpack.c.l.s8.bf16 %v674_v35  ;;  %v938_v42 = vunpack.c.h.s8.bf16 %v674_v35  ;;  %v682_v45 = vld [vmem:[#allocation7 + $0x48] sm:$0xff]  ;;  %v937_v47 = vunpack.c.h.s8.bf16 %v673_v37  ;;  %v681_v51 = vld [vmem:[#allocation7 + $0x40] sm:$0xff] }
  0xda   :  { %v4795_v32 = vcombine.high %v205_v25, %v209_v26  ;;  %v4794_v34 = vcombine.low %v205_v25, %v209_v26  ;;  %v675_v41 = vld [vmem:[#allocation7 + $0x10] sm:$0xff]  ;;  %v946_v49 = vunpack.c.l.s8.bf16 %v682_v45  ;;  %v948_v50 = vunpack.c.l.s8.bf16 %v684_v46  ;;  %v690_v57 = vld [vmem:[#allocation7 + $0x88] sm:$0xff]  ;;  %v692_v58 = vld [vmem:[#allocation7 + $0x98] sm:$0xff] }
  0xdb   :  { %339 = vmatpush1.bf16.msra.mxu0 %v4788_v18  ;;  %380 = vmatpush1.bf16.msra.mxu1 %v4790_v22  ;;  %v931_v43 = vunpack.c.l.s8.bf16 %v675_v41  ;;  %v939_v48 = vunpack.c.h.s8.bf16 %v675_v41  ;;  %v683_v52 = vld [vmem:[#allocation7 + $0x50] sm:$0xff]  ;;  %v945_v53 = vunpack.c.l.s8.bf16 %v681_v51  ;;  %v954_v55 = vunpack.c.h.s8.bf16 %v682_v45  ;;  %v689_v63 = vld [vmem:[#allocation7 + $0x80] sm:$0xff]  ;;  %v698_v5 = vld [vmem:[#allocation7 + $0xc8] sm:$0xff] }
  0xdc   :  { %418 = vmatprep.subr.bf16.mxu0 %v4785_v23  ;;  %459 = vmatprep.subr.bf16.mxu1 %v4787_v27  ;;  %v947_v54 = vunpack.c.l.s8.bf16 %v683_v52  ;;  %v956_v56 = vunpack.c.h.s8.bf16 %v684_v46  ;;  %v953_v59 = vunpack.c.h.s8.bf16 %v681_v51  ;;  %v955_v60 = vunpack.c.h.s8.bf16 %v683_v52  ;;  %v700_v6 = vld [vmem:[#allocation7 + $0xd8] sm:$0xff]  ;;  %v697_v11 = vld [vmem:[#allocation7 + $0xc0] sm:$0xff]  ;;  %v699_v12 = vld [vmem:[#allocation7 + $0xd0] sm:$0xff] }
  0xdd   :  { %v962_v61 = vunpack.c.l.s8.bf16 %v690_v57  ;;  %v964_v62 = vunpack.c.l.s8.bf16 %v692_v58  ;;  %v961_v1 = vunpack.c.l.s8.bf16 %v689_v63  ;;  %v970_v3 = vunpack.c.h.s8.bf16 %v690_v57  ;;  %v210_v22 = vld [vmem:[#allocation6] sm:$0xff] }
  0xde   :  { %4796 = vmatmul.mubr.msk.bf16.vlgmr.msra.gmra.mrb[0].mxu0 %vm332_vm0, %v193_v28  ;;  %4797 = vmatmul.mubr.msk.bf16.vlgmr.msra.gmra.mrb[0].mxu1 %vm332_vm0, %v193_v28  ;;  %v972_v4 = vunpack.c.h.s8.bf16 %v692_v58  ;;  %v969_v7 = vunpack.c.h.s8.bf16 %v689_v63  ;;  %v978_v9 = vunpack.c.l.s8.bf16 %v698_v5  ;;  %v980_v10 = vunpack.c.l.s8.bf16 %v700_v6 }
  0xdf   :  { %419 = vmatpush1.bf16.msra.mxu0 %v4784_v29  ;;  %460 = vmatpush1.bf16.msra.mxu1 %v4786_v30  ;;  %v977_v13 = vunpack.c.l.s8.bf16 %v697_v11  ;;  %v979_v14 = vunpack.c.l.s8.bf16 %v699_v12  ;;  %v986_v15 = vunpack.c.h.s8.bf16 %v698_v5  ;;  %v988_v16 = vunpack.c.h.s8.bf16 %v700_v6 }
  0xe0   :  { %420 = vmatprep.subr.bf16.mxu0 %v4793_v31  ;;  %461 = vmatprep.subr.bf16.mxu1 %v4795_v32  ;;  %v985_v17 = vunpack.c.h.s8.bf16 %v697_v11  ;;  %v987_v18 = vunpack.c.h.s8.bf16 %v699_v12  ;;  %v212_v19 = vlaneseq }
  0xe1   :  { %450 = vmatprep.mubr.bf16.mxu0 %v5406_v0  ;;  %491 = vmatprep.mubr.bf16.mxu1 %v5406_v0  ;;  %v691_v0 = vld [vmem:[#allocation7 + $0x90] sm:$0xff] }
  0xe2   :  { %v963_v2 = vunpack.c.l.s8.bf16 %v691_v0  ;;  %v971_v8 = vunpack.c.h.s8.bf16 %v691_v0  ;;  %v213_v20 = vshrl.u32 %v212_v19, 7 }
  0xe3   :  { %421 = vmatpush1.bf16.msra.mxu0 %v4792_v33  ;;  %462 = vmatpush1.bf16.msra.mxu1 %v4794_v34 }
  0xe4   :  { %1449 = vmatprep.subr.bf16.mxu0 %v930_v38  ;;  %1613 = vmatprep.subr.bf16.mxu1 %v932_v39  ;;  %v5641_v21 = vsub.s32 0, %v213_v20  ;;  %v5643_v23 = vsub.s32 1, %v213_v20  ;;  %v5645_v24 = vsub.s32 2, %v213_v20  ;;  %v5647_v25 = vsub.s32 3, %v213_v20 }
  0xe5   :  { %v5655_v34 = vsub.s32 4, %v213_v20  ;;  %v5657_v35 = vsub.s32 5, %v213_v20 }
  0xe6   :  { %4798 = vmatmul.mubr.msk.bf16.vlgmr.msra.gmra.mrb[4].mxu0 %vm332_vm0, %v193_v28  ;;  %4799 = vmatmul.mubr.msk.bf16.vlgmr.msra.gmra.mrb[4].mxu1 %vm332_vm0, %v193_v28  ;;  %v215_v26 = vrot.slane %v210_v22, %v5641_v21  ;;  %v219_v27 = vrot.slane %v210_v22, %v5643_v23  ;;  %v223_v28 = vrot.slane %v210_v22, %v5645_v24 }
  0xe7   :  { %1450 = vmatpush1.bf16.msra.mxu0 %v929_v40  ;;  %1614 = vmatpush1.bf16.msra.mxu1 %v931_v43  ;;  %v227_v29 = vrot.slane %v210_v22, %v5647_v25  ;;  %v5663_v40 = vsub.s32 6, %v213_v20 }
  0xe8   :  { %1451 = vmatprep.subr.bf16.mxu0 %v938_v42  ;;  %1615 = vmatprep.subr.bf16.mxu1 %v940_v44 }
  0xeb   :  { %1452 = vmatpush1.bf16.msra.mxu0 %v937_v47  ;;  %1616 = vmatpush1.bf16.msra.mxu1 %v939_v48 }
  0xec   :  { %1453 = vmatprep.subr.bf16.mxu0 %v946_v49  ;;  %1617 = vmatprep.subr.bf16.mxu1 %v948_v50  ;;  %v231_v49 = vrot.slane %v210_v22, %v5655_v34  ;;  %v235_v50 = vrot.slane %v210_v22, %v5657_v35 }
  0xef   :  { %1454 = vmatpush1.bf16.msra.mxu0 %v945_v53  ;;  %1618 = vmatpush1.bf16.msra.mxu1 %v947_v54  ;;  %v239_v54 = vrot.slane %v210_v22, %v5663_v40 }
  0xf0   :  { %1455 = vmatprep.subr.bf16.mxu0 %v954_v55  ;;  %1619 = vmatprep.subr.bf16.mxu1 %v956_v56  ;;  %v5681_v55 = vsub.s32 7, %v213_v20  ;;  %v706_v20 = vld [vmem:[#allocation7 + $0x108] sm:$0xff] }
  0xf2   :  { %v243_v6 = vrot.slane %v210_v22, %v5681_v55  ;;  %v708_v22 = vld [vmem:[#allocation7 + $0x118] sm:$0xff] }
  0xf3   :  { %1456 = vmatpush1.bf16.msra.mxu0 %v953_v59  ;;  %1620 = vmatpush1.bf16.msra.mxu1 %v955_v60 }
  0xf4   :  { %1457 = vmatprep.subr.bf16.mxu0 %v962_v61  ;;  %1621 = vmatprep.subr.bf16.mxu1 %v964_v62 }
  0xf7   :  { %1458 = vmatpush1.bf16.msra.mxu0 %v961_v1  ;;  %1622 = vmatpush1.bf16.msra.mxu1 %v963_v2 }
  0xf8   :  { %1459 = vmatprep.subr.bf16.mxu0 %v970_v3  ;;  %1623 = vmatprep.subr.bf16.mxu1 %v972_v4 }
  0xfb   :  { %1460 = vmatpush1.bf16.msra.mxu0 %v969_v7  ;;  %1624 = vmatpush1.bf16.msra.mxu1 %v971_v8 }
  0xfc   :  { %1461 = vmatprep.subr.bf16.mxu0 %v978_v9  ;;  %1625 = vmatprep.subr.bf16.mxu1 %v980_v10 }
  0xff   :  { %1462 = vmatpush1.bf16.msra.mxu0 %v977_v13  ;;  %1626 = vmatpush1.bf16.msra.mxu1 %v979_v14 }
 0x100   :  { %1463 = vmatprep.subr.bf16.mxu0 %v986_v15  ;;  %1627 = vmatprep.subr.bf16.mxu1 %v988_v16 }
 0x103   :  { %1464 = vmatpush1.bf16.msra.mxu0 %v985_v17  ;;  %1628 = vmatpush1.bf16.msra.mxu1 %v987_v18 }
 0x1b1   :  { %v370_v30 = vpop.f32.mrb[0].mxu0  ;;  %v411_v33 = vpop.f32.mrb[0].mxu1 }
 0x1b2   :  { %v5653_v31 = vadd.f32 %v370_v30, %v215_v26  ;;  %v372_v32 = vpop.f32.mrb[1].mxu0  ;;  %v5661_v38 = vadd.f32 %v411_v33, %v223_v28  ;;  %v413_v39 = vpop.f32.mrb[1].mxu1  ;;  %v994_v26 = vunpack.c.l.s8.bf16 %v706_v20  ;;  %v705_v28 = vld [vmem:[#allocation7 + $0x100] sm:$0xff]  ;;  %v1002_v33 = vunpack.c.h.s8.bf16 %v706_v20  ;;  %v5705_v20 = vld [vmem:[#allocation7 + $0x208] sm:$0xff] }
 0x1b3   :  { %v5659_v36 = vadd.f32 %v372_v32, %v219_v27  ;;  %v374_v37 = vpop.f32.mrb[2].mxu0  ;;  %v5667_v43 = vadd.f32 %v413_v39, %v227_v29  ;;  %v415_v44 = vpop.f32.mrb[2].mxu1  ;;  %v996_v27 = vunpack.c.l.s8.bf16 %v708_v22  ;;  %v707_v29 = vld [vmem:[#allocation7 + $0x110] sm:$0xff]  ;;  %v993_v30 = vunpack.c.l.s8.bf16 %v705_v28 }
 0x1b4   :  { %v513_v41 = vmul.f32 %v5653_v31, %v5653_v31  ;;  %v375_v42 = vpop.f32.mrb[3].mxu0  ;;  %v515_v47 = vmul.f32 %v5661_v38, %v5661_v38  ;;  %v416_v48 = vpop.f32.mrb[3].mxu1  ;;  %v995_v32 = vunpack.c.l.s8.bf16 %v707_v29  ;;  %1465 = vmatprep.subr.bf16.mxu0 %v994_v26  ;;  %v1004_v37 = vunpack.c.h.s8.bf16 %v708_v22  ;;  %v716_v44 = vld [vmem:[#allocation7 + $0x158] sm:$0xff] }
 0x1b5   :  { %v502_v45 = vadd.f32 %v5659_v36, %v5653_v31  ;;  %v514_v46 = vmul.f32 %v5659_v36, %v5659_v36  ;;  %v516_v53 = vmul.f32 %v5667_v43, %v5667_v43  ;;  %1629 = vmatprep.subr.bf16.mxu1 %v996_v27  ;;  %1466 = vmatpush1.bf16.msra.mxu0 %v993_v30  ;;  %v1001_v39 = vunpack.c.h.s8.bf16 %v705_v28  ;;  %v714_v42 = vld [vmem:[#allocation7 + $0x148] sm:$0xff]  ;;  %v715_v48 = vld [vmem:[#allocation7 + $0x150] sm:$0xff]  ;;  %v5707_v22 = vld [vmem:[#allocation7 + $0x218] sm:$0xff] }
 0x1b6   :  { %1630 = vmatpush1.bf16.msra.mxu1 %v995_v32  ;;  %1467 = vmatprep.subr.bf16.mxu0 %v1002_v33  ;;  %v1058_v26 = vunpack.c.l.s8.bf16 %v5705_v20  ;;  %v1060_v27 = vunpack.c.l.s8.bf16 %v5707_v22 }
 0x1b7   :  { %v521_v51 = vadd.f32 %v514_v46, %v513_v41  ;;  %v503_v52 = vadd.f32 %v502_v45, %v5661_v38  ;;  %v1003_v41 = vunpack.c.h.s8.bf16 %v707_v29  ;;  %1631 = vmatprep.subr.bf16.mxu1 %v1004_v37  ;;  %v1010_v45 = vunpack.c.l.s8.bf16 %v714_v42 }
 0x1b8   :  { %v1012_v46 = vunpack.c.l.s8.bf16 %v716_v44 }
 0x1b9   :  { %v522_v56 = vadd.f32 %v521_v51, %v515_v47  ;;  %v504_v57 = vadd.f32 %v503_v52, %v5667_v43  ;;  %v452_v58 = vpop.f32.mrb[4].mxu0  ;;  %v493_v61 = vpop.f32.mrb[4].mxu1  ;;  %1468 = vmatpush1.bf16.msra.mxu0 %v1001_v39  ;;  %v713_v47 = vld [vmem:[#allocation7 + $0x140] sm:$0xff]  ;;  %v1018_v51 = vunpack.c.h.s8.bf16 %v714_v42  ;;  %v1020_v52 = vunpack.c.h.s8.bf16 %v716_v44  ;;  %v5723_v42 = vld [vmem:[%s6206_s4] sm:$0xff] }
 0x1ba   :  { %v5684_v59 = vadd.f32 %v452_v58, %v231_v49  ;;  %v454_v60 = vpop.f32.mrb[5].mxu0  ;;  %v5688_v1 = vadd.f32 %v493_v61, %v239_v54  ;;  %v495_v2 = vpop.f32.mrb[5].mxu1  ;;  %1632 = vmatpush1.bf16.msra.mxu1 %v1003_v41  ;;  %v1009_v49 = vunpack.c.l.s8.bf16 %v713_v47  ;;  %1469 = vmatprep.subr.bf16.mxu0 %v1010_v45  ;;  %v1019_v54 = vunpack.c.h.s8.bf16 %v715_v48  ;;  %v721_v58 = vld [vmem:[#allocation7 + $0x180] sm:$0xff]  ;;  %v5718_v41 = vld [vmem:[%s6205_s3] sm:$0xff] }
 0x1bb   :  { %v523_v62 = vadd.f32 %v522_v56, %v516_v53  ;;  %v5686_v63 = vadd.f32 %v454_v60, %v235_v50  ;;  %v456_v0 = vpop.f32.mrb[6].mxu0  ;;  %v497_v7 = vpop.f32.mrb[6].mxu1  ;;  %v5699_v13 = vadd.f32 %v495_v2, %v243_v6  ;;  %v1011_v50 = vunpack.c.l.s8.bf16 %v715_v48  ;;  %1633 = vmatprep.subr.bf16.mxu1 %v1012_v46  ;;  %v722_v56 = vld [vmem:[#allocation7 + $0x188] sm:$0xff]  ;;  %v732_v6 = vld [vmem:[#allocation7 + $0x1d8] sm:$0xff] }
 0x1bc   :  { %v505_v3 = vadd.f32 %v504_v57, %v5684_v59  ;;  %v517_v4 = vmul.f32 %v5684_v59, %v5684_v59  ;;  %v457_v5 = vpop.f32.mrb[7].mxu0  ;;  %v498_v9 = vpop.f32.mrb[7].mxu1  ;;  %v519_v11 = vmul.f32 %v5688_v1, %v5688_v1  ;;  %v1017_v53 = vunpack.c.h.s8.bf16 %v713_v47  ;;  %v724_v57 = vld [vmem:[#allocation7 + $0x198] sm:$0xff] }
 0x1bd   :  { %v518_v8 = vmul.f32 %v5686_v63, %v5686_v63  ;;  %v520_v18 = vmul.f32 %v5699_v13, %v5699_v13  ;;  %1470 = vmatpush1.bf16.msra.mxu0 %v1009_v49  ;;  %v1026_v60 = vunpack.c.l.s8.bf16 %v722_v56  ;;  %v1028_v61 = vunpack.c.l.s8.bf16 %v724_v57  ;;  %v730_v5 = vld [vmem:[#allocation7 + $0x1c8] sm:$0xff] }
 0x1be   :  { %v524_v10 = vadd.f32 %v523_v62, %v517_v4  ;;  %v506_v12 = vadd.f32 %v505_v3, %v5686_v63  ;;  %1634 = vmatpush1.bf16.msra.mxu1 %v1011_v50  ;;  %v723_v62 = vld [vmem:[#allocation7 + $0x190] sm:$0xff]  ;;  %1471 = vmatprep.subr.bf16.mxu0 %v1018_v51  ;;  %v1025_v0 = vunpack.c.l.s8.bf16 %v721_v58  ;;  %v1034_v3 = vunpack.c.h.s8.bf16 %v722_v56 }
 0x1bf   :  { %1635 = vmatprep.subr.bf16.mxu1 %v1020_v52  ;;  %v1027_v2 = vunpack.c.l.s8.bf16 %v723_v62  ;;  %v1036_v4 = vunpack.c.h.s8.bf16 %v724_v57  ;;  %v1033_v7 = vunpack.c.h.s8.bf16 %v721_v58  ;;  %v1042_v9 = vunpack.c.l.s8.bf16 %v730_v5 }
 0x1c0   :  { %v507_v14 = vadd.f32 %v506_v12, %v5688_v1  ;;  %v525_v15 = vadd.f32 %v524_v10, %v518_v8  ;;  %v1035_v8 = vunpack.c.h.s8.bf16 %v723_v62  ;;  %v1044_v10 = vunpack.c.l.s8.bf16 %v732_v6  ;;  %v731_v12 = vld [vmem:[#allocation7 + $0x1d0] sm:$0xff] }
 0x1c1   :  { %1472 = vmatpush1.bf16.msra.mxu0 %v1017_v53  ;;  %v559_v44 = vrot.slane %v5718_v41, %v5643_v23  ;;  %v555_v45 = vrot.slane %v5718_v41, %v5641_v21  ;;  %v608_v46 = vrot.slane %v5723_v42, %v5643_v23  ;;  %v567_v47 = vrot.slane %v5718_v41, %v5647_v25 }
 0x1c2   :  { %v508_v16 = vadd.f32 %v507_v14, %v5699_v13  ;;  %v526_v17 = vadd.f32 %v525_v15, %v519_v11  ;;  %1636 = vmatpush1.bf16.msra.mxu1 %v1019_v54  ;;  %1473 = vmatprep.subr.bf16.mxu0 %v1026_v60  ;;  %v729_v11 = vld [vmem:[#allocation7 + $0x1c0] sm:$0xff]  ;;  %v1043_v15 = vunpack.c.l.s8.bf16 %v731_v12  ;;  %v563_v48 = vrot.slane %v5718_v41, %v5645_v24 }
 0x1c3   :  { %1637 = vmatprep.subr.bf16.mxu1 %v1028_v61  ;;  %v1041_v14 = vunpack.c.l.s8.bf16 %v729_v11  ;;  %v575_v49 = vrot.slane %v5718_v41, %v5657_v35  ;;  %v604_v50 = vrot.slane %v5723_v42, %v5641_v21  ;;  %v616_v51 = vrot.slane %v5723_v42, %v5647_v25 }
 0x1c4   :  { %509 = vadd.xlane.f32.xlu0 %v508_v16  ;;  %v527_v19 = vadd.f32 %v526_v17, %v520_v18  ;;  %v1050_v16 = vunpack.c.h.s8.bf16 %v730_v5  ;;  %v1052_v17 = vunpack.c.h.s8.bf16 %v732_v6  ;;  %v1049_v18 = vunpack.c.h.s8.bf16 %v729_v11 }
 0x1c5   :  { %1474 = vmatpush1.bf16.msra.mxu0 %v1025_v0  ;;  %v612_v52 = vrot.slane %v5723_v42, %v5645_v24  ;;  %v571_v53 = vrot.slane %v5718_v41, %v5655_v34  ;;  %v624_v62 = vrot.slane %v5723_v42, %v5657_v35 }
 0x1c6   :  { %1638 = vmatpush1.bf16.msra.mxu1 %v1027_v2  ;;  %1475 = vmatprep.subr.bf16.mxu0 %v1034_v3 }
 0x1c7   :  { %1639 = vmatprep.subr.bf16.mxu1 %v1036_v4 }
 0x1c8   :  { %528 = vadd.xlane.f32.xlu0 %v527_v19  ;;  %v1051_v19 = vunpack.c.h.s8.bf16 %v731_v12 }
 0x1c9   :  { %1476 = vmatpush1.bf16.msra.mxu0 %v1033_v7 }
 0x1ca   :  { %1640 = vmatpush1.bf16.msra.mxu1 %v1035_v8  ;;  %1477 = vmatprep.subr.bf16.mxu0 %v1042_v9 }
 0x1cb   :  { %1641 = vmatprep.subr.bf16.mxu1 %v1044_v10 }
 0x1cd   :  { %1478 = vmatpush1.bf16.msra.mxu0 %v1041_v14 }
 0x1ce   :  { %1642 = vmatpush1.bf16.msra.mxu1 %v1043_v15  ;;  %1479 = vmatprep.subr.bf16.mxu0 %v1050_v16  ;;  %v737_v15 = vld [vmem:[#allocation7 + $0x200] sm:$0xff]  ;;  %v739_v16 = vld [vmem:[#allocation7 + $0x210] sm:$0xff] }
 0x1cf   :  { %1643 = vmatprep.subr.bf16.mxu1 %v1052_v17 }
 0x1d1   :  { %1480 = vmatpush1.bf16.msra.mxu0 %v1049_v18 }
 0x1d2   :  { %1644 = vmatpush1.bf16.msra.mxu1 %v1051_v19  ;;  %1490 = vmatprep.subr.bf16.mxu0 %v1058_v26 }
 0x1d3   :  { %1654 = vmatprep.subr.bf16.mxu1 %v1060_v27 }
 0x251   :  { %v510_v28 = vpop.xlane.xlu0 %509 }
 0x252   :  { %v5711_v29 = vmul.f32 0.0009765625, %v510_v28 }
 0x254   :  { %v531_v32 = vmul.f32 %v5711_v29, %v5711_v29  ;;  %v534_v54 = vsub.f32 %v5659_v36, %v5711_v29  ;;  %v533_v56 = vsub.f32 %v5653_v31, %v5711_v29  ;;  %v536_v57 = vsub.f32 %v5667_v43, %v5711_v29 }
 0x255   :  { %v529_v30 = vpop.xlane.xlu0 %528  ;;  %v535_v58 = vsub.f32 %v5661_v38, %v5711_v29  ;;  %v538_v61 = vsub.f32 %v5686_v63, %v5711_v29  ;;  %v537_v0 = vsub.f32 %v5684_v59, %v5711_v29  ;;  %v540_v36 = vsub.f32 %v5699_v13, %v5711_v29 }
 0x256   :  { %v530_v33 = vmul.f32 0.0009765625, %v529_v30  ;;  %v620_v38 = vrot.slane %v5723_v42, %v5655_v34 }
 0x258   :  { %v532_v37 = vsub.f32 %v530_v33, %v531_v32  ;;  %v1057_v32 = vunpack.c.l.s8.bf16 %v737_v15  ;;  %v583_v33 = vrot.slane %v5718_v41, %v5681_v55 }
 0x25a   :  { %v541_v39 = vadd.f32 1e-05, %v532_v37 }
 0x25c   :  { %5130 = vrsqrt.f32 %v541_v39 }
 0x266   :  { %v5131_v60 = vpop.eup %5130 }
 0x267   :  { %v544_v31 = vmul.f32 %v5131_v60, %v534_v54  ;;  %v543_v2 = vmul.f32 %v5131_v60, %v533_v56  ;;  %v546_v3 = vmul.f32 %v5131_v60, %v536_v57  ;;  %v545_v43 = vmul.f32 %v5131_v60, %v535_v58  ;;  %v745_v57 = vld [vmem:[#allocation7 + $0x240] sm:$0xff] }
 0x268   :  { %v548_v4 = vmul.f32 %v5131_v60, %v538_v61  ;;  %v547_v5 = vmul.f32 %v5131_v60, %v537_v0  ;;  %v550_v6 = vmul.f32 %v5131_v60, %v540_v36  ;;  %v1065_v54 = vunpack.c.h.s8.bf16 %v737_v15 }
 0x269   :  { %v593_v63 = vmul.f32 %v559_v44, %v544_v31  ;;  %v592_v7 = vmul.f32 %v555_v45, %v543_v2  ;;  %v595_v8 = vmul.f32 %v567_v47, %v546_v3  ;;  %v594_v9 = vmul.f32 %v563_v48, %v545_v43  ;;  %v754_v3 = vld [vmem:[#allocation7 + $0x288] sm:$0xff]  ;;  %v756_v43 = vld [vmem:[#allocation7 + $0x298] sm:$0xff] }
 0x26a   :  { %v597_v10 = vmul.f32 %v575_v49, %v548_v4  ;;  %v596_v11 = vmul.f32 %v571_v53, %v547_v5  ;;  %v1059_v44 = vunpack.c.l.s8.bf16 %v739_v16  ;;  %v539_v47 = vsub.f32 %v5688_v1, %v5711_v29 }
 0x26b   :  { %v642_v59 = vadd.f32 %v608_v46, %v593_v63  ;;  %v641_v12 = vadd.f32 %v604_v50, %v592_v7  ;;  %v644_v14 = vadd.f32 %v616_v51, %v595_v8  ;;  %v5763_v13 = vadd.f32 %v612_v52, %v594_v9  ;;  %v746_v50 = vld [vmem:[#allocation7 + $0x248] sm:$0xff]  ;;  %v748_v51 = vld [vmem:[#allocation7 + $0x258] sm:$0xff]  ;;  %v755_v63 = vld [vmem:[#allocation7 + $0x290] sm:$0xff] }
 0x26c   :  { %v5765_v17 = vadd.f32 %v624_v62, %v597_v10  ;;  %v5767_v18 = vadd.f32 %v620_v38, %v596_v11  ;;  %v632_v46 = vrot.slane %v5723_v42, %v5681_v55  ;;  %v1066_v48 = vunpack.c.h.s8.bf16 %v5705_v20  ;;  %v762_v11 = vld [vmem:[#allocation7 + $0x2c8] sm:$0xff] }
 0x26d   :  { %vm650_vm1 = vcmp.gt.f32.partialorder %v642_v59, 0.0  ;;  %v658_v19 = vmul.f32 0.01, %v642_v59  ;;  %vm649_vm2 = vcmp.gt.f32.partialorder %v641_v12, 0.0  ;;  %v657_v26 = vmul.f32 0.01, %v641_v12 }
 0x26e   :  { %vm652_vm3 = vcmp.gt.f32.partialorder %v644_v14, 0.0  ;;  %v660_v27 = vmul.f32 0.01, %v644_v14  ;;  %v1068_v49 = vunpack.c.h.s8.bf16 %v5707_v22  ;;  %v579_v52 = vrot.slane %v5718_v41, %v5663_v40  ;;  %v747_v41 = vld [vmem:[#allocation7 + $0x250] sm:$0xff] }
 0x26f   :  { %v666_v28 = vsel %vm650_vm1, %v642_v59, %v658_v19  ;;  %v665_v30 = vsel %vm649_vm2, %v641_v12, %v657_v26  ;;  %v599_v1 = vmul.f32 %v583_v33, %v550_v6  ;;  %v549_v29 = vmul.f32 %v5131_v60, %v539_v47  ;;  %v753_v6 = vld [vmem:[#allocation7 + $0x280] sm:$0xff]  ;;  %v764_v59 = vld [vmem:[#allocation7 + $0x2d8] sm:$0xff]  ;;  %v763_v26 = vld [vmem:[#allocation7 + $0x2d0] sm:$0xff] }
 0x270   :  { %v5771_v37 = vpack.c.bf16 %v666_v28, %v666_v28  ;;  %v5773_v39 = vpack.c.bf16 %v665_v30, %v665_v30  ;;  %v668_v45 = vsel %vm652_vm3, %v644_v14, %v660_v27  ;;  %v1067_v56 = vunpack.c.h.s8.bf16 %v739_v16  ;;  %v761_v19 = vld [vmem:[#allocation7 + $0x2c0] sm:$0xff]  ;;  %v770_v33 = vld [vmem:[#allocation7 + $0x308] sm:$0xff] }
 0x271   :  { %v5787_v53 = vpack.c.bf16 %v668_v45, %v668_v45  ;;  %v1074_v20 = vunpack.c.l.s8.bf16 %v746_v50  ;;  %v1076_v22 = vunpack.c.l.s8.bf16 %v748_v51  ;;  %v5791_v58 = vadd.f32 %v632_v46, %v599_v1 }
 0x272   :  { %1481 = vmatprep.mubr.bf16.mxu0 %v5771_v37  ;;  %1645 = vmatprep.mubr.bf16.mxu1 %v5771_v37  ;;  %v628_v61 = vrot.slane %v5723_v42, %v5663_v40  ;;  %v598_v60 = vmul.f32 %v579_v52, %v549_v29  ;;  %v1073_v62 = vunpack.c.l.s8.bf16 %v745_v57  ;;  %v1075_v0 = vunpack.c.l.s8.bf16 %v747_v41 }
 0x273   :  { %1482 = vmatmul.mubr.bf16.vlgmr.msra.gmra.mrb[8].mxu0 %v5773_v39  ;;  %1646 = vmatmul.mubr.bf16.vlgmr.msra.gmra.mrb[8].mxu1 %v5773_v39  ;;  %v1082_v36 = vunpack.c.h.s8.bf16 %v746_v50  ;;  %v1084_v31 = vunpack.c.h.s8.bf16 %v748_v51  ;;  %v1081_v4 = vunpack.c.h.s8.bf16 %v745_v57  ;;  %v1083_v5 = vunpack.c.h.s8.bf16 %v747_v41  ;;  %v771_v50 = vld [vmem:[#allocation7 + $0x310] sm:$0xff] }
 0x274   :  { %1491 = vmatpush1.bf16.msra.mxu0 %v1057_v32  ;;  %1655 = vmatpush1.bf16.msra.mxu1 %v1059_v44  ;;  %v5795_v2 = vadd.f32 %v628_v61, %v598_v60  ;;  %v1090_v42 = vunpack.c.l.s8.bf16 %v754_v3  ;;  %v1092_v38 = vunpack.c.l.s8.bf16 %v756_v43  ;;  %v1089_v7 = vunpack.c.l.s8.bf16 %v753_v6  ;;  %v772_v44 = vld [vmem:[#allocation7 + $0x318] sm:$0xff]  ;;  %v777_v61 = vld [vmem:[#allocation7 + $0x340] sm:$0xff]  ;;  %v779_v60 = vld [vmem:[#allocation7 + $0x350] sm:$0xff] }
 0x275   :  { %1522 = vmatprep.mubr.bf16.mxu0 %v5787_v53  ;;  %1686 = vmatprep.mubr.bf16.mxu1 %v5787_v53  ;;  %v1091_v8 = vunpack.c.l.s8.bf16 %v755_v63  ;;  %v1098_v9 = vunpack.c.h.s8.bf16 %v754_v3  ;;  %v1100_v10 = vunpack.c.h.s8.bf16 %v756_v43  ;;  %v1097_v12 = vunpack.c.h.s8.bf16 %v753_v6  ;;  %v786_v3 = vld [vmem:[#allocation7 + $0x388] sm:$0xff]  ;;  %v788_v43 = vld [vmem:[#allocation7 + $0x398] sm:$0xff]  ;;  %v785_v6 = vld [vmem:[#allocation7 + $0x380] sm:$0xff] }
 0x276   :  { %1492 = vmatprep.subr.bf16.mxu0 %v1066_v48  ;;  %1656 = vmatprep.subr.bf16.mxu1 %v1068_v49  ;;  %v1099_v14 = vunpack.c.h.s8.bf16 %v755_v63  ;;  %v1106_v15 = vunpack.c.l.s8.bf16 %v762_v11  ;;  %v1108_v16 = vunpack.c.l.s8.bf16 %v764_v59  ;;  %v1105_v27 = vunpack.c.l.s8.bf16 %v761_v19  ;;  %v769_v49 = vld [vmem:[#allocation7 + $0x300] sm:$0xff]  ;;  %v787_v63 = vld [vmem:[#allocation7 + $0x390] sm:$0xff] }
 0x277   :  { %v1107_v28 = vunpack.c.l.s8.bf16 %v763_v26  ;;  %v1114_v30 = vunpack.c.h.s8.bf16 %v762_v11  ;;  %v1116_v32 = vunpack.c.h.s8.bf16 %v764_v59  ;;  %v1113_v45 = vunpack.c.h.s8.bf16 %v761_v19  ;;  %v794_v11 = vld [vmem:[#allocation7 + $0x3c8] sm:$0xff]  ;;  %v796_v59 = vld [vmem:[#allocation7 + $0x3d8] sm:$0xff]  ;;  %v793_v19 = vld [vmem:[#allocation7 + $0x3c0] sm:$0xff] }
 0x278   :  { %1493 = vmatpush1.bf16.msra.mxu0 %v1065_v54  ;;  %1657 = vmatpush1.bf16.msra.mxu1 %v1067_v56  ;;  %v1115_v46 = vunpack.c.h.s8.bf16 %v763_v26  ;;  %v1122_v47 = vunpack.c.l.s8.bf16 %v770_v33  ;;  %v1124_v48 = vunpack.c.l.s8.bf16 %v772_v44  ;;  %v1121_v51 = vunpack.c.l.s8.bf16 %v769_v49  ;;  %v778_v54 = vld [vmem:[#allocation7 + $0x348] sm:$0xff]  ;;  %v780_v56 = vld [vmem:[#allocation7 + $0x358] sm:$0xff]  ;;  %v795_v26 = vld [vmem:[#allocation7 + $0x3d0] sm:$0xff] }
 0x279   :  { %1494 = vmatprep.subr.bf16.mxu0 %v1074_v20  ;;  %1658 = vmatprep.subr.bf16.mxu1 %v1076_v22  ;;  %v1123_v52 = vunpack.c.l.s8.bf16 %v771_v50  ;;  %v1130_v1 = vunpack.c.h.s8.bf16 %v770_v33  ;;  %v1132_v29 = vunpack.c.h.s8.bf16 %v772_v44  ;;  %v1129_v20 = vunpack.c.h.s8.bf16 %v769_v49  ;;  %v802_v44 = vld [vmem:[#allocation7 + $0x408] sm:$0xff] }
 0x27a   :  { %v1131_v22 = vunpack.c.h.s8.bf16 %v771_v50  ;;  %v1138_v57 = vunpack.c.l.s8.bf16 %v778_v54  ;;  %v1140_v41 = vunpack.c.l.s8.bf16 %v780_v56  ;;  %v659_v33 = vmul.f32 0.01, %v5763_v13 }
 0x27b   :  { %vm651_vm4 = vcmp.gt.f32.partialorder %v5763_v13, 0.0  ;;  %vm654_vm5 = vcmp.gt.f32.partialorder %v5765_v17, 0.0  ;;  %v1186_v49 = vunpack.c.l.s8.bf16 %v802_v44  ;;  %vm653_vm6 = vcmp.gt.f32.partialorder %v5767_v18, 0.0 }
 0x27c   :  { %1495 = vmatpush1.bf16.msra.mxu0 %v1073_v62  ;;  %1659 = vmatpush1.bf16.msra.mxu1 %v1075_v0  ;;  %v1137_v62 = vunpack.c.l.s8.bf16 %v777_v61  ;;  %v1139_v0 = vunpack.c.l.s8.bf16 %v779_v60  ;;  %vm656_vm7 = vcmp.gt.f32.partialorder %v5791_v58, 0.0  ;;  %vm655_vm8 = vcmp.gt.f32.partialorder %v5795_v2, 0.0 }
 0x27d   :  { %1496 = vmatprep.subr.bf16.mxu0 %v1082_v36  ;;  %1660 = vmatprep.subr.bf16.mxu1 %v1084_v31  ;;  %v1146_v36 = vunpack.c.h.s8.bf16 %v778_v54  ;;  %v1148_v31 = vunpack.c.h.s8.bf16 %v780_v56 }
 0x280   :  { %1497 = vmatpush1.bf16.msra.mxu0 %v1081_v4  ;;  %1661 = vmatpush1.bf16.msra.mxu1 %v1083_v5  ;;  %v1145_v4 = vunpack.c.h.s8.bf16 %v777_v61  ;;  %v1147_v5 = vunpack.c.h.s8.bf16 %v779_v60  ;;  %v810_v61 = vld [vmem:[#allocation7 + $0x448] sm:$0xff] }
 0x281   :  { %1498 = vmatprep.subr.bf16.mxu0 %v1090_v42  ;;  %1662 = vmatprep.subr.bf16.mxu1 %v1092_v38  ;;  %v1154_v42 = vunpack.c.l.s8.bf16 %v786_v3  ;;  %v1156_v38 = vunpack.c.l.s8.bf16 %v788_v43 }
 0x284   :  { %1499 = vmatpush1.bf16.msra.mxu0 %v1089_v7  ;;  %1663 = vmatpush1.bf16.msra.mxu1 %v1091_v8  ;;  %v1153_v7 = vunpack.c.l.s8.bf16 %v785_v6  ;;  %v1155_v8 = vunpack.c.l.s8.bf16 %v787_v63 }
 0x285   :  { %1500 = vmatprep.subr.bf16.mxu0 %v1098_v9  ;;  %1664 = vmatprep.subr.bf16.mxu1 %v1100_v10  ;;  %v1162_v9 = vunpack.c.h.s8.bf16 %v786_v3  ;;  %v1164_v10 = vunpack.c.h.s8.bf16 %v788_v43 }
 0x288   :  { %1501 = vmatpush1.bf16.msra.mxu0 %v1097_v12  ;;  %1665 = vmatpush1.bf16.msra.mxu1 %v1099_v14  ;;  %v1161_v12 = vunpack.c.h.s8.bf16 %v785_v6  ;;  %v1163_v14 = vunpack.c.h.s8.bf16 %v787_v63 }
 0x289   :  { %1502 = vmatprep.subr.bf16.mxu0 %v1106_v15  ;;  %1666 = vmatprep.subr.bf16.mxu1 %v1108_v16  ;;  %v1170_v15 = vunpack.c.l.s8.bf16 %v794_v11  ;;  %v1172_v16 = vunpack.c.l.s8.bf16 %v796_v59 }
 0x28c   :  { %1503 = vmatpush1.bf16.msra.mxu0 %v1105_v27  ;;  %1667 = vmatpush1.bf16.msra.mxu1 %v1107_v28  ;;  %v1169_v27 = vunpack.c.l.s8.bf16 %v793_v19  ;;  %v1171_v28 = vunpack.c.l.s8.bf16 %v795_v26 }
 0x28d   :  { %1504 = vmatprep.subr.bf16.mxu0 %v1114_v30  ;;  %1668 = vmatprep.subr.bf16.mxu1 %v1116_v32  ;;  %v1178_v30 = vunpack.c.h.s8.bf16 %v794_v11  ;;  %v1180_v32 = vunpack.c.h.s8.bf16 %v796_v59 }
 0x290   :  { %1505 = vmatpush1.bf16.msra.mxu0 %v1113_v45  ;;  %1669 = vmatpush1.bf16.msra.mxu1 %v1115_v46  ;;  %v804_v45 = vld [vmem:[#allocation7 + $0x418] sm:$0xff]  ;;  %v662_v46 = vmul.f32 0.01, %v5765_v17 }
 0x291   :  { %1506 = vmatprep.subr.bf16.mxu0 %v1122_v47  ;;  %1670 = vmatprep.subr.bf16.mxu1 %v1124_v48  ;;  %v1177_v47 = vunpack.c.h.s8.bf16 %v793_v19  ;;  %v1179_v48 = vunpack.c.h.s8.bf16 %v795_v26  ;;  %v1188_v50 = vunpack.c.l.s8.bf16 %v804_v45 }
 0x294   :  { %1507 = vmatpush1.bf16.msra.mxu0 %v1121_v51  ;;  %1671 = vmatpush1.bf16.msra.mxu1 %v1123_v52  ;;  %v801_v51 = vld [vmem:[#allocation7 + $0x400] sm:$0xff]  ;;  %v667_v52 = vsel %vm651_vm4, %v5763_v13, %v659_v33  ;;  %v812_v13 = vld [vmem:[#allocation7 + $0x458] sm:$0xff] }
 0x295   :  { %1508 = vmatprep.subr.bf16.mxu0 %v1130_v1  ;;  %1672 = vmatprep.subr.bf16.mxu1 %v1132_v29  ;;  %v803_v1 = vld [vmem:[#allocation7 + $0x410] sm:$0xff]  ;;  %v670_v29 = vsel %vm654_vm5, %v5765_v17, %v662_v46  ;;  %v1185_v54 = vunpack.c.l.s8.bf16 %v801_v51  ;;  %v5803_v56 = vpack.c.bf16 %v667_v52, %v667_v52  ;;  %v1193_v17 = vunpack.c.h.s8.bf16 %v801_v51  ;;  %v833_v52 = vld [vmem:[#allocation7 + $0x500] sm:$0xff] }
 0x296   :  { %v1195_v60 = vunpack.c.h.s8.bf16 %v803_v1 }
 0x298   :  { %1509 = vmatpush1.bf16.msra.mxu0 %v1129_v20  ;;  %1673 = vmatpush1.bf16.msra.mxu1 %v1131_v22  ;;  %v1187_v20 = vunpack.c.l.s8.bf16 %v803_v1  ;;  %v5805_v22 = vpack.c.bf16 %v670_v29, %v670_v29  ;;  %v835_v29 = vld [vmem:[#allocation7 + $0x510] sm:$0xff] }
 0x299   :  { %1510 = vmatprep.subr.bf16.mxu0 %v1138_v57  ;;  %1674 = vmatprep.subr.bf16.mxu1 %v1140_v41  ;;  %v1194_v57 = vunpack.c.h.s8.bf16 %v802_v44  ;;  %v1196_v41 = vunpack.c.h.s8.bf16 %v804_v45 }
 0x29c   :  { %1511 = vmatpush1.bf16.msra.mxu0 %v1137_v62  ;;  %1675 = vmatpush1.bf16.msra.mxu1 %v1139_v0  ;;  %v1202_v62 = vunpack.c.l.s8.bf16 %v810_v61  ;;  %v809_v0 = vld [vmem:[#allocation7 + $0x440] sm:$0xff] }
 0x29d   :  { %1512 = vmatprep.subr.bf16.mxu0 %v1146_v36  ;;  %1676 = vmatprep.subr.bf16.mxu1 %v1148_v31  ;;  %v1204_v36 = vunpack.c.l.s8.bf16 %v812_v13  ;;  %v811_v31 = vld [vmem:[#allocation7 + $0x450] sm:$0xff]  ;;  %v1201_v3 = vunpack.c.l.s8.bf16 %v809_v0  ;;  %v1209_v6 = vunpack.c.h.s8.bf16 %v809_v0  ;;  %v841_v0 = vld [vmem:[#allocation7 + $0x540] sm:$0xff] }
 0x29e   :  { %v1203_v43 = vunpack.c.l.s8.bf16 %v811_v31  ;;  %v1211_v63 = vunpack.c.h.s8.bf16 %v811_v31  ;;  %v843_v31 = vld [vmem:[#allocation7 + $0x550] sm:$0xff] }
 0x2a0   :  { %1513 = vmatpush1.bf16.msra.mxu0 %v1145_v4  ;;  %1677 = vmatpush1.bf16.msra.mxu1 %v1147_v5  ;;  %v1210_v4 = vunpack.c.h.s8.bf16 %v810_v61  ;;  %v1212_v5 = vunpack.c.h.s8.bf16 %v812_v13  ;;  %v842_v61 = vld [vmem:[#allocation7 + $0x548] sm:$0xff]  ;;  %v844_v13 = vld [vmem:[#allocation7 + $0x558] sm:$0xff] }
 0x2a1   :  { %1514 = vmatprep.subr.bf16.mxu0 %v1154_v42  ;;  %1678 = vmatprep.subr.bf16.mxu1 %v1156_v38  ;;  %v818_v42 = vld [vmem:[#allocation7 + $0x488] sm:$0xff]  ;;  %v820_v38 = vld [vmem:[#allocation7 + $0x498] sm:$0xff] }
 0x2a4   :  { %1515 = vmatpush1.bf16.msra.mxu0 %v1153_v7  ;;  %1679 = vmatpush1.bf16.msra.mxu1 %v1155_v8  ;;  %v1218_v7 = vunpack.c.l.s8.bf16 %v818_v42  ;;  %v817_v8 = vld [vmem:[#allocation7 + $0x480] sm:$0xff] }
 0x2a5   :  { %1516 = vmatprep.subr.bf16.mxu0 %v1162_v9  ;;  %1680 = vmatprep.subr.bf16.mxu1 %v1164_v10  ;;  %v1220_v9 = vunpack.c.l.s8.bf16 %v820_v38  ;;  %v819_v10 = vld [vmem:[#allocation7 + $0x490] sm:$0xff]  ;;  %v1217_v11 = vunpack.c.l.s8.bf16 %v817_v8  ;;  %v1225_v19 = vunpack.c.h.s8.bf16 %v817_v8  ;;  %v849_v8 = vld [vmem:[#allocation7 + $0x580] sm:$0xff] }
 0x2a6   :  { %v1219_v59 = vunpack.c.l.s8.bf16 %v819_v10  ;;  %v1227_v26 = vunpack.c.h.s8.bf16 %v819_v10  ;;  %v851_v10 = vld [vmem:[#allocation7 + $0x590] sm:$0xff] }
 0x2a8   :  { %1517 = vmatpush1.bf16.msra.mxu0 %v1161_v12  ;;  %1681 = vmatpush1.bf16.msra.mxu1 %v1163_v14  ;;  %v1226_v12 = vunpack.c.h.s8.bf16 %v818_v42  ;;  %v1228_v14 = vunpack.c.h.s8.bf16 %v820_v38  ;;  %v850_v42 = vld [vmem:[#allocation7 + $0x588] sm:$0xff]  ;;  %v852_v38 = vld [vmem:[#allocation7 + $0x598] sm:$0xff] }
 0x2a9   :  { %1518 = vmatprep.subr.bf16.mxu0 %v1170_v15  ;;  %1682 = vmatprep.subr.bf16.mxu1 %v1172_v16  ;;  %v826_v15 = vld [vmem:[#allocation7 + $0x4c8] sm:$0xff]  ;;  %v828_v16 = vld [vmem:[#allocation7 + $0x4d8] sm:$0xff] }
 0x2aa   :  { %v1242_v45 = vunpack.c.h.s8.bf16 %v826_v15  ;;  %v1244_v46 = vunpack.c.h.s8.bf16 %v828_v16 }
 0x2ac   :  { %1519 = vmatpush1.bf16.msra.mxu0 %v1169_v27  ;;  %1683 = vmatpush1.bf16.msra.mxu1 %v1171_v28  ;;  %v1234_v27 = vunpack.c.l.s8.bf16 %v826_v15  ;;  %v825_v28 = vld [vmem:[#allocation7 + $0x4c0] sm:$0xff]  ;;  %v858_v15 = vld [vmem:[#allocation7 + $0x5c8] sm:$0xff] }
 0x2ad   :  { %1520 = vmatprep.subr.bf16.mxu0 %v1178_v30  ;;  %1684 = vmatprep.subr.bf16.mxu1 %v1180_v32  ;;  %v1236_v30 = vunpack.c.l.s8.bf16 %v828_v16  ;;  %v827_v32 = vld [vmem:[#allocation7 + $0x4d0] sm:$0xff]  ;;  %v1233_v33 = vunpack.c.l.s8.bf16 %v825_v28  ;;  %v860_v16 = vld [vmem:[#allocation7 + $0x5d8] sm:$0xff] }
 0x2ae   :  { %v1235_v44 = vunpack.c.l.s8.bf16 %v827_v32 }
 0x2b0   :  { %1521 = vmatpush1.bf16.msra.mxu0 %v1177_v47  ;;  %1685 = vmatpush1.bf16.msra.mxu1 %v1179_v48  ;;  %v834_v47 = vld [vmem:[#allocation7 + $0x508] sm:$0xff]  ;;  %v836_v48 = vld [vmem:[#allocation7 + $0x518] sm:$0xff] }
 0x2b1   :  { %1531 = vmatprep.subr.bf16.mxu0 %v1186_v49  ;;  %1695 = vmatprep.subr.bf16.mxu1 %v1188_v50  ;;  %v1241_v49 = vunpack.c.h.s8.bf16 %v825_v28  ;;  %v1243_v50 = vunpack.c.h.s8.bf16 %v827_v32  ;;  %v1250_v51 = vunpack.c.l.s8.bf16 %v834_v47  ;;  %v1252_v1 = vunpack.c.l.s8.bf16 %v836_v48  ;;  %v857_v28 = vld [vmem:[#allocation7 + $0x5c0] sm:$0xff]  ;;  %v859_v32 = vld [vmem:[#allocation7 + $0x5d0] sm:$0xff] }
 0x2b3   :  { %1523 = vmatmul.mubr.bf16.vlgmr.msra.gmra.mrb[8].mxu0 %v5803_v56  ;;  %1687 = vmatmul.mubr.bf16.vlgmr.msra.gmra.mrb[8].mxu1 %v5803_v56 }
 0x2b4   :  { %1532 = vmatpush1.bf16.msra.mxu0 %v1185_v54  ;;  %1563 = vmatprep.mubr.bf16.mxu0 %v5805_v22  ;;  %v1249_v54 = vunpack.c.l.s8.bf16 %v833_v52 }
 0x2b5   :  { %1696 = vmatpush1.bf16.msra.mxu1 %v1187_v20  ;;  %1727 = vmatprep.mubr.bf16.mxu1 %v5805_v22  ;;  %v1251_v20 = vunpack.c.l.s8.bf16 %v835_v29 }
 0x2b6   :  { %1533 = vmatprep.subr.bf16.mxu0 %v1194_v57  ;;  %1697 = vmatprep.subr.bf16.mxu1 %v1196_v41  ;;  %v1258_v57 = vunpack.c.h.s8.bf16 %v834_v47  ;;  %v1260_v41 = vunpack.c.h.s8.bf16 %v836_v48  ;;  %v661_v47 = vmul.f32 0.01, %v5767_v18  ;;  %v866_v48 = vld [vmem:[#allocation7 + $0x608] sm:$0xff] }
 0x2b8   :  { %1534 = vmatpush1.bf16.msra.mxu0 %v1193_v17  ;;  %v1257_v17 = vunpack.c.h.s8.bf16 %v833_v52  ;;  %v1307_v52 = vunpack.c.h.s8.bf16 %v859_v32 }
 0x2b9   :  { %1698 = vmatpush1.bf16.msra.mxu1 %v1195_v60  ;;  %1535 = vmatprep.subr.bf16.mxu0 %v1202_v62  ;;  %v1259_v60 = vunpack.c.h.s8.bf16 %v835_v29  ;;  %v1266_v62 = vunpack.c.l.s8.bf16 %v842_v61  ;;  %v865_v29 = vld [vmem:[#allocation7 + $0x600] sm:$0xff] }
 0x2ba   :  { %1699 = vmatprep.subr.bf16.mxu1 %v1204_v36  ;;  %v1268_v36 = vunpack.c.l.s8.bf16 %v844_v13 }
 0x2bc   :  { %1536 = vmatpush1.bf16.msra.mxu0 %v1201_v3  ;;  %v1265_v3 = vunpack.c.l.s8.bf16 %v841_v0 }
 0x2bd   :  { %1700 = vmatpush1.bf16.msra.mxu1 %v1203_v43  ;;  %1537 = vmatprep.subr.bf16.mxu0 %v1210_v4  ;;  %v1267_v43 = vunpack.c.l.s8.bf16 %v843_v31  ;;  %v1274_v4 = vunpack.c.h.s8.bf16 %v842_v61 }
 0x2be   :  { %1701 = vmatprep.subr.bf16.mxu1 %v1212_v5  ;;  %v1276_v5 = vunpack.c.h.s8.bf16 %v844_v13 }
 0x2c0   :  { %1538 = vmatpush1.bf16.msra.mxu0 %v1209_v6  ;;  %v1273_v6 = vunpack.c.h.s8.bf16 %v841_v0 }
 0x2c1   :  { %1702 = vmatpush1.bf16.msra.mxu1 %v1211_v63  ;;  %1539 = vmatprep.subr.bf16.mxu0 %v1218_v7  ;;  %v1275_v63 = vunpack.c.h.s8.bf16 %v843_v31  ;;  %v1282_v7 = vunpack.c.l.s8.bf16 %v850_v42  ;;  %v1321_v31 = vunpack.c.h.s8.bf16 %v865_v29 }
 0x2c2   :  { %1703 = vmatprep.subr.bf16.mxu1 %v1220_v9  ;;  %v1284_v9 = vunpack.c.l.s8.bf16 %v852_v38 }
 0x2c4   :  { %1540 = vmatpush1.bf16.msra.mxu0 %v1217_v11  ;;  %v1281_v11 = vunpack.c.l.s8.bf16 %v849_v8 }
 0x2c5   :  { %1704 = vmatpush1.bf16.msra.mxu1 %v1219_v59  ;;  %1541 = vmatprep.subr.bf16.mxu0 %v1226_v12  ;;  %v1283_v59 = vunpack.c.l.s8.bf16 %v851_v10  ;;  %v1290_v12 = vunpack.c.h.s8.bf16 %v850_v42 }
 0x2c6   :  { %1705 = vmatprep.subr.bf16.mxu1 %v1228_v14  ;;  %v1292_v14 = vunpack.c.h.s8.bf16 %v852_v38 }
 0x2c8   :  { %1542 = vmatpush1.bf16.msra.mxu0 %v1225_v19  ;;  %v1289_v19 = vunpack.c.h.s8.bf16 %v849_v8  ;;  %v884_v8 = vld [vmem:[#allocation7 + $0x698] sm:$0xff] }
 0x2c9   :  { %1706 = vmatpush1.bf16.msra.mxu1 %v1227_v26  ;;  %1543 = vmatprep.subr.bf16.mxu0 %v1234_v27  ;;  %v1291_v26 = vunpack.c.h.s8.bf16 %v851_v10  ;;  %v1298_v27 = vunpack.c.l.s8.bf16 %v858_v15 }
 0x2ca   :  { %1707 = vmatprep.subr.bf16.mxu1 %v1236_v30  ;;  %v1300_v30 = vunpack.c.l.s8.bf16 %v860_v16 }
 0x2cc   :  { %1544 = vmatpush1.bf16.msra.mxu0 %v1233_v33  ;;  %v1297_v33 = vunpack.c.l.s8.bf16 %v857_v28 }
 0x2cd   :  { %1708 = vmatpush1.bf16.msra.mxu1 %v1235_v44  ;;  %1545 = vmatprep.subr.bf16.mxu0 %v1242_v45  ;;  %v1299_v44 = vunpack.c.l.s8.bf16 %v859_v32  ;;  %v1306_v45 = vunpack.c.h.s8.bf16 %v858_v15 }
 0x2ce   :  { %1709 = vmatprep.subr.bf16.mxu1 %v1244_v46  ;;  %v1308_v46 = vunpack.c.h.s8.bf16 %v860_v16 }
 0x2d0   :  { %1546 = vmatpush1.bf16.msra.mxu0 %v1241_v49  ;;  %v868_v49 = vld [vmem:[#allocation7 + $0x618] sm:$0xff] }
 0x2d1   :  { %1710 = vmatpush1.bf16.msra.mxu1 %v1243_v50  ;;  %1547 = vmatprep.subr.bf16.mxu0 %v1250_v51  ;;  %v1305_v50 = vunpack.c.h.s8.bf16 %v857_v28  ;;  %v664_v51 = vmul.f32 0.01, %v5791_v58  ;;  %v892_v28 = vld [vmem:[#allocation7 + $0x6d8] sm:$0xff] }
 0x2d2   :  { %1711 = vmatprep.subr.bf16.mxu1 %v1252_v1  ;;  %v1314_v1 = vunpack.c.l.s8.bf16 %v866_v48 }
 0x2d3   :  { %v672_v61 = vsel %vm656_vm7, %v5791_v58, %v664_v51  ;;  %v898_v51 = vld [vmem:[#allocation7 + $0x708] sm:$0xff] }
 0x2d4   :  { %1548 = vmatpush1.bf16.msra.mxu0 %v1249_v54  ;;  %v669_v54 = vsel %vm653_vm6, %v5767_v18, %v661_v47  ;;  %v5820_v0 = vpack.c.bf16 %v672_v61, %v672_v61  ;;  %v876_v18 = vld [vmem:[#allocation7 + $0x658] sm:$0xff] }
 0x2d5   :  { %1712 = vmatpush1.bf16.msra.mxu1 %v1251_v20  ;;  %1549 = vmatprep.subr.bf16.mxu0 %v1258_v57  ;;  %v1316_v20 = vunpack.c.l.s8.bf16 %v868_v49  ;;  %v867_v57 = vld [vmem:[#allocation7 + $0x610] sm:$0xff]  ;;  %v5817_v13 = vpack.c.bf16 %v669_v54, %v669_v54  ;;  %v1378_v54 = vunpack.c.l.s8.bf16 %v898_v51 }
 0x2d6   :  { %1713 = vmatprep.subr.bf16.mxu1 %v1260_v41  ;;  %v1313_v41 = vunpack.c.l.s8.bf16 %v865_v29  ;;  %v1323_v58 = vunpack.c.h.s8.bf16 %v867_v57 }
 0x2d8   :  { %1550 = vmatpush1.bf16.msra.mxu0 %v1257_v17  ;;  %v1315_v17 = vunpack.c.l.s8.bf16 %v867_v57 }
 0x2d9   :  { %1714 = vmatpush1.bf16.msra.mxu1 %v1259_v60  ;;  %1551 = vmatprep.subr.bf16.mxu0 %v1266_v62  ;;  %v1322_v60 = vunpack.c.h.s8.bf16 %v866_v48  ;;  %v874_v62 = vld [vmem:[#allocation7 + $0x648] sm:$0xff] }
 0x2da   :  { %1715 = vmatprep.subr.bf16.mxu1 %v1268_v36  ;;  %v1324_v36 = vunpack.c.h.s8.bf16 %v868_v49 }
 0x2dc   :  { %1552 = vmatpush1.bf16.msra.mxu0 %v1265_v3  ;;  %v1330_v3 = vunpack.c.l.s8.bf16 %v874_v62 }
 0x2dd   :  { %1716 = vmatpush1.bf16.msra.mxu1 %v1267_v43  ;;  %1553 = vmatprep.subr.bf16.mxu0 %v1274_v4  ;;  %v873_v43 = vld [vmem:[#allocation7 + $0x640] sm:$0xff]  ;;  %v1332_v4 = vunpack.c.l.s8.bf16 %v876_v18 }
 0x2de   :  { %1717 = vmatprep.subr.bf16.mxu1 %v1276_v5  ;;  %v875_v5 = vld [vmem:[#allocation7 + $0x650] sm:$0xff]  ;;  %v1329_v42 = vunpack.c.l.s8.bf16 %v873_v43 }
 0x2df   :  { %v1331_v38 = vunpack.c.l.s8.bf16 %v875_v5  ;;  %v1339_v10 = vunpack.c.h.s8.bf16 %v875_v5  ;;  %v907_v5 = vld [vmem:[#allocation7 + $0x750] sm:$0xff] }
 0x2e0   :  { %1554 = vmatpush1.bf16.msra.mxu0 %v1273_v6  ;;  %v1338_v6 = vunpack.c.h.s8.bf16 %v874_v62 }
 0x2e1   :  { %1718 = vmatpush1.bf16.msra.mxu1 %v1275_v63  ;;  %1555 = vmatprep.subr.bf16.mxu0 %v1282_v7  ;;  %v1340_v63 = vunpack.c.h.s8.bf16 %v876_v18  ;;  %v882_v7 = vld [vmem:[#allocation7 + $0x688] sm:$0xff]  ;;  %v908_v18 = vld [vmem:[#allocation7 + $0x758] sm:$0xff] }
 0x2e2   :  { %1719 = vmatprep.subr.bf16.mxu1 %v1284_v9  ;;  %v1337_v9 = vunpack.c.h.s8.bf16 %v873_v43  ;;  %v905_v43 = vld [vmem:[#allocation7 + $0x740] sm:$0xff] }
 0x2e4   :  { %1556 = vmatpush1.bf16.msra.mxu0 %v1281_v11  ;;  %v1346_v11 = vunpack.c.l.s8.bf16 %v882_v7 }
 0x2e5   :  { %1720 = vmatpush1.bf16.msra.mxu1 %v1283_v59  ;;  %1557 = vmatprep.subr.bf16.mxu0 %v1290_v12  ;;  %v881_v59 = vld [vmem:[#allocation7 + $0x680] sm:$0xff]  ;;  %v1348_v12 = vunpack.c.l.s8.bf16 %v884_v8 }
 0x2e6   :  { %1721 = vmatprep.subr.bf16.mxu1 %v1292_v14  ;;  %v883_v14 = vld [vmem:[#allocation7 + $0x690] sm:$0xff]  ;;  %v1345_v15 = vunpack.c.l.s8.bf16 %v881_v59 }
 0x2e7   :  { %v1347_v16 = vunpack.c.l.s8.bf16 %v883_v14  ;;  %v1355_v32 = vunpack.c.h.s8.bf16 %v883_v14  ;;  %v915_v14 = vld [vmem:[#allocation7 + $0x790] sm:$0xff] }
 0x2e8   :  { %1558 = vmatpush1.bf16.msra.mxu0 %v1289_v19  ;;  %v1354_v19 = vunpack.c.h.s8.bf16 %v882_v7  ;;  %v914_v7 = vld [vmem:[#allocation7 + $0x788] sm:$0xff] }
 0x2e9   :  { %1722 = vmatpush1.bf16.msra.mxu1 %v1291_v26  ;;  %1559 = vmatprep.subr.bf16.mxu0 %v1298_v27  ;;  %v1356_v26 = vunpack.c.h.s8.bf16 %v884_v8  ;;  %v890_v27 = vld [vmem:[#allocation7 + $0x6c8] sm:$0xff]  ;;  %v916_v8 = vld [vmem:[#allocation7 + $0x798] sm:$0xff] }
 0x2ea   :  { %1723 = vmatprep.subr.bf16.mxu1 %v1300_v30  ;;  %v1353_v30 = vunpack.c.h.s8.bf16 %v881_v59  ;;  %v1370_v49 = vunpack.c.h.s8.bf16 %v890_v27  ;;  %v913_v59 = vld [vmem:[#allocation7 + $0x780] sm:$0xff] }
 0x2ec   :  { %1560 = vmatpush1.bf16.msra.mxu0 %v1297_v33  ;;  %v1362_v33 = vunpack.c.l.s8.bf16 %v890_v27  ;;  %v922_v27 = vld [vmem:[#allocation7 + $0x7c8] sm:$0xff] }
 0x2ed   :  { %1724 = vmatpush1.bf16.msra.mxu1 %v1299_v44  ;;  %1561 = vmatprep.subr.bf16.mxu0 %v1306_v45  ;;  %v889_v44 = vld [vmem:[#allocation7 + $0x6c0] sm:$0xff]  ;;  %v1364_v45 = vunpack.c.l.s8.bf16 %v892_v28 }
 0x2ee   :  { %1725 = vmatprep.subr.bf16.mxu1 %v1308_v46  ;;  %v891_v46 = vld [vmem:[#allocation7 + $0x6d0] sm:$0xff]  ;;  %v1361_v47 = vunpack.c.l.s8.bf16 %v889_v44 }
 0x2ef   :  { %v1363_v48 = vunpack.c.l.s8.bf16 %v891_v46  ;;  %v1371_v29 = vunpack.c.h.s8.bf16 %v891_v46  ;;  %v923_v46 = vld [vmem:[#allocation7 + $0x7d0] sm:$0xff] }
 0x2f0   :  { %1562 = vmatpush1.bf16.msra.mxu0 %v1305_v50  ;;  %v1372_v50 = vunpack.c.h.s8.bf16 %v892_v28  ;;  %v924_v28 = vld [vmem:[#allocation7 + $0x7d8] sm:$0xff] }
 0x2f1   :  { %1726 = vmatpush1.bf16.msra.mxu1 %v1307_v52  ;;  %1572 = vmatprep.subr.bf16.mxu0 %v1314_v1  ;;  %v900_v52 = vld [vmem:[#allocation7 + $0x718] sm:$0xff]  ;;  %v1369_v1 = vunpack.c.h.s8.bf16 %v889_v44  ;;  %v921_v44 = vld [vmem:[#allocation7 + $0x7c0] sm:$0xff] }
 0x2f2   :  { %1736 = vmatprep.subr.bf16.mxu1 %v1316_v20  ;;  %v897_v20 = vld [vmem:[#allocation7 + $0x700] sm:$0xff]  ;;  %v1380_v57 = vunpack.c.l.s8.bf16 %v900_v52  ;;  %v1388_v62 = vunpack.c.h.s8.bf16 %v900_v52  ;;  %v678_v52 = vld [vmem:[#allocation7 + $0x28] sm:$0xff] }
 0x2f3   :  { %1564 = vmatmul.mubr.bf16.vlgmr.msra.gmra.mrb[8].mxu0 %v5817_v13  ;;  %v1377_v61 = vunpack.c.l.s8.bf16 %v897_v20 }
 0x2f4   :  { %1728 = vmatmul.mubr.bf16.vlgmr.msra.gmra.mrb[8].mxu1 %v5817_v13  ;;  %1573 = vmatpush1.bf16.msra.mxu0 %v1313_v41  ;;  %v899_v41 = vld [vmem:[#allocation7 + $0x710] sm:$0xff] }
 0x2f5   :  { %1604 = vmatprep.mubr.bf16.mxu0 %v5820_v0  ;;  %1737 = vmatpush1.bf16.msra.mxu1 %v1315_v17  ;;  %v1379_v17 = vunpack.c.l.s8.bf16 %v899_v41 }
 0x2f6   :  { %1768 = vmatprep.mubr.bf16.mxu1 %v5820_v0  ;;  %1574 = vmatprep.subr.bf16.mxu0 %v1322_v60  ;;  %v1386_v60 = vunpack.c.h.s8.bf16 %v898_v51  ;;  %v663_v51 = vmul.f32 0.01, %v5795_v2 }
 0x2f7   :  { %1738 = vmatprep.subr.bf16.mxu1 %v1324_v36  ;;  %v906_v36 = vld [vmem:[#allocation7 + $0x748] sm:$0xff] }
 0x2f8   :  { %1575 = vmatpush1.bf16.msra.mxu0 %v1321_v31  ;;  %v1385_v31 = vunpack.c.h.s8.bf16 %v897_v20  ;;  %v934_v20 = vunpack.c.l.s8.bf16 %v678_v52 }
 0x2f9   :  { %1739 = vmatpush1.bf16.msra.mxu1 %v1323_v58  ;;  %1576 = vmatprep.subr.bf16.mxu0 %v1330_v3  ;;  %v1387_v58 = vunpack.c.h.s8.bf16 %v899_v41  ;;  %v1394_v3 = vunpack.c.l.s8.bf16 %v906_v36  ;;  %v671_v41 = vsel %vm655_vm8, %v5795_v2, %v663_v51 }
 0x2fa   :  { %1740 = vmatprep.subr.bf16.mxu1 %v1332_v4  ;;  %v1396_v4 = vunpack.c.l.s8.bf16 %v908_v18 }
 0x2fc   :  { %1577 = vmatpush1.bf16.msra.mxu0 %v1329_v42  ;;  %v1393_v42 = vunpack.c.l.s8.bf16 %v905_v43 }
 0x2fd   :  { %1741 = vmatpush1.bf16.msra.mxu1 %v1331_v38  ;;  %1578 = vmatprep.subr.bf16.mxu0 %v1338_v6  ;;  %v1395_v38 = vunpack.c.l.s8.bf16 %v907_v5  ;;  %v1402_v6 = vunpack.c.h.s8.bf16 %v906_v36 }
 0x2fe   :  { %1742 = vmatprep.subr.bf16.mxu1 %v1340_v63  ;;  %v1404_v63 = vunpack.c.h.s8.bf16 %v908_v18  ;;  %v942_v18 = vunpack.c.h.s8.bf16 %v678_v52  ;;  %v710_v52 = vld [vmem:[#allocation7 + $0x128] sm:$0xff] }
 0x300   :  { %1579 = vmatpush1.bf16.msra.mxu0 %v1337_v9  ;;  %v1401_v9 = vunpack.c.h.s8.bf16 %v905_v43 }
 0x301   :  { %1743 = vmatpush1.bf16.msra.mxu1 %v1339_v10  ;;  %1580 = vmatprep.subr.bf16.mxu0 %v1346_v11  ;;  %v1403_v10 = vunpack.c.h.s8.bf16 %v907_v5  ;;  %v1410_v11 = vunpack.c.l.s8.bf16 %v914_v7  ;;  %v685_v5 = vld [vmem:[#allocation7 + $0x60] sm:$0xff] }
 0x302   :  { %1744 = vmatprep.subr.bf16.mxu1 %v1348_v12  ;;  %v1412_v12 = vunpack.c.l.s8.bf16 %v916_v8 }
 0x304   :  { %1581 = vmatpush1.bf16.msra.mxu0 %v1345_v15  ;;  %v1409_v15 = vunpack.c.l.s8.bf16 %v913_v59 }
 0x305   :  { %1745 = vmatpush1.bf16.msra.mxu1 %v1347_v16  ;;  %1582 = vmatprep.subr.bf16.mxu0 %v1354_v19  ;;  %v1411_v16 = vunpack.c.l.s8.bf16 %v915_v14  ;;  %v1418_v19 = vunpack.c.h.s8.bf16 %v914_v7 }
 0x306   :  { %1746 = vmatprep.subr.bf16.mxu1 %v1356_v26  ;;  %v1420_v26 = vunpack.c.h.s8.bf16 %v916_v8 }
 0x308   :  { %1583 = vmatpush1.bf16.msra.mxu0 %v1353_v30  ;;  %v1417_v30 = vunpack.c.h.s8.bf16 %v913_v59 }
 0x309   :  { %1747 = vmatpush1.bf16.msra.mxu1 %v1355_v32  ;;  %1584 = vmatprep.subr.bf16.mxu0 %v1362_v33  ;;  %v1419_v32 = vunpack.c.h.s8.bf16 %v915_v14  ;;  %v1426_v33 = vunpack.c.l.s8.bf16 %v922_v27 }
 0x30a   :  { %1748 = vmatprep.subr.bf16.mxu1 %v1364_v45  ;;  %v1428_v45 = vunpack.c.l.s8.bf16 %v924_v28 }
 0x30c   :  { %1585 = vmatpush1.bf16.msra.mxu0 %v1361_v47  ;;  %v1425_v47 = vunpack.c.l.s8.bf16 %v921_v44 }
 0x30d   :  { %1749 = vmatpush1.bf16.msra.mxu1 %v1363_v48  ;;  %1586 = vmatprep.subr.bf16.mxu0 %v1370_v49  ;;  %v1427_v48 = vunpack.c.l.s8.bf16 %v923_v46  ;;  %v1434_v49 = vunpack.c.h.s8.bf16 %v922_v27 }
 0x30e   :  { %1750 = vmatprep.subr.bf16.mxu1 %v1372_v50  ;;  %v1436_v50 = vunpack.c.h.s8.bf16 %v924_v28  ;;  %v702_v28 = vld [vmem:[#allocation7 + $0xe8] sm:$0xff] }
 0x310   :  { %1587 = vmatpush1.bf16.msra.mxu0 %v1369_v1  ;;  %v680_v1 = vld [vmem:[#allocation7 + $0x38] sm:$0xff] }
 0x311   :  { %1751 = vmatpush1.bf16.msra.mxu1 %v1371_v29  ;;  %1588 = vmatprep.subr.bf16.mxu0 %v1378_v54  ;;  %v1433_v29 = vunpack.c.h.s8.bf16 %v921_v44  ;;  %v1435_v54 = vunpack.c.h.s8.bf16 %v923_v46  ;;  %v982_v44 = vunpack.c.l.s8.bf16 %v702_v28 }
 0x312   :  { %1752 = vmatprep.subr.bf16.mxu1 %v1380_v57  ;;  %v677_v57 = vld [vmem:[#allocation7 + $0x20] sm:$0xff] }
 0x313   :  { %v941_v2 = vunpack.c.h.s8.bf16 %v677_v57 }
 0x314   :  { %1589 = vmatpush1.bf16.msra.mxu0 %v1377_v61  ;;  %v936_v61 = vunpack.c.l.s8.bf16 %v680_v1 }
 0x315   :  { %1753 = vmatpush1.bf16.msra.mxu1 %v1379_v17  ;;  %1590 = vmatprep.subr.bf16.mxu0 %v1386_v60  ;;  %v679_v17 = vld [vmem:[#allocation7 + $0x30] sm:$0xff]  ;;  %v933_v60 = vunpack.c.l.s8.bf16 %v677_v57  ;;  %v709_v57 = vld [vmem:[#allocation7 + $0x120] sm:$0xff] }
 0x316   :  { %1754 = vmatprep.subr.bf16.mxu1 %v1388_v62  ;;  %v5828_v62 = vpack.c.bf16 %v671_v41, %v671_v41  ;;  %v935_v36 = vunpack.c.l.s8.bf16 %v679_v17  ;;  %v943_v43 = vunpack.c.h.s8.bf16 %v679_v17  ;;  %v997_v17 = vunpack.c.l.s8.bf16 %v709_v57 }
 0x318   :  { %1591 = vmatpush1.bf16.msra.mxu0 %v1385_v31  ;;  %v686_v31 = vld [vmem:[#allocation7 + $0x68] sm:$0xff] }
 0x319   :  { %1755 = vmatpush1.bf16.msra.mxu1 %v1387_v58  ;;  %1592 = vmatprep.subr.bf16.mxu0 %v1394_v3  ;;  %v944_v58 = vunpack.c.h.s8.bf16 %v680_v1  ;;  %v688_v3 = vld [vmem:[#allocation7 + $0x78] sm:$0xff]  ;;  %v958_v7 = vunpack.c.h.s8.bf16 %v686_v31 }
 0x31a   :  { %1756 = vmatprep.subr.bf16.mxu1 %v1396_v4  ;;  %v950_v4 = vunpack.c.l.s8.bf16 %v686_v31  ;;  %v960_v8 = vunpack.c.h.s8.bf16 %v688_v3  ;;  %v712_v1 = vld [vmem:[#allocation7 + $0x138] sm:$0xff]  ;;  %v718_v31 = vld [vmem:[#allocation7 + $0x168] sm:$0xff] }
 0x31b   :  { %v1000_v41 = vunpack.c.l.s8.bf16 %v712_v1 }
 0x31c   :  { %1593 = vmatpush1.bf16.msra.mxu0 %v1393_v42  ;;  %v952_v42 = vunpack.c.l.s8.bf16 %v688_v3  ;;  %v1005_v3 = vunpack.c.h.s8.bf16 %v709_v57 }
 0x31d   :  { %1757 = vmatpush1.bf16.msra.mxu1 %v1395_v38  ;;  %1594 = vmatprep.subr.bf16.mxu0 %v1402_v6  ;;  %v687_v38 = vld [vmem:[#allocation7 + $0x70] sm:$0xff]  ;;  %v949_v6 = vunpack.c.l.s8.bf16 %v685_v5 }
 0x31e   :  { %1758 = vmatprep.subr.bf16.mxu1 %v1404_v63  ;;  %v951_v63 = vunpack.c.l.s8.bf16 %v687_v38  ;;  %v959_v59 = vunpack.c.h.s8.bf16 %v687_v38 }
 0x320   :  { %1595 = vmatpush1.bf16.msra.mxu0 %v1401_v9  ;;  %v694_v9 = vld [vmem:[#allocation7 + $0xa8] sm:$0xff] }
 0x321   :  { %1759 = vmatpush1.bf16.msra.mxu1 %v1403_v10  ;;  %1596 = vmatprep.subr.bf16.mxu0 %v1410_v11  ;;  %v696_v10 = vld [vmem:[#allocation7 + $0xb8] sm:$0xff]  ;;  %v957_v11 = vunpack.c.h.s8.bf16 %v685_v5 }
 0x322   :  { %1760 = vmatprep.subr.bf16.mxu1 %v1412_v12  ;;  %v693_v12 = vld [vmem:[#allocation7 + $0xa0] sm:$0xff]  ;;  %v968_v14 = vunpack.c.l.s8.bf16 %v696_v10  ;;  %v976_v27 = vunpack.c.h.s8.bf16 %v696_v10 }
 0x324   :  { %1597 = vmatpush1.bf16.msra.mxu0 %v1409_v15  ;;  %v695_v15 = vld [vmem:[#allocation7 + $0xb0] sm:$0xff] }
 0x325   :  { %1761 = vmatpush1.bf16.msra.mxu1 %v1411_v16  ;;  %1598 = vmatprep.subr.bf16.mxu0 %v1418_v19  ;;  %v965_v16 = vunpack.c.l.s8.bf16 %v693_v12  ;;  %v967_v19 = vunpack.c.l.s8.bf16 %v695_v15 }
 0x326   :  { %1762 = vmatprep.subr.bf16.mxu1 %v1420_v26  ;;  %v974_v26 = vunpack.c.h.s8.bf16 %v694_v9 }
 0x328   :  { %1599 = vmatpush1.bf16.msra.mxu0 %v1417_v30  ;;  %v704_v30 = vld [vmem:[#allocation7 + $0xf8] sm:$0xff] }
 0x329   :  { %1763 = vmatpush1.bf16.msra.mxu1 %v1419_v32  ;;  %1600 = vmatprep.subr.bf16.mxu0 %v1426_v33  ;;  %v973_v32 = vunpack.c.h.s8.bf16 %v693_v12  ;;  %v975_v33 = vunpack.c.h.s8.bf16 %v695_v15  ;;  %v984_v46 = vunpack.c.l.s8.bf16 %v704_v30  ;;  %v992_v51 = vunpack.c.h.s8.bf16 %v704_v30 }
 0x32a   :  { %1764 = vmatprep.subr.bf16.mxu1 %v1428_v45  ;;  %v701_v45 = vld [vmem:[#allocation7 + $0xe0] sm:$0xff] }
 0x32c   :  { %1601 = vmatpush1.bf16.msra.mxu0 %v1425_v47  ;;  %v703_v47 = vld [vmem:[#allocation7 + $0xf0] sm:$0xff] }
 0x32d   :  { %1765 = vmatpush1.bf16.msra.mxu1 %v1427_v48  ;;  %1602 = vmatprep.subr.bf16.mxu0 %v1434_v49  ;;  %v981_v48 = vunpack.c.l.s8.bf16 %v701_v45  ;;  %v983_v49 = vunpack.c.l.s8.bf16 %v703_v47 }
 0x32e   :  { %1766 = vmatprep.subr.bf16.mxu1 %v1436_v50  ;;  %v990_v50 = vunpack.c.h.s8.bf16 %v702_v28  ;;  %v736_v28 = vld [vmem:[#allocation7 + $0x1f8] sm:$0xff] }
 0x330   :  { %1603 = vmatpush1.bf16.msra.mxu0 %v1433_v29  ;;  %v989_v29 = vunpack.c.h.s8.bf16 %v701_v45  ;;  %v1048_v45 = vunpack.c.l.s8.bf16 %v736_v28 }
 0x331   :  { %1767 = vmatpush1.bf16.msra.mxu1 %v1435_v54  ;;  %1777 = vmatprep.subr.bf16.mxu0 %v934_v20  ;;  %v991_v54 = vunpack.c.h.s8.bf16 %v703_v47  ;;  %v998_v20 = vunpack.c.l.s8.bf16 %v710_v52 }
 0x332   :  { %1941 = vmatprep.subr.bf16.mxu1 %v936_v61  ;;  %v711_v61 = vld [vmem:[#allocation7 + $0x130] sm:$0xff] }
 0x333   :  { %1605 = vmatmul.mubr.bf16.vlgmr.msra.gmra.mrb[8].mxu0 %v5828_v62 }
 0x334   :  { %1769 = vmatmul.mubr.bf16.vlgmr.msra.gmra.mrb[8].mxu1 %v5828_v62  ;;  %1778 = vmatpush1.bf16.msra.mxu0 %v933_v60  ;;  %v999_v60 = vunpack.c.l.s8.bf16 %v711_v61 }
 0x335   :  { %1809 = vmatprep.mubr.bf16.mxu0 %v5771_v37  ;;  %1942 = vmatpush1.bf16.msra.mxu1 %v935_v36  ;;  %v1006_v36 = vunpack.c.h.s8.bf16 %v710_v52  ;;  %v744_v52 = vld [vmem:[#allocation7 + $0x238] sm:$0xff] }
 0x336   :  { %1973 = vmatprep.mubr.bf16.mxu1 %v5771_v37  ;;  %1779 = vmatprep.subr.bf16.mxu0 %v942_v18  ;;  %v966_v37 = vunpack.c.l.s8.bf16 %v694_v9  ;;  %v1008_v18 = vunpack.c.h.s8.bf16 %v712_v1  ;;  %v728_v9 = vld [vmem:[#allocation7 + $0x1b8] sm:$0xff]  ;;  %v1064_v57 = vunpack.c.l.s8.bf16 %v744_v52 }
 0x337   :  { %1943 = vmatprep.subr.bf16.mxu1 %v944_v58  ;;  %v720_v58 = vld [vmem:[#allocation7 + $0x178] sm:$0xff]  ;;  %v1032_v12 = vunpack.c.l.s8.bf16 %v728_v9 }
 0x338   :  { %1780 = vmatpush1.bf16.msra.mxu0 %v941_v2  ;;  %v1007_v2 = vunpack.c.h.s8.bf16 %v711_v61  ;;  %v1016_v5 = vunpack.c.l.s8.bf16 %v720_v58 }
 0x339   :  { %1944 = vmatpush1.bf16.msra.mxu1 %v943_v43  ;;  %1781 = vmatprep.subr.bf16.mxu0 %v950_v4  ;;  %v1014_v43 = vunpack.c.l.s8.bf16 %v718_v31  ;;  %v717_v4 = vld [vmem:[#allocation7 + $0x160] sm:$0xff] }
 0x33a   :  { %1945 = vmatprep.subr.bf16.mxu1 %v952_v42  ;;  %v719_v42 = vld [vmem:[#allocation7 + $0x170] sm:$0xff]  ;;  %v1013_v38 = vunpack.c.l.s8.bf16 %v717_v4  ;;  %v1021_v10 = vunpack.c.h.s8.bf16 %v717_v4 }
 0x33c   :  { %1782 = vmatpush1.bf16.msra.mxu0 %v949_v6  ;;  %v1015_v6 = vunpack.c.l.s8.bf16 %v719_v42 }
 0x33d   :  { %1946 = vmatpush1.bf16.msra.mxu1 %v951_v63  ;;  %1783 = vmatprep.subr.bf16.mxu0 %v958_v7  ;;  %v1022_v63 = vunpack.c.h.s8.bf16 %v718_v31  ;;  %v1024_v7 = vunpack.c.h.s8.bf16 %v720_v58  ;;  %v752_v31 = vld [vmem:[#allocation7 + $0x278] sm:$0xff] }
 0x33e   :  { %1947 = vmatprep.subr.bf16.mxu1 %v960_v8  ;;  %v726_v8 = vld [vmem:[#allocation7 + $0x1a8] sm:$0xff]  ;;  %v1080_v4 = vunpack.c.l.s8.bf16 %v752_v31 }
 0x340   :  { %1784 = vmatpush1.bf16.msra.mxu0 %v957_v11  ;;  %v1023_v11 = vunpack.c.h.s8.bf16 %v719_v42 }
 0x341   :  { %1948 = vmatpush1.bf16.msra.mxu1 %v959_v59  ;;  %1785 = vmatprep.subr.bf16.mxu0 %v966_v37  ;;  %v1030_v59 = vunpack.c.l.s8.bf16 %v726_v8  ;;  %v725_v37 = vld [vmem:[#allocation7 + $0x1a0] sm:$0xff] }
 0x342   :  { %1949 = vmatprep.subr.bf16.mxu1 %v968_v14  ;;  %v727_v14 = vld [vmem:[#allocation7 + $0x1b0] sm:$0xff]  ;;  %v1029_v15 = vunpack.c.l.s8.bf16 %v725_v37  ;;  %v1037_v30 = vunpack.c.h.s8.bf16 %v725_v37 }
 0x344   :  { %1786 = vmatpush1.bf16.msra.mxu0 %v965_v16  ;;  %v1031_v16 = vunpack.c.l.s8.bf16 %v727_v14 }
 0x345   :  { %1950 = vmatpush1.bf16.msra.mxu1 %v967_v19  ;;  %1787 = vmatprep.subr.bf16.mxu0 %v974_v26  ;;  %v1038_v19 = vunpack.c.h.s8.bf16 %v726_v8  ;;  %v1040_v26 = vunpack.c.h.s8.bf16 %v728_v9 }
 0x346   :  { %1951 = vmatprep.subr.bf16.mxu1 %v976_v27  ;;  %v734_v27 = vld [vmem:[#allocation7 + $0x1e8] sm:$0xff] }
 0x348   :  { %1788 = vmatpush1.bf16.msra.mxu0 %v973_v32  ;;  %v1039_v32 = vunpack.c.h.s8.bf16 %v727_v14 }
 0x349   :  { %1952 = vmatpush1.bf16.msra.mxu1 %v975_v33  ;;  %1789 = vmatprep.subr.bf16.mxu0 %v982_v44  ;;  %v1046_v33 = vunpack.c.l.s8.bf16 %v734_v27  ;;  %v733_v44 = vld [vmem:[#allocation7 + $0x1e0] sm:$0xff] }
 0x34a   :  { %1953 = vmatprep.subr.bf16.mxu1 %v984_v46  ;;  %v735_v46 = vld [vmem:[#allocation7 + $0x1f0] sm:$0xff]  ;;  %v1045_v47 = vunpack.c.l.s8.bf16 %v733_v44  ;;  %v1053_v1 = vunpack.c.h.s8.bf16 %v733_v44 }
 0x34c   :  { %1790 = vmatpush1.bf16.msra.mxu0 %v981_v48  ;;  %v1047_v48 = vunpack.c.l.s8.bf16 %v735_v46 }
 0x34d   :  { %1954 = vmatpush1.bf16.msra.mxu1 %v983_v49  ;;  %1791 = vmatprep.subr.bf16.mxu0 %v990_v50  ;;  %v1054_v49 = vunpack.c.h.s8.bf16 %v734_v27  ;;  %v1056_v50 = vunpack.c.h.s8.bf16 %v736_v28 }
 0x34e   :  { %1955 = vmatprep.subr.bf16.mxu1 %v992_v51  ;;  %v742_v51 = vld [vmem:[#allocation7 + $0x228] sm:$0xff] }
 0x350   :  { %1792 = vmatpush1.bf16.msra.mxu0 %v989_v29  ;;  %v1055_v29 = vunpack.c.h.s8.bf16 %v735_v46 }
 0x351   :  { %1956 = vmatpush1.bf16.msra.mxu1 %v991_v54  ;;  %1793 = vmatprep.subr.bf16.mxu0 %v998_v20  ;;  %v1062_v54 = vunpack.c.l.s8.bf16 %v742_v51  ;;  %v741_v20 = vld [vmem:[#allocation7 + $0x220] sm:$0xff] }
 0x352   :  { %1957 = vmatprep.subr.bf16.mxu1 %v1000_v41  ;;  %v743_v41 = vld [vmem:[#allocation7 + $0x230] sm:$0xff]  ;;  %v1061_v61 = vunpack.c.l.s8.bf16 %v741_v20  ;;  %v1069_v58 = vunpack.c.h.s8.bf16 %v741_v20 }
 0x354   :  { %1794 = vmatpush1.bf16.msra.mxu0 %v997_v17  ;;  %v1063_v17 = vunpack.c.l.s8.bf16 %v743_v41 }
 0x355   :  { %1958 = vmatpush1.bf16.msra.mxu1 %v999_v60  ;;  %1795 = vmatprep.subr.bf16.mxu0 %v1006_v36  ;;  %v1070_v60 = vunpack.c.h.s8.bf16 %v742_v51  ;;  %v750_v36 = vld [vmem:[#allocation7 + $0x268] sm:$0xff] }
 0x356   :  { %1959 = vmatprep.subr.bf16.mxu1 %v1008_v18  ;;  %v1072_v18 = vunpack.c.h.s8.bf16 %v744_v52 }
 0x358   :  { %1796 = vmatpush1.bf16.msra.mxu0 %v1005_v3  ;;  %v1071_v3 = vunpack.c.h.s8.bf16 %v743_v41 }
 0x359   :  { %1960 = vmatpush1.bf16.msra.mxu1 %v1007_v2  ;;  %1797 = vmatprep.subr.bf16.mxu0 %v1014_v43  ;;  %v1078_v2 = vunpack.c.l.s8.bf16 %v750_v36  ;;  %v749_v43 = vld [vmem:[#allocation7 + $0x260] sm:$0xff] }
 0x35a   :  { %1961 = vmatprep.subr.bf16.mxu1 %v1016_v5  ;;  %v751_v5 = vld [vmem:[#allocation7 + $0x270] sm:$0xff]  ;;  %v1077_v42 = vunpack.c.l.s8.bf16 %v749_v43  ;;  %v1085_v8 = vunpack.c.h.s8.bf16 %v749_v43 }
 0x35b   :  { %v1087_v9 = vunpack.c.h.s8.bf16 %v751_v5 }
 0x35c   :  { %1798 = vmatpush1.bf16.msra.mxu0 %v1013_v38  ;;  %v1079_v38 = vunpack.c.l.s8.bf16 %v751_v5 }
 0x35d   :  { %1962 = vmatpush1.bf16.msra.mxu1 %v1015_v6  ;;  %1799 = vmatprep.subr.bf16.mxu0 %v1022_v63  ;;  %v1088_v6 = vunpack.c.h.s8.bf16 %v752_v31  ;;  %v758_v63 = vld [vmem:[#allocation7 + $0x2a8] sm:$0xff] }
 0x35e   :  { %1963 = vmatprep.subr.bf16.mxu1 %v1024_v7  ;;  %v760_v7 = vld [vmem:[#allocation7 + $0x2b8] sm:$0xff]  ;;  %v1102_v14 = vunpack.c.h.s8.bf16 %v758_v63 }
 0x360   :  { %1800 = vmatpush1.bf16.msra.mxu0 %v1021_v10  ;;  %v757_v10 = vld [vmem:[#allocation7 + $0x2a0] sm:$0xff] }
 0x361   :  { %1964 = vmatpush1.bf16.msra.mxu1 %v1023_v11  ;;  %1801 = vmatprep.subr.bf16.mxu0 %v1030_v59  ;;  %v1096_v11 = vunpack.c.l.s8.bf16 %v760_v7  ;;  %v759_v59 = vld [vmem:[#allocation7 + $0x2b0] sm:$0xff]  ;;  %v1093_v37 = vunpack.c.l.s8.bf16 %v757_v10 }
 0x362   :  { %1965 = vmatprep.subr.bf16.mxu1 %v1032_v12  ;;  %v1095_v12 = vunpack.c.l.s8.bf16 %v759_v59  ;;  %v1103_v27 = vunpack.c.h.s8.bf16 %v759_v59 }
 0x364   :  { %1802 = vmatpush1.bf16.msra.mxu0 %v1029_v15  ;;  %v1104_v15 = vunpack.c.h.s8.bf16 %v760_v7 }
 0x365   :  { %1966 = vmatpush1.bf16.msra.mxu1 %v1031_v16  ;;  %1803 = vmatprep.subr.bf16.mxu0 %v1038_v19  ;;  %v766_v16 = vld [vmem:[#allocation7 + $0x2e8] sm:$0xff]  ;;  %v768_v19 = vld [vmem:[#allocation7 + $0x2f8] sm:$0xff] }
 0x366   :  { %1967 = vmatprep.subr.bf16.mxu1 %v1040_v26  ;;  %v1101_v26 = vunpack.c.h.s8.bf16 %v757_v10  ;;  %v1110_v28 = vunpack.c.l.s8.bf16 %v766_v16  ;;  %v1118_v46 = vunpack.c.h.s8.bf16 %v766_v16 }
 0x368   :  { %1804 = vmatpush1.bf16.msra.mxu0 %v1037_v30  ;;  %v765_v30 = vld [vmem:[#allocation7 + $0x2e0] sm:$0xff] }
 0x369   :  { %1968 = vmatpush1.bf16.msra.mxu1 %v1039_v32  ;;  %1805 = vmatprep.subr.bf16.mxu0 %v1046_v33  ;;  %v1112_v32 = vunpack.c.l.s8.bf16 %v768_v19  ;;  %v767_v33 = vld [vmem:[#allocation7 + $0x2f0] sm:$0xff]  ;;  %v1109_v44 = vunpack.c.l.s8.bf16 %v765_v30 }
 0x36a   :  { %1969 = vmatprep.subr.bf16.mxu1 %v1048_v45  ;;  %v1111_v45 = vunpack.c.l.s8.bf16 %v767_v33  ;;  %v1119_v51 = vunpack.c.h.s8.bf16 %v767_v33 }
 0x36c   :  { %1806 = vmatpush1.bf16.msra.mxu0 %v1045_v47  ;;  %v1120_v47 = vunpack.c.h.s8.bf16 %v768_v19 }
 0x36d   :  { %1970 = vmatpush1.bf16.msra.mxu1 %v1047_v48  ;;  %1807 = vmatprep.subr.bf16.mxu0 %v1054_v49  ;;  %v774_v48 = vld [vmem:[#allocation7 + $0x328] sm:$0xff]  ;;  %v776_v49 = vld [vmem:[#allocation7 + $0x338] sm:$0xff] }
 0x36e   :  { %1971 = vmatprep.subr.bf16.mxu1 %v1056_v50  ;;  %v1117_v50 = vunpack.c.h.s8.bf16 %v765_v30  ;;  %v1126_v52 = vunpack.c.l.s8.bf16 %v774_v48  ;;  %v1134_v41 = vunpack.c.h.s8.bf16 %v774_v48 }
 0x370   :  { %1808 = vmatpush1.bf16.msra.mxu0 %v1053_v1  ;;  %v773_v1 = vld [vmem:[#allocation7 + $0x320] sm:$0xff] }
 0x371   :  { %1972 = vmatpush1.bf16.msra.mxu1 %v1055_v29  ;;  %1818 = vmatprep.subr.bf16.mxu0 %v1062_v54  ;;  %v1128_v29 = vunpack.c.l.s8.bf16 %v776_v49  ;;  %v775_v54 = vld [vmem:[#allocation7 + $0x330] sm:$0xff]  ;;  %v1125_v20 = vunpack.c.l.s8.bf16 %v773_v1 }
 0x372   :  { %1982 = vmatprep.subr.bf16.mxu1 %v1064_v57  ;;  %v1127_v57 = vunpack.c.l.s8.bf16 %v775_v54 }
 0x373   :  { %1810 = vmatmul.mubr.bf16.vlgmr.msra.gmra.mrb[12].mxu0 %v5773_v39 }
 0x374   :  { %1974 = vmatmul.mubr.bf16.vlgmr.msra.gmra.mrb[12].mxu1 %v5773_v39  ;;  %1819 = vmatpush1.bf16.msra.mxu0 %v1061_v61  ;;  %v1086_v39 = vunpack.c.h.s8.bf16 %v750_v36  ;;  %v1136_v61 = vunpack.c.h.s8.bf16 %v776_v49  ;;  %v1133_v36 = vunpack.c.h.s8.bf16 %v773_v1 }
 0x375   :  { %1850 = vmatprep.mubr.bf16.mxu0 %v5787_v53  ;;  %1983 = vmatpush1.bf16.msra.mxu1 %v1063_v17  ;;  %v782_v17 = vld [vmem:[#allocation7 + $0x368] sm:$0xff] }
 0x376   :  { %2014 = vmatprep.mubr.bf16.mxu1 %v5787_v53  ;;  %1820 = vmatprep.subr.bf16.mxu0 %v1070_v60  ;;  %v1094_v53 = vunpack.c.l.s8.bf16 %v758_v63  ;;  %v784_v60 = vld [vmem:[#allocation7 + $0x378] sm:$0xff]  ;;  %v1142_v31 = vunpack.c.l.s8.bf16 %v782_v17  ;;  %v1150_v5 = vunpack.c.h.s8.bf16 %v782_v17 }
 0x377   :  { %1984 = vmatprep.subr.bf16.mxu1 %v1072_v18  ;;  %v1135_v18 = vunpack.c.h.s8.bf16 %v775_v54 }
 0x378   :  { %1821 = vmatpush1.bf16.msra.mxu0 %v1069_v58  ;;  %v781_v58 = vld [vmem:[#allocation7 + $0x360] sm:$0xff] }
 0x379   :  { %1985 = vmatpush1.bf16.msra.mxu1 %v1071_v3  ;;  %1822 = vmatprep.subr.bf16.mxu0 %v1078_v2  ;;  %v1144_v3 = vunpack.c.l.s8.bf16 %v784_v60  ;;  %v783_v2 = vld [vmem:[#allocation7 + $0x370] sm:$0xff]  ;;  %v1141_v43 = vunpack.c.l.s8.bf16 %v781_v58 }
 0x37a   :  { %1986 = vmatprep.subr.bf16.mxu1 %v1080_v4  ;;  %v1143_v4 = vunpack.c.l.s8.bf16 %v783_v2  ;;  %v1151_v63 = vunpack.c.h.s8.bf16 %v783_v2 }
 0x37c   :  { %1823 = vmatpush1.bf16.msra.mxu0 %v1077_v42  ;;  %v1152_v42 = vunpack.c.h.s8.bf16 %v784_v60 }
 0x37d   :  { %1987 = vmatpush1.bf16.msra.mxu1 %v1079_v38  ;;  %1824 = vmatprep.subr.bf16.mxu0 %v1086_v39  ;;  %v790_v38 = vld [vmem:[#allocation7 + $0x3a8] sm:$0xff]  ;;  %v792_v39 = vld [vmem:[#allocation7 + $0x3b8] sm:$0xff] }
 0x37e   :  { %1988 = vmatprep.subr.bf16.mxu1 %v1088_v6  ;;  %v1149_v6 = vunpack.c.h.s8.bf16 %v781_v58  ;;  %v1158_v7 = vunpack.c.l.s8.bf16 %v790_v38  ;;  %v1166_v59 = vunpack.c.h.s8.bf16 %v790_v38  ;;  %v821_v38 = vld [vmem:[#allocation7 + $0x4a0] sm:$0xff] }
 0x380   :  { %1825 = vmatpush1.bf16.msra.mxu0 %v1085_v8  ;;  %v789_v8 = vld [vmem:[#allocation7 + $0x3a0] sm:$0xff] }
 0x381   :  { %1989 = vmatpush1.bf16.msra.mxu1 %v1087_v9  ;;  %1826 = vmatprep.subr.bf16.mxu0 %v1094_v53  ;;  %v1160_v9 = vunpack.c.l.s8.bf16 %v792_v39  ;;  %v791_v53 = vld [vmem:[#allocation7 + $0x3b0] sm:$0xff]  ;;  %v1157_v10 = vunpack.c.l.s8.bf16 %v789_v8 }
 0x382   :  { %1990 = vmatprep.subr.bf16.mxu1 %v1096_v11  ;;  %v1159_v11 = vunpack.c.l.s8.bf16 %v791_v53  ;;  %v1167_v16 = vunpack.c.h.s8.bf16 %v791_v53  ;;  %v830_v53 = vld [vmem:[#allocation7 + $0x4e8] sm:$0xff] }
 0x384   :  { %1827 = vmatpush1.bf16.msra.mxu0 %v1093_v37  ;;  %v1168_v37 = vunpack.c.h.s8.bf16 %v792_v39 }
 0x385   :  { %1991 = vmatpush1.bf16.msra.mxu1 %v1095_v12  ;;  %1828 = vmatprep.subr.bf16.mxu0 %v1102_v14  ;;  %v798_v12 = vld [vmem:[#allocation7 + $0x3e8] sm:$0xff]  ;;  %v800_v14 = vld [vmem:[#allocation7 + $0x3f8] sm:$0xff] }
 0x386   :  { %1992 = vmatprep.subr.bf16.mxu1 %v1104_v15  ;;  %v1165_v15 = vunpack.c.h.s8.bf16 %v789_v8  ;;  %v1174_v19 = vunpack.c.l.s8.bf16 %v798_v12  ;;  %v1182_v33 = vunpack.c.h.s8.bf16 %v798_v12  ;;  %v829_v12 = vld [vmem:[#allocation7 + $0x4e0] sm:$0xff] }
 0x388   :  { %1829 = vmatpush1.bf16.msra.mxu0 %v1101_v26  ;;  %v797_v26 = vld [vmem:[#allocation7 + $0x3e0] sm:$0xff] }
 0x389   :  { %1993 = vmatpush1.bf16.msra.mxu1 %v1103_v27  ;;  %1830 = vmatprep.subr.bf16.mxu0 %v1110_v28  ;;  %v1176_v27 = vunpack.c.l.s8.bf16 %v800_v14  ;;  %v799_v28 = vld [vmem:[#allocation7 + $0x3f0] sm:$0xff]  ;;  %v1173_v30 = vunpack.c.l.s8.bf16 %v797_v26 }
 0x38a   :  { %1994 = vmatprep.subr.bf16.mxu1 %v1112_v32  ;;  %v1175_v32 = vunpack.c.l.s8.bf16 %v799_v28  ;;  %v1183_v48 = vunpack.c.h.s8.bf16 %v799_v28  ;;  %v838_v28 = vld [vmem:[#allocation7 + $0x528] sm:$0xff] }
 0x38c   :  { %1831 = vmatpush1.bf16.msra.mxu0 %v1109_v44  ;;  %v1184_v44 = vunpack.c.h.s8.bf16 %v800_v14 }
 0x38d   :  { %1995 = vmatpush1.bf16.msra.mxu1 %v1111_v45  ;;  %1832 = vmatprep.subr.bf16.mxu0 %v1118_v46  ;;  %v806_v45 = vld [vmem:[#allocation7 + $0x428] sm:$0xff]  ;;  %v808_v46 = vld [vmem:[#allocation7 + $0x438] sm:$0xff] }
 0x38e   :  { %1996 = vmatprep.subr.bf16.mxu1 %v1120_v47  ;;  %v1181_v47 = vunpack.c.h.s8.bf16 %v797_v26  ;;  %v1190_v49 = vunpack.c.l.s8.bf16 %v806_v45  ;;  %v1198_v54 = vunpack.c.h.s8.bf16 %v806_v45  ;;  %v1246_v26 = vunpack.c.h.s8.bf16 %v830_v53  ;;  %v837_v45 = vld [vmem:[#allocation7 + $0x520] sm:$0xff] }
 0x390   :  { %1833 = vmatpush1.bf16.msra.mxu0 %v1117_v50  ;;  %v805_v50 = vld [vmem:[#allocation7 + $0x420] sm:$0xff] }
 0x391   :  { %1997 = vmatpush1.bf16.msra.mxu1 %v1119_v51  ;;  %1834 = vmatprep.subr.bf16.mxu0 %v1126_v52  ;;  %v1192_v51 = vunpack.c.l.s8.bf16 %v808_v46  ;;  %v807_v52 = vld [vmem:[#allocation7 + $0x430] sm:$0xff]  ;;  %v1189_v1 = vunpack.c.l.s8.bf16 %v805_v50 }
 0x392   :  { %1998 = vmatprep.subr.bf16.mxu1 %v1128_v29  ;;  %v1191_v29 = vunpack.c.l.s8.bf16 %v807_v52  ;;  %v1199_v17 = vunpack.c.h.s8.bf16 %v807_v52  ;;  %v846_v52 = vld [vmem:[#allocation7 + $0x568] sm:$0xff] }
 0x394   :  { %1835 = vmatpush1.bf16.msra.mxu0 %v1125_v20  ;;  %v814_v20 = vld [vmem:[#allocation7 + $0x468] sm:$0xff] }
 0x395   :  { %1999 = vmatpush1.bf16.msra.mxu1 %v1127_v57  ;;  %1836 = vmatprep.subr.bf16.mxu0 %v1134_v41  ;;  %v1200_v57 = vunpack.c.h.s8.bf16 %v808_v46  ;;  %v816_v41 = vld [vmem:[#allocation7 + $0x478] sm:$0xff]  ;;  %v1206_v60 = vunpack.c.l.s8.bf16 %v814_v20 }
 0x396   :  { %2000 = vmatprep.subr.bf16.mxu1 %v1136_v61  ;;  %v1197_v61 = vunpack.c.h.s8.bf16 %v805_v50  ;;  %v1216_v2 = vunpack.c.h.s8.bf16 %v816_v41  ;;  %v1262_v50 = vunpack.c.h.s8.bf16 %v838_v28 }
 0x398   :  { %1837 = vmatpush1.bf16.msra.mxu0 %v1133_v36  ;;  %v813_v36 = vld [vmem:[#allocation7 + $0x460] sm:$0xff] }
 0x399   :  { %2001 = vmatpush1.bf16.msra.mxu1 %v1135_v18  ;;  %1838 = vmatprep.subr.bf16.mxu0 %v1142_v31  ;;  %v1208_v18 = vunpack.c.l.s8.bf16 %v816_v41  ;;  %v815_v31 = vld [vmem:[#allocation7 + $0x470] sm:$0xff]  ;;  %v1205_v58 = vunpack.c.l.s8.bf16 %v813_v36 }
 0x39a   :  { %2002 = vmatprep.subr.bf16.mxu1 %v1144_v3  ;;  %v1207_v3 = vunpack.c.l.s8.bf16 %v815_v31 }
 0x39c   :  { %1839 = vmatpush1.bf16.msra.mxu0 %v1141_v43  ;;  %v822_v43 = vld [vmem:[#allocation7 + $0x4a8] sm:$0xff] }
 0x39d   :  { %2003 = vmatpush1.bf16.msra.mxu1 %v1143_v4  ;;  %1840 = vmatprep.subr.bf16.mxu0 %v1150_v5  ;;  %v824_v4 = vld [vmem:[#allocation7 + $0x4b8] sm:$0xff]  ;;  %v1213_v5 = vunpack.c.h.s8.bf16 %v813_v36  ;;  %v1230_v8 = vunpack.c.h.s8.bf16 %v822_v43  ;;  %v1278_v36 = vunpack.c.h.s8.bf16 %v846_v52 }
 0x39e   :  { %2004 = vmatprep.subr.bf16.mxu1 %v1152_v42  ;;  %v1215_v42 = vunpack.c.h.s8.bf16 %v815_v31  ;;  %v1224_v39 = vunpack.c.l.s8.bf16 %v824_v4  ;;  %v854_v31 = vld [vmem:[#allocation7 + $0x5a8] sm:$0xff] }
 0x3a0   :  { %1841 = vmatpush1.bf16.msra.mxu0 %v1149_v6  ;;  %v823_v6 = vld [vmem:[#allocation7 + $0x4b0] sm:$0xff] }
 0x3a1   :  { %2005 = vmatpush1.bf16.msra.mxu1 %v1151_v63  ;;  %1842 = vmatprep.subr.bf16.mxu0 %v1158_v7  ;;  %v1221_v63 = vunpack.c.l.s8.bf16 %v821_v38  ;;  %v1223_v7 = vunpack.c.l.s8.bf16 %v823_v6 }
 0x3a2   :  { %2006 = vmatprep.subr.bf16.mxu1 %v1160_v9  ;;  %v1232_v9 = vunpack.c.h.s8.bf16 %v824_v4 }
 0x3a4   :  { %1843 = vmatpush1.bf16.msra.mxu0 %v1157_v10  ;;  %v832_v10 = vld [vmem:[#allocation7 + $0x4f8] sm:$0xff] }
 0x3a5   :  { %2007 = vmatpush1.bf16.msra.mxu1 %v1159_v11  ;;  %1844 = vmatprep.subr.bf16.mxu0 %v1166_v59  ;;  %v1229_v11 = vunpack.c.h.s8.bf16 %v821_v38  ;;  %v1231_v59 = vunpack.c.h.s8.bf16 %v823_v6  ;;  %v1240_v14 = vunpack.c.l.s8.bf16 %v832_v10  ;;  %v1294_v38 = vunpack.c.h.s8.bf16 %v854_v31  ;;  %v862_v6 = vld [vmem:[#allocation7 + $0x5e8] sm:$0xff] }
 0x3a6   :  { %2008 = vmatprep.subr.bf16.mxu1 %v1168_v37  ;;  %v1238_v37 = vunpack.c.l.s8.bf16 %v830_v53  ;;  %v861_v53 = vld [vmem:[#allocation7 + $0x5e0] sm:$0xff] }
 0x3a8   :  { %1845 = vmatpush1.bf16.msra.mxu0 %v1165_v15  ;;  %v831_v15 = vld [vmem:[#allocation7 + $0x4f0] sm:$0xff] }
 0x3a9   :  { %2009 = vmatpush1.bf16.msra.mxu1 %v1167_v16  ;;  %1846 = vmatprep.subr.bf16.mxu0 %v1174_v19  ;;  %v1237_v16 = vunpack.c.l.s8.bf16 %v829_v12  ;;  %v1239_v19 = vunpack.c.l.s8.bf16 %v831_v15 }
 0x3aa   :  { %2010 = vmatprep.subr.bf16.mxu1 %v1176_v27  ;;  %v1248_v27 = vunpack.c.h.s8.bf16 %v832_v10 }
 0x3ac   :  { %1847 = vmatpush1.bf16.msra.mxu0 %v1173_v30  ;;  %v840_v30 = vld [vmem:[#allocation7 + $0x538] sm:$0xff] }
 0x3ad   :  { %2011 = vmatpush1.bf16.msra.mxu1 %v1175_v32  ;;  %1848 = vmatprep.subr.bf16.mxu0 %v1182_v33  ;;  %v1245_v32 = vunpack.c.h.s8.bf16 %v829_v12  ;;  %v1247_v33 = vunpack.c.h.s8.bf16 %v831_v15  ;;  %v1256_v46 = vunpack.c.l.s8.bf16 %v840_v30  ;;  %v1310_v12 = vunpack.c.h.s8.bf16 %v862_v6  ;;  %v870_v15 = vld [vmem:[#allocation7 + $0x628] sm:$0xff] }
 0x3ae   :  { %2012 = vmatprep.subr.bf16.mxu1 %v1184_v44  ;;  %v1254_v44 = vunpack.c.l.s8.bf16 %v838_v28  ;;  %v869_v28 = vld [vmem:[#allocation7 + $0x620] sm:$0xff] }
 0x3b0   :  { %1849 = vmatpush1.bf16.msra.mxu0 %v1181_v47  ;;  %v839_v47 = vld [vmem:[#allocation7 + $0x530] sm:$0xff] }
 0x3b1   :  { %2013 = vmatpush1.bf16.msra.mxu1 %v1183_v48  ;;  %1859 = vmatprep.subr.bf16.mxu0 %v1190_v49  ;;  %v1253_v48 = vunpack.c.l.s8.bf16 %v837_v45  ;;  %v1255_v49 = vunpack.c.l.s8.bf16 %v839_v47 }
 0x3b2   :  { %2023 = vmatprep.subr.bf16.mxu1 %v1192_v51  ;;  %v1264_v51 = vunpack.c.h.s8.bf16 %v840_v30 }
 0x3b3   :  { %1851 = vmatmul.mubr.bf16.vlgmr.msra.gmra.mrb[12].mxu0 %v5803_v56 }
 0x3b4   :  { %2015 = vmatmul.mubr.bf16.vlgmr.msra.gmra.mrb[12].mxu1 %v5803_v56  ;;  %1860 = vmatpush1.bf16.msra.mxu0 %v1189_v1  ;;  %v1214_v56 = vunpack.c.h.s8.bf16 %v814_v20  ;;  %v848_v1 = vld [vmem:[#allocation7 + $0x578] sm:$0xff]  ;;  %v1270_v20 = vunpack.c.l.s8.bf16 %v846_v52  ;;  %v877_v52 = vld [vmem:[#allocation7 + $0x660] sm:$0xff] }
 0x3b5   :  { %1891 = vmatprep.mubr.bf16.mxu0 %v5805_v22  ;;  %2024 = vmatpush1.bf16.msra.mxu1 %v1191_v29  ;;  %v1261_v29 = vunpack.c.h.s8.bf16 %v837_v45  ;;  %v1272_v41 = vunpack.c.l.s8.bf16 %v848_v1  ;;  %v1326_v45 = vunpack.c.h.s8.bf16 %v870_v15 }
 0x3b6   :  { %2055 = vmatprep.mubr.bf16.mxu1 %v5805_v22  ;;  %1861 = vmatprep.subr.bf16.mxu0 %v1198_v54  ;;  %v1222_v22 = vunpack.c.l.s8.bf16 %v822_v43  ;;  %v1263_v54 = vunpack.c.h.s8.bf16 %v839_v47  ;;  %v853_v43 = vld [vmem:[#allocation7 + $0x5a0] sm:$0xff] }
 0x3b7   :  { %2025 = vmatprep.subr.bf16.mxu1 %v1200_v57  ;;  %v845_v57 = vld [vmem:[#allocation7 + $0x560] sm:$0xff] }
 0x3b8   :  { %1862 = vmatpush1.bf16.msra.mxu0 %v1197_v61  ;;  %v847_v61 = vld [vmem:[#allocation7 + $0x570] sm:$0xff] }
 0x3b9   :  { %2026 = vmatpush1.bf16.msra.mxu1 %v1199_v17  ;;  %1863 = vmatprep.subr.bf16.mxu0 %v1206_v60  ;;  %v1269_v17 = vunpack.c.l.s8.bf16 %v845_v57  ;;  %v1271_v60 = vunpack.c.l.s8.bf16 %v847_v61 }
 0x3ba   :  { %2027 = vmatprep.subr.bf16.mxu1 %v1208_v18  ;;  %v1280_v18 = vunpack.c.h.s8.bf16 %v848_v1 }
 0x3bc   :  { %1864 = vmatpush1.bf16.msra.mxu0 %v1205_v58  ;;  %v856_v58 = vld [vmem:[#allocation7 + $0x5b8] sm:$0xff] }
 0x3bd   :  { %2028 = vmatpush1.bf16.msra.mxu1 %v1207_v3  ;;  %1865 = vmatprep.subr.bf16.mxu0 %v1214_v56  ;;  %v1277_v3 = vunpack.c.h.s8.bf16 %v845_v57  ;;  %v1279_v56 = vunpack.c.h.s8.bf16 %v847_v61  ;;  %v1288_v4 = vunpack.c.l.s8.bf16 %v856_v58  ;;  %v888_v61 = vld [vmem:[#allocation7 + $0x6b8] sm:$0xff] }
 0x3be   :  { %2029 = vmatprep.subr.bf16.mxu1 %v1216_v2  ;;  %v1286_v2 = vunpack.c.l.s8.bf16 %v854_v31  ;;  %v887_v31 = vld [vmem:[#allocation7 + $0x6b0] sm:$0xff] }
 0x3c0   :  { %1866 = vmatpush1.bf16.msra.mxu0 %v1213_v5  ;;  %v855_v5 = vld [vmem:[#allocation7 + $0x5b0] sm:$0xff] }
 0x3c1   :  { %2030 = vmatpush1.bf16.msra.mxu1 %v1215_v42  ;;  %1867 = vmatprep.subr.bf16.mxu0 %v1222_v22  ;;  %v1285_v42 = vunpack.c.l.s8.bf16 %v853_v43  ;;  %v1287_v22 = vunpack.c.l.s8.bf16 %v855_v5 }
 0x3c2   :  { %2031 = vmatprep.subr.bf16.mxu1 %v1224_v39  ;;  %v1296_v39 = vunpack.c.h.s8.bf16 %v856_v58 }
 0x3c4   :  { %1868 = vmatpush1.bf16.msra.mxu0 %v1221_v63  ;;  %v864_v63 = vld [vmem:[#allocation7 + $0x5f8] sm:$0xff] }
 0x3c5   :  { %2032 = vmatpush1.bf16.msra.mxu1 %v1223_v7  ;;  %1869 = vmatprep.subr.bf16.mxu0 %v1230_v8  ;;  %v1293_v7 = vunpack.c.h.s8.bf16 %v853_v43  ;;  %v1295_v8 = vunpack.c.h.s8.bf16 %v855_v5  ;;  %v1304_v10 = vunpack.c.l.s8.bf16 %v864_v63  ;;  %v894_v43 = vld [vmem:[#allocation7 + $0x6e8] sm:$0xff] }
 0x3c6   :  { %2033 = vmatprep.subr.bf16.mxu1 %v1232_v9  ;;  %v1302_v9 = vunpack.c.l.s8.bf16 %v862_v6 }
 0x3c8   :  { %1870 = vmatpush1.bf16.msra.mxu0 %v1229_v11  ;;  %v863_v11 = vld [vmem:[#allocation7 + $0x5f0] sm:$0xff] }
 0x3c9   :  { %2034 = vmatpush1.bf16.msra.mxu1 %v1231_v59  ;;  %1871 = vmatprep.subr.bf16.mxu0 %v1238_v37  ;;  %v1301_v59 = vunpack.c.l.s8.bf16 %v861_v53  ;;  %v1303_v37 = vunpack.c.l.s8.bf16 %v863_v11 }
 0x3ca   :  { %2035 = vmatprep.subr.bf16.mxu1 %v1240_v14  ;;  %v1312_v14 = vunpack.c.h.s8.bf16 %v864_v63  ;;  %v895_v63 = vld [vmem:[#allocation7 + $0x6f0] sm:$0xff] }
 0x3cc   :  { %1872 = vmatpush1.bf16.msra.mxu0 %v1237_v16  ;;  %v872_v16 = vld [vmem:[#allocation7 + $0x638] sm:$0xff] }
 0x3cd   :  { %2036 = vmatpush1.bf16.msra.mxu1 %v1239_v19  ;;  %1873 = vmatprep.subr.bf16.mxu0 %v1246_v26  ;;  %v1309_v19 = vunpack.c.h.s8.bf16 %v861_v53  ;;  %v1311_v26 = vunpack.c.h.s8.bf16 %v863_v11  ;;  %v1320_v30 = vunpack.c.l.s8.bf16 %v872_v16  ;;  %v1328_v47 = vunpack.c.h.s8.bf16 %v872_v16  ;;  %v902_v16 = vld [vmem:[#allocation7 + $0x728] sm:$0xff] }
 0x3ce   :  { %2037 = vmatprep.subr.bf16.mxu1 %v1248_v27  ;;  %v1318_v27 = vunpack.c.l.s8.bf16 %v870_v15 }
 0x3d0   :  { %1874 = vmatpush1.bf16.msra.mxu0 %v1245_v32  ;;  %v871_v32 = vld [vmem:[#allocation7 + $0x630] sm:$0xff] }
 0x3d1   :  { %2038 = vmatpush1.bf16.msra.mxu1 %v1247_v33  ;;  %1875 = vmatprep.subr.bf16.mxu0 %v1254_v44  ;;  %v1317_v33 = vunpack.c.l.s8.bf16 %v869_v28  ;;  %v1319_v44 = vunpack.c.l.s8.bf16 %v871_v32 }
 0x3d2   :  { %2039 = vmatprep.subr.bf16.mxu1 %v1256_v46  ;;  %v878_v46 = vld [vmem:[#allocation7 + $0x668] sm:$0xff] }
 0x3d4   :  { %1876 = vmatpush1.bf16.msra.mxu0 %v1253_v48  ;;  %v880_v48 = vld [vmem:[#allocation7 + $0x678] sm:$0xff] }
 0x3d5   :  { %2040 = vmatpush1.bf16.msra.mxu1 %v1255_v49  ;;  %1877 = vmatprep.subr.bf16.mxu0 %v1262_v50  ;;  %v1325_v49 = vunpack.c.h.s8.bf16 %v869_v28  ;;  %v1327_v50 = vunpack.c.h.s8.bf16 %v871_v32  ;;  %v1336_v1 = vunpack.c.l.s8.bf16 %v880_v48  ;;  %v1344_v57 = vunpack.c.h.s8.bf16 %v880_v48  ;;  %v910_v48 = vld [vmem:[#allocation7 + $0x768] sm:$0xff] }
 0x3d6   :  { %2041 = vmatprep.subr.bf16.mxu1 %v1264_v51  ;;  %v1334_v51 = vunpack.c.l.s8.bf16 %v878_v46  ;;  %v1382_v28 = vunpack.c.l.s8.bf16 %v902_v16 }
 0x3d8   :  { %1878 = vmatpush1.bf16.msra.mxu0 %v1261_v29  ;;  %v879_v29 = vld [vmem:[#allocation7 + $0x670] sm:$0xff] }
 0x3d9   :  { %2042 = vmatpush1.bf16.msra.mxu1 %v1263_v54  ;;  %1879 = vmatprep.subr.bf16.mxu0 %v1270_v20  ;;  %v1333_v54 = vunpack.c.l.s8.bf16 %v877_v52  ;;  %v1335_v20 = vunpack.c.l.s8.bf16 %v879_v29 }
 0x3da   :  { %2043 = vmatprep.subr.bf16.mxu1 %v1272_v41  ;;  %v886_v41 = vld [vmem:[#allocation7 + $0x6a8] sm:$0xff] }
 0x3dc   :  { %1880 = vmatpush1.bf16.msra.mxu0 %v1269_v17  ;;  %v1341_v17 = vunpack.c.h.s8.bf16 %v877_v52  ;;  %v1398_v52 = vunpack.c.l.s8.bf16 %v910_v48 }
 0x3dd   :  { %2044 = vmatpush1.bf16.msra.mxu1 %v1271_v60  ;;  %1881 = vmatprep.subr.bf16.mxu0 %v1278_v36  ;;  %v1343_v60 = vunpack.c.h.s8.bf16 %v879_v29  ;;  %v885_v36 = vld [vmem:[#allocation7 + $0x6a0] sm:$0xff] }
 0x3de   :  { %2045 = vmatprep.subr.bf16.mxu1 %v1280_v18  ;;  %v1352_v18 = vunpack.c.l.s8.bf16 %v888_v61  ;;  %v1349_v58 = vunpack.c.l.s8.bf16 %v885_v36  ;;  %v1357_v5 = vunpack.c.h.s8.bf16 %v885_v36 }
 0x3e0   :  { %1882 = vmatpush1.bf16.msra.mxu0 %v1277_v3  ;;  %v1351_v3 = vunpack.c.l.s8.bf16 %v887_v31 }
 0x3e1   :  { %2046 = vmatpush1.bf16.msra.mxu1 %v1279_v56  ;;  %1883 = vmatprep.subr.bf16.mxu0 %v1286_v2  ;;  %v1358_v56 = vunpack.c.h.s8.bf16 %v886_v41  ;;  %v1360_v2 = vunpack.c.h.s8.bf16 %v888_v61  ;;  %v918_v61 = vld [vmem:[#allocation7 + $0x7a8] sm:$0xff] }
 0x3e2   :  { %2047 = vmatprep.subr.bf16.mxu1 %v1288_v4  ;;  %v896_v4 = vld [vmem:[#allocation7 + $0x6f8] sm:$0xff]  ;;  %v1414_v36 = vunpack.c.l.s8.bf16 %v918_v61 }
 0x3e3   :  { %v1368_v6 = vunpack.c.l.s8.bf16 %v896_v4  ;;  %v1376_v15 = vunpack.c.h.s8.bf16 %v896_v4  ;;  %v926_v4 = vld [vmem:[#allocation7 + $0x7e8] sm:$0xff] }
 0x3e4   :  { %1884 = vmatpush1.bf16.msra.mxu0 %v1285_v42  ;;  %v1359_v42 = vunpack.c.h.s8.bf16 %v887_v31 }
 0x3e5   :  { %2048 = vmatpush1.bf16.msra.mxu1 %v1287_v22  ;;  %1885 = vmatprep.subr.bf16.mxu0 %v1294_v38  ;;  %v1366_v22 = vunpack.c.l.s8.bf16 %v894_v43  ;;  %v893_v38 = vld [vmem:[#allocation7 + $0x6e0] sm:$0xff] }
 0x3e6   :  { %2049 = vmatprep.subr.bf16.mxu1 %v1296_v39 }
 0x3e8   :  { %1886 = vmatpush1.bf16.msra.mxu0 %v1293_v7 }
 0x3e9   :  { %2050 = vmatpush1.bf16.msra.mxu1 %v1295_v8  ;;  %1887 = vmatprep.subr.bf16.mxu0 %v1302_v9 }
 0x3ea   :  { %2051 = vmatprep.subr.bf16.mxu1 %v1304_v10  ;;  %v1365_v10 = vunpack.c.l.s8.bf16 %v893_v38 }
 0x3ec   :  { %1888 = vmatpush1.bf16.msra.mxu0 %v1301_v59 }
 0x3ed   :  { %2052 = vmatpush1.bf16.msra.mxu1 %v1303_v37  ;;  %1889 = vmatprep.subr.bf16.mxu0 %v1310_v12  ;;  %v1367_v37 = vunpack.c.l.s8.bf16 %v895_v63  ;;  %v1374_v12 = vunpack.c.h.s8.bf16 %v894_v43 }
 0x3ee   :  { %2053 = vmatprep.subr.bf16.mxu1 %v1312_v14 }
 0x3f0   :  { %1890 = vmatpush1.bf16.msra.mxu0 %v1309_v19  ;;  %v904_v19 = vld [vmem:[#allocation7 + $0x738] sm:$0xff] }
 0x3f1   :  { %2054 = vmatpush1.bf16.msra.mxu1 %v1311_v26  ;;  %1900 = vmatprep.subr.bf16.mxu0 %v1318_v27  ;;  %v1373_v26 = vunpack.c.h.s8.bf16 %v893_v38  ;;  %v1375_v27 = vunpack.c.h.s8.bf16 %v895_v63  ;;  %v1384_v32 = vunpack.c.l.s8.bf16 %v904_v19  ;;  %v1430_v38 = vunpack.c.l.s8.bf16 %v926_v4 }
 0x3f2   :  { %2064 = vmatprep.subr.bf16.mxu1 %v1320_v30  ;;  %v901_v30 = vld [vmem:[#allocation7 + $0x720] sm:$0xff] }
 0x3f3   :  { %1892 = vmatmul.mubr.bf16.vlgmr.msra.gmra.mrb[12].mxu0 %v5817_v13 }
 0x3f4   :  { %2056 = vmatmul.mubr.bf16.vlgmr.msra.gmra.mrb[12].mxu1 %v5817_v13  ;;  %1901 = vmatpush1.bf16.msra.mxu0 %v1317_v33  ;;  %v1342_v13 = vunpack.c.h.s8.bf16 %v878_v46  ;;  %v903_v33 = vld [vmem:[#allocation7 + $0x730] sm:$0xff]  ;;  %v1390_v46 = vunpack.c.h.s8.bf16 %v902_v16  ;;  %v2380_v16 = vld [vmem:[#allocation12 + $0x18] sm:$0xff] }
 0x3f5   :  { %1932 = vmatprep.mubr.bf16.mxu0 %v5820_v0  ;;  %2065 = vmatpush1.bf16.msra.mxu1 %v1319_v44  ;;  %v1381_v44 = vunpack.c.l.s8.bf16 %v901_v30 }
 0x3f6   :  { %2096 = vmatprep.mubr.bf16.mxu1 %v5820_v0  ;;  %1902 = vmatprep.subr.bf16.mxu0 %v1326_v45  ;;  %v1350_v0 = vunpack.c.l.s8.bf16 %v886_v41  ;;  %v1383_v45 = vunpack.c.l.s8.bf16 %v903_v33 }
 0x3f7   :  { %2066 = vmatprep.subr.bf16.mxu1 %v1328_v47  ;;  %v1392_v47 = vunpack.c.h.s8.bf16 %v904_v19  ;;  %v2377_v19 = vld [vmem:[#allocation12] sm:$0xff] }
 0x3f8   :  { %1903 = vmatpush1.bf16.msra.mxu0 %v1325_v49  ;;  %v912_v49 = vld [vmem:[#allocation7 + $0x778] sm:$0xff] }
 0x3f9   :  { %2067 = vmatpush1.bf16.msra.mxu1 %v1327_v50  ;;  %1904 = vmatprep.subr.bf16.mxu0 %v1334_v51  ;;  %v1389_v50 = vunpack.c.h.s8.bf16 %v901_v30  ;;  %v1391_v51 = vunpack.c.h.s8.bf16 %v903_v33  ;;  %v1400_v29 = vunpack.c.l.s8.bf16 %v912_v49  ;;  %v1408_v41 = vunpack.c.h.s8.bf16 %v912_v49  ;;  %v2379_v30 = vld [vmem:[#allocation12 + $0x10] sm:$0xff] }
 0x3fa   :  { %2068 = vmatprep.subr.bf16.mxu1 %v1336_v1  ;;  %v909_v1 = vld [vmem:[#allocation7 + $0x760] sm:$0xff]  ;;  %v2635_v33 = vunpack.c.l.s8.bf16 %v2379_v30 }
 0x3fc   :  { %1905 = vmatpush1.bf16.msra.mxu0 %v1333_v54  ;;  %v911_v54 = vld [vmem:[#allocation7 + $0x770] sm:$0xff] }
 0x3fd   :  { %2069 = vmatpush1.bf16.msra.mxu1 %v1335_v20  ;;  %1906 = vmatprep.subr.bf16.mxu0 %v1342_v13  ;;  %v1397_v20 = vunpack.c.l.s8.bf16 %v909_v1  ;;  %v1399_v13 = vunpack.c.l.s8.bf16 %v911_v54 }
 0x3fe   :  { %2070 = vmatprep.subr.bf16.mxu1 %v1344_v57  ;;  %v1406_v57 = vunpack.c.h.s8.bf16 %v910_v48  ;;  %v2643_v48 = vunpack.c.h.s8.bf16 %v2379_v30 }
 0x400   :  { %1907 = vmatpush1.bf16.msra.mxu0 %v1341_v17  ;;  %v920_v17 = vld [vmem:[#allocation7 + $0x7b8] sm:$0xff] }
 0x401   :  { %2071 = vmatpush1.bf16.msra.mxu1 %v1343_v60  ;;  %1908 = vmatprep.subr.bf16.mxu0 %v1350_v0  ;;  %v1405_v60 = vunpack.c.h.s8.bf16 %v909_v1  ;;  %v1407_v0 = vunpack.c.h.s8.bf16 %v911_v54  ;;  %v1416_v31 = vunpack.c.l.s8.bf16 %v920_v17  ;;  %v1424_v43 = vunpack.c.h.s8.bf16 %v920_v17 }
 0x402   :  { %2072 = vmatprep.subr.bf16.mxu1 %v1352_v18  ;;  %v917_v18 = vld [vmem:[#allocation7 + $0x7a0] sm:$0xff] }
 0x404   :  { %1909 = vmatpush1.bf16.msra.mxu0 %v1349_v58  ;;  %v919_v58 = vld [vmem:[#allocation7 + $0x7b0] sm:$0xff] }
 0x405   :  { %2073 = vmatpush1.bf16.msra.mxu1 %v1351_v3  ;;  %1910 = vmatprep.subr.bf16.mxu0 %v1358_v56  ;;  %v1413_v3 = vunpack.c.l.s8.bf16 %v917_v18  ;;  %v1415_v56 = vunpack.c.l.s8.bf16 %v919_v58 }
 0x406   :  { %v5846_v39 = vpop.f32.mrb[8].mxu0  ;;  %2074 = vmatprep.subr.bf16.mxu1 %v1360_v2  ;;  %v1422_v2 = vunpack.c.h.s8.bf16 %v918_v61 }
 0x407   :  { %v5848_v7 = vpop.f32.mrb[8].mxu1  ;;  %v5850_v8 = vpop.f32.mrb[9].mxu0 }
 0x408   :  { %v5852_v9 = vpop.f32.mrb[9].mxu1  ;;  %v1610_v53 = vpop.f32.mrb[10].mxu0  ;;  %1911 = vmatpush1.bf16.msra.mxu0 %v1357_v5  ;;  %v928_v5 = vld [vmem:[#allocation7 + $0x7f8] sm:$0xff] }
 0x409   :  { %v1774_v11 = vpop.f32.mrb[10].mxu1  ;;  %2075 = vmatpush1.bf16.msra.mxu1 %v1359_v42  ;;  %v1611_v59 = vpop.f32.mrb[11].mxu0  ;;  %1912 = vmatprep.subr.bf16.mxu0 %v1366_v22  ;;  %v1421_v42 = vunpack.c.h.s8.bf16 %v917_v18  ;;  %v1423_v22 = vunpack.c.h.s8.bf16 %v919_v58  ;;  %v1432_v63 = vunpack.c.l.s8.bf16 %v928_v5  ;;  %v927_v53 = vld [vmem:[#allocation7 + $0x7f0] sm:$0xff] }
 0x40a   :  { %v1775_v14 = vpop.f32.mrb[11].mxu1  ;;  %2076 = vmatprep.subr.bf16.mxu1 %v1368_v6  ;;  %v925_v6 = vld [vmem:[#allocation7 + $0x7e0] sm:$0xff]  ;;  %v1431_v11 = vunpack.c.l.s8.bf16 %v927_v53  ;;  %v1438_v59 = vunpack.c.h.s8.bf16 %v926_v4 }
 0x40b   :  { %v1439_v14 = vunpack.c.h.s8.bf16 %v927_v53 }
 0x40c   :  { %1913 = vmatpush1.bf16.msra.mxu0 %v1365_v10  ;;  %v1429_v10 = vunpack.c.l.s8.bf16 %v925_v6 }
 0x40d   :  { %2077 = vmatpush1.bf16.msra.mxu1 %v1367_v37  ;;  %1914 = vmatprep.subr.bf16.mxu0 %v1374_v12  ;;  %v1440_v37 = vunpack.c.h.s8.bf16 %v928_v5  ;;  %v1437_v12 = vunpack.c.h.s8.bf16 %v925_v6 }
 0x40e   :  { %2078 = vmatprep.subr.bf16.mxu1 %v1376_v15  ;;  %v2378_v15 = vld [vmem:[#allocation12 + $0x8] sm:$0xff] }
 0x410   :  { %1915 = vmatpush1.bf16.msra.mxu0 %v1373_v26  ;;  %v2634_v26 = vunpack.c.l.s8.bf16 %v2378_v15 }
 0x411   :  { %2079 = vmatpush1.bf16.msra.mxu1 %v1375_v27  ;;  %1916 = vmatprep.subr.bf16.mxu0 %v1382_v28  ;;  %v2636_v27 = vunpack.c.l.s8.bf16 %v2380_v16  ;;  %v2633_v28 = vunpack.c.l.s8.bf16 %v2377_v19 }
 0x412   :  { %2080 = vmatprep.subr.bf16.mxu1 %v1384_v32  ;;  %v2642_v32 = vunpack.c.h.s8.bf16 %v2378_v15 }
 0x414   :  { %1917 = vmatpush1.bf16.msra.mxu0 %v1381_v44  ;;  %v2644_v44 = vunpack.c.h.s8.bf16 %v2380_v16 }
 0x415   :  { %2081 = vmatpush1.bf16.msra.mxu1 %v1383_v45  ;;  %1918 = vmatprep.subr.bf16.mxu0 %v1390_v46  ;;  %v2386_v45 = vld [vmem:[#allocation12 + $0x48] sm:$0xff]  ;;  %v2388_v46 = vld [vmem:[#allocation12 + $0x58] sm:$0xff] }
 0x416   :  { %2082 = vmatprep.subr.bf16.mxu1 %v1392_v47  ;;  %v2641_v47 = vunpack.c.h.s8.bf16 %v2377_v19  ;;  %v2652_v49 = vunpack.c.l.s8.bf16 %v2388_v46  ;;  %v2660_v54 = vunpack.c.h.s8.bf16 %v2388_v46 }
 0x418   :  { %1919 = vmatpush1.bf16.msra.mxu0 %v1389_v50  ;;  %v2385_v50 = vld [vmem:[#allocation12 + $0x40] sm:$0xff] }
 0x419   :  { %2083 = vmatpush1.bf16.msra.mxu1 %v1391_v51  ;;  %1920 = vmatprep.subr.bf16.mxu0 %v1398_v52  ;;  %v2387_v51 = vld [vmem:[#allocation12 + $0x50] sm:$0xff]  ;;  %v2649_v52 = vunpack.c.l.s8.bf16 %v2385_v50 }
 0x41a   :  { %2084 = vmatprep.subr.bf16.mxu1 %v1400_v29  ;;  %v2651_v1 = vunpack.c.l.s8.bf16 %v2387_v51  ;;  %v2658_v29 = vunpack.c.h.s8.bf16 %v2386_v45 }
 0x41c   :  { %1921 = vmatpush1.bf16.msra.mxu0 %v1397_v20  ;;  %v2394_v20 = vld [vmem:[#allocation12 + $0x88] sm:$0xff] }
 0x41d   :  { %2085 = vmatpush1.bf16.msra.mxu1 %v1399_v13  ;;  %1922 = vmatprep.subr.bf16.mxu0 %v1406_v57  ;;  %v2396_v13 = vld [vmem:[#allocation12 + $0x98] sm:$0xff]  ;;  %v2657_v57 = vunpack.c.h.s8.bf16 %v2385_v50  ;;  %v2666_v61 = vunpack.c.l.s8.bf16 %v2394_v20 }
 0x41e   :  { %2086 = vmatprep.subr.bf16.mxu1 %v1408_v41  ;;  %v2659_v41 = vunpack.c.h.s8.bf16 %v2387_v51  ;;  %v2668_v17 = vunpack.c.l.s8.bf16 %v2396_v13  ;;  %v2676_v58 = vunpack.c.h.s8.bf16 %v2396_v13 }
 0x420   :  { %1923 = vmatpush1.bf16.msra.mxu0 %v1405_v60  ;;  %v2393_v60 = vld [vmem:[#allocation12 + $0x80] sm:$0xff] }
 0x421   :  { %2087 = vmatpush1.bf16.msra.mxu1 %v1407_v0  ;;  %1924 = vmatprep.subr.bf16.mxu0 %v1414_v36  ;;  %v2395_v0 = vld [vmem:[#allocation12 + $0x90] sm:$0xff]  ;;  %v2665_v36 = vunpack.c.l.s8.bf16 %v2393_v60 }
 0x422   :  { %2088 = vmatprep.subr.bf16.mxu1 %v1416_v31  ;;  %v2667_v18 = vunpack.c.l.s8.bf16 %v2395_v0  ;;  %v2674_v31 = vunpack.c.h.s8.bf16 %v2394_v20 }
 0x424   :  { %1925 = vmatpush1.bf16.msra.mxu0 %v1413_v3  ;;  %v2402_v3 = vld [vmem:[#allocation12 + $0xc8] sm:$0xff] }
 0x425   :  { %2089 = vmatpush1.bf16.msra.mxu1 %v1415_v56  ;;  %1926 = vmatprep.subr.bf16.mxu0 %v1422_v2  ;;  %v2404_v56 = vld [vmem:[#allocation12 + $0xd8] sm:$0xff]  ;;  %v2673_v2 = vunpack.c.h.s8.bf16 %v2393_v60  ;;  %v2682_v4 = vunpack.c.l.s8.bf16 %v2402_v3 }
 0x426   :  { %2090 = vmatprep.subr.bf16.mxu1 %v1424_v43  ;;  %v2675_v43 = vunpack.c.h.s8.bf16 %v2395_v0  ;;  %v2684_v5 = vunpack.c.l.s8.bf16 %v2404_v56  ;;  %v2692_v53 = vunpack.c.h.s8.bf16 %v2404_v56 }
 0x428   :  { %1927 = vmatpush1.bf16.msra.mxu0 %v1421_v42  ;;  %v2401_v42 = vld [vmem:[#allocation12 + $0xc0] sm:$0xff] }
 0x429   :  { %2091 = vmatpush1.bf16.msra.mxu1 %v1423_v22  ;;  %1928 = vmatprep.subr.bf16.mxu0 %v1430_v38  ;;  %v2403_v22 = vld [vmem:[#allocation12 + $0xd0] sm:$0xff]  ;;  %v2681_v38 = vunpack.c.l.s8.bf16 %v2401_v42 }
 0x42a   :  { %2092 = vmatprep.subr.bf16.mxu1 %v1432_v63  ;;  %v2683_v6 = vunpack.c.l.s8.bf16 %v2403_v22  ;;  %v2690_v63 = vunpack.c.h.s8.bf16 %v2402_v3 }
 0x42c   :  { %1929 = vmatpush1.bf16.msra.mxu0 %v1429_v10  ;;  %v2689_v10 = vunpack.c.h.s8.bf16 %v2401_v42 }
 0x42d   :  { %2093 = vmatpush1.bf16.msra.mxu1 %v1431_v11  ;;  %1930 = vmatprep.subr.bf16.mxu0 %v1438_v59  ;;  %v2691_v11 = vunpack.c.h.s8.bf16 %v2403_v22  ;;  %v2105_v59 = vld [vmem:[%s6208_s6] sm:$0xff] }
 0x42e   :  { %2094 = vmatprep.subr.bf16.mxu1 %v1440_v37  ;;  %v2110_v37 = vrot.slane %v2105_v59, %v5641_v21  ;;  %v2134_v51 = vrot.slane %v2105_v59, %v5663_v40 }
 0x430   :  { %1931 = vmatpush1.bf16.msra.mxu0 %v1437_v12  ;;  %v2114_v12 = vrot.slane %v2105_v59, %v5643_v23  ;;  %v2147_v15 = vmul.f32 %v2110_v37, %v5846_v39 }
 0x431   :  { %2095 = vmatpush1.bf16.msra.mxu1 %v1439_v14  ;;  %3153 = vmatprep.subr.bf16.mxu0 %v2634_v26  ;;  %v2155_v14 = vld [vmem:[#allocation9] sm:$0xff] }
 0x432   :  { %3317 = vmatprep.subr.bf16.mxu1 %v2636_v27  ;;  %v2160_v16 = vrot.slane %v2155_v14, %v5641_v21  ;;  %v2148_v19 = vmul.f32 %v2114_v12, %v5850_v8  ;;  %v2164_v26 = vrot.slane %v2155_v14, %v5643_v23  ;;  %v2118_v27 = vrot.slane %v2105_v59, %v5645_v24 }
 0x433   :  { %1933 = vmatmul.mubr.bf16.vlgmr.msra.gmra.mrb[12].mxu0 %v5828_v62  ;;  %v2180_v20 = vrot.slane %v2155_v14, %v5657_v35 }
 0x434   :  { %2097 = vmatmul.mubr.bf16.vlgmr.msra.gmra.mrb[12].mxu1 %v5828_v62  ;;  %3154 = vmatpush1.bf16.msra.mxu0 %v2633_v28  ;;  %v2650_v62 = vunpack.c.l.s8.bf16 %v2386_v45  ;;  %v5866_v28 = vadd.f32 %v2160_v16, %v2147_v15  ;;  %v5868_v30 = vadd.f32 %v2164_v26, %v2148_v19 }
 0x435   :  { %3318 = vmatpush1.bf16.msra.mxu1 %v2635_v33  ;;  %3155 = vmatprep.subr.bf16.mxu0 %v2642_v32  ;;  %v2149_v32 = vmul.f32 %v2118_v27, %v5848_v7  ;;  %v2168_v33 = vrot.slane %v2155_v14, %v5645_v24  ;;  %v2410_v27 = vld [vmem:[#allocation12 + $0x108] sm:$0xff] }
 0x436   :  { %3319 = vmatprep.subr.bf16.mxu1 %v2644_v44  ;;  %v2122_v44 = vrot.slane %v2105_v59, %v5647_v25  ;;  %v2217_v39 = vmul.f32 %v5866_v28, %v5866_v28  ;;  %v2218_v8 = vmul.f32 %v5868_v30, %v5868_v30 }
 0x437   :  { %v5877_v45 = vadd.f32 %v2168_v33, %v2149_v32  ;;  %v2412_v32 = vld [vmem:[#allocation12 + $0x118] sm:$0xff]  ;;  %v2409_v33 = vld [vmem:[#allocation12 + $0x100] sm:$0xff] }
 0x438   :  { %3156 = vmatpush1.bf16.msra.mxu0 %v2641_v47  ;;  %v2150_v46 = vmul.f32 %v2122_v44, %v5852_v9  ;;  %v2172_v47 = vrot.slane %v2155_v14, %v5647_v25  ;;  %v2225_v7 = vadd.f32 %v2218_v8, %v2217_v39  ;;  %v2176_v9 = vrot.slane %v2155_v14, %v5655_v34 }
 0x439   :  { %3320 = vmatpush1.bf16.msra.mxu1 %v2643_v48  ;;  %3157 = vmatprep.subr.bf16.mxu0 %v2650_v62  ;;  %v2207_v48 = vadd.f32 %v5868_v30, %v5866_v28  ;;  %v2126_v62 = vrot.slane %v2105_v59, %v5655_v34  ;;  %v2698_v44 = vunpack.c.l.s8.bf16 %v2410_v27  ;;  %v2700_v39 = vunpack.c.l.s8.bf16 %v2412_v32 }
 0x43a   :  { %3321 = vmatprep.subr.bf16.mxu1 %v2652_v49  ;;  %v2219_v49 = vmul.f32 %v5877_v45, %v5877_v45  ;;  %v5886_v50 = vadd.f32 %v2172_v47, %v2150_v46  ;;  %v2697_v8 = vunpack.c.l.s8.bf16 %v2409_v33  ;;  %v2411_v46 = vld [vmem:[#allocation12 + $0x110] sm:$0xff] }
 0x43b   :  { %v2699_v47 = vunpack.c.l.s8.bf16 %v2411_v46 }
 0x43c   :  { %3158 = vmatpush1.bf16.msra.mxu0 %v2649_v52  ;;  %v2130_v52 = vrot.slane %v2105_v59, %v5657_v35  ;;  %v2220_v60 = vmul.f32 %v5886_v50, %v5886_v50 }
 0x43d   :  { %3322 = vmatpush1.bf16.msra.mxu1 %v2651_v1  ;;  %3159 = vmatprep.subr.bf16.mxu0 %v2658_v29  ;;  %v2208_v1 = vadd.f32 %v2207_v48, %v5877_v45  ;;  %v2226_v29 = vadd.f32 %v2225_v7, %v2219_v49  ;;  %v2706_v48 = vunpack.c.h.s8.bf16 %v2410_v27  ;;  %v2708_v7 = vunpack.c.h.s8.bf16 %v2412_v32 }
 0x43e   :  { %3323 = vmatprep.subr.bf16.mxu1 %v2660_v54  ;;  %v2707_v49 = vunpack.c.h.s8.bf16 %v2411_v46 }
 0x440   :  { %3160 = vmatpush1.bf16.msra.mxu0 %v2657_v57 }
 0x441   :  { %3324 = vmatpush1.bf16.msra.mxu1 %v2659_v41  ;;  %3161 = vmatprep.subr.bf16.mxu0 %v2666_v61  ;;  %v2184_v41 = vrot.slane %v2155_v14, %v5663_v40 }
 0x442   :  { %3325 = vmatprep.subr.bf16.mxu1 %v2668_v17  ;;  %v2138_v17 = vrot.slane %v2105_v59, %v5681_v55 }
 0x444   :  { %3162 = vmatpush1.bf16.msra.mxu0 %v2665_v36 }
 0x445   :  { %3326 = vmatpush1.bf16.msra.mxu1 %v2667_v18  ;;  %3163 = vmatprep.subr.bf16.mxu0 %v2674_v31 }
 0x446   :  { %3327 = vmatprep.subr.bf16.mxu1 %v2676_v58  ;;  %v2209_v58 = vadd.f32 %v2208_v1, %v5886_v50  ;;  %v2417_v1 = vld [vmem:[#allocation12 + $0x140] sm:$0xff] }
 0x448   :  { %3164 = vmatpush1.bf16.msra.mxu0 %v2673_v2 }
 0x449   :  { %3328 = vmatpush1.bf16.msra.mxu1 %v2675_v43  ;;  %3165 = vmatprep.subr.bf16.mxu0 %v2682_v4  ;;  %v2227_v43 = vadd.f32 %v2226_v29, %v2220_v60  ;;  %v2721_v60 = vunpack.c.h.s8.bf16 %v2417_v1 }
 0x44a   :  { %3329 = vmatprep.subr.bf16.mxu1 %v2684_v5  ;;  %v2188_v5 = vrot.slane %v2155_v14, %v5681_v55 }
 0x44c   :  { %3166 = vmatpush1.bf16.msra.mxu0 %v2681_v38 }
 0x44d   :  { %3330 = vmatpush1.bf16.msra.mxu1 %v2683_v6  ;;  %3167 = vmatprep.subr.bf16.mxu0 %v2690_v63 }
 0x44e   :  { %3331 = vmatprep.subr.bf16.mxu1 %v2692_v53 }
 0x450   :  { %3168 = vmatpush1.bf16.msra.mxu0 %v2689_v10 }
 0x451   :  { %3332 = vmatpush1.bf16.msra.mxu1 %v2691_v11  ;;  %3169 = vmatprep.subr.bf16.mxu0 %v2698_v44 }
 0x452   :  { %3333 = vmatprep.subr.bf16.mxu1 %v2700_v39 }
 0x454   :  { %3170 = vmatpush1.bf16.msra.mxu0 %v2697_v8 }
 0x455   :  { %3334 = vmatpush1.bf16.msra.mxu1 %v2699_v47  ;;  %3171 = vmatprep.subr.bf16.mxu0 %v2706_v48 }
 0x456   :  { %3335 = vmatprep.subr.bf16.mxu1 %v2708_v7 }
 0x459   :  { %3336 = vmatpush1.bf16.msra.mxu1 %v2707_v49  ;;  %v5932_v49 = vld [vmem:[%s6210_s8] sm:$0xff] }
 0x506   :  { %v1934_v54 = vpop.f32.mrb[12].mxu0 }
 0x507   :  { %v2151_v13 = vmul.f32 %v2126_v62, %v1934_v54  ;;  %v2098_v57 = vpop.f32.mrb[12].mxu1  ;;  %v1936_v61 = vpop.f32.mrb[13].mxu0  ;;  %v2705_v62 = vunpack.c.h.s8.bf16 %v2409_v33  ;;  %v2419_v54 = vld [vmem:[#allocation12 + $0x150] sm:$0xff] }
 0x508   :  { %v2153_v0 = vmul.f32 %v2134_v51, %v2098_v57  ;;  %v2152_v36 = vmul.f32 %v2130_v52, %v1936_v61  ;;  %v2100_v18 = vpop.f32.mrb[13].mxu1  ;;  %v1938_v31 = vpop.f32.mrb[14].mxu0  ;;  %v2418_v51 = vld [vmem:[#allocation12 + $0x148] sm:$0xff]  ;;  %v2420_v52 = vld [vmem:[#allocation12 + $0x158] sm:$0xff] }
 0x509   :  { %v5898_v3 = vadd.f32 %v2176_v9, %v2151_v13  ;;  %v2102_v56 = vpop.f32.mrb[14].mxu1  ;;  %v1939_v2 = vpop.f32.mrb[15].mxu0  ;;  %v2154_v6 = vmul.f32 %v2138_v17, %v2100_v18  ;;  %v2714_v9 = vunpack.c.l.s8.bf16 %v2418_v51  ;;  %v2716_v29 = vunpack.c.l.s8.bf16 %v2420_v52  ;;  %3172 = vmatpush1.bf16.msra.mxu0 %v2705_v62  ;;  %v2426_v61 = vld [vmem:[#allocation12 + $0x188] sm:$0xff]  ;;  %v2428_v17 = vld [vmem:[#allocation12 + $0x198] sm:$0xff]  ;;  %v2425_v31 = vld [vmem:[#allocation12 + $0x180] sm:$0xff] }
 0x50a   :  { %v5900_v4 = vadd.f32 %v2180_v20, %v2152_v36  ;;  %v2103_v42 = vpop.f32.mrb[15].mxu1  ;;  %v5905_v38 = vadd.f32 %v2184_v41, %v2153_v0  ;;  %v2713_v20 = vunpack.c.l.s8.bf16 %v2417_v1  ;;  %v2715_v13 = vunpack.c.l.s8.bf16 %v2419_v54 }
 0x50b   :  { %v2221_v22 = vmul.f32 %v5898_v3, %v5898_v3  ;;  %v2210_v63 = vadd.f32 %v2209_v58, %v5898_v3  ;;  %v5911_v59 = vadd.f32 %v2188_v5, %v2154_v6  ;;  %3173 = vmatprep.subr.bf16.mxu0 %v2714_v9  ;;  %3337 = vmatprep.subr.bf16.mxu1 %v2716_v29  ;;  %v2722_v57 = vunpack.c.h.s8.bf16 %v2418_v51  ;;  %v2427_v58 = vld [vmem:[#allocation12 + $0x190] sm:$0xff]  ;;  %v2434_v42 = vld [vmem:[#allocation12 + $0x1c8] sm:$0xff]  ;;  %v5934_v51 = vld [vmem:[#allocation10] sm:$0xff] }
 0x50c   :  { %v2222_v53 = vmul.f32 %v5900_v4, %v5900_v4  ;;  %v2223_v12 = vmul.f32 %v5905_v38, %v5905_v38  ;;  %v2724_v41 = vunpack.c.h.s8.bf16 %v2420_v52  ;;  %3338 = vmatpush1.bf16.msra.mxu1 %v2715_v13  ;;  %v2723_v0 = vunpack.c.h.s8.bf16 %v2419_v54 }
 0x50d   :  { %v2211_v10 = vadd.f32 %v2210_v63, %v5900_v4  ;;  %v2228_v11 = vadd.f32 %v2227_v43, %v2221_v22  ;;  %v2224_v19 = vmul.f32 %v5911_v59, %v5911_v59  ;;  %3174 = vmatpush1.bf16.msra.mxu0 %v2713_v20  ;;  %v2730_v36 = vunpack.c.l.s8.bf16 %v2426_v61  ;;  %v2436_v22 = vld [vmem:[#allocation12 + $0x1d8] sm:$0xff] }
 0x50e   :  { %3175 = vmatprep.subr.bf16.mxu0 %v2722_v57  ;;  %3339 = vmatprep.subr.bf16.mxu1 %v2724_v41  ;;  %v2732_v18 = vunpack.c.l.s8.bf16 %v2428_v17  ;;  %v2729_v56 = vunpack.c.l.s8.bf16 %v2425_v31  ;;  %v2731_v2 = vunpack.c.l.s8.bf16 %v2427_v58  ;;  %v2738_v43 = vunpack.c.h.s8.bf16 %v2426_v61 }
 0x50f   :  { %v2212_v37 = vadd.f32 %v2211_v10, %v5905_v38  ;;  %v2229_v14 = vadd.f32 %v2228_v11, %v2222_v53  ;;  %v2740_v5 = vunpack.c.h.s8.bf16 %v2428_v17  ;;  %v2737_v6 = vunpack.c.h.s8.bf16 %v2425_v31  ;;  %v2433_v11 = vld [vmem:[#allocation12 + $0x1c0] sm:$0xff] }
 0x510   :  { %3340 = vmatpush1.bf16.msra.mxu1 %v2723_v0  ;;  %v2739_v63 = vunpack.c.h.s8.bf16 %v2427_v58  ;;  %v2746_v53 = vunpack.c.l.s8.bf16 %v2434_v42  ;;  %v2748_v10 = vunpack.c.l.s8.bf16 %v2436_v22  ;;  %v2753_v27 = vunpack.c.h.s8.bf16 %v2433_v11 }
 0x511   :  { %v2213_v15 = vadd.f32 %v2212_v37, %v5911_v59  ;;  %v2230_v16 = vadd.f32 %v2229_v14, %v2223_v12  ;;  %3176 = vmatpush1.bf16.msra.mxu0 %v2721_v60  ;;  %3341 = vmatprep.subr.bf16.mxu1 %v2732_v18  ;;  %v2435_v37 = vld [vmem:[#allocation12 + $0x1d0] sm:$0xff]  ;;  %v2745_v12 = vunpack.c.l.s8.bf16 %v2433_v11  ;;  %v2263_v52 = vrot.slane %v5932_v49, %v5643_v23 }
 0x512   :  { %3177 = vmatprep.subr.bf16.mxu0 %v2730_v36  ;;  %v2747_v14 = vunpack.c.l.s8.bf16 %v2435_v37  ;;  %v2755_v32 = vunpack.c.h.s8.bf16 %v2435_v37  ;;  %v2312_v1 = vrot.slane %v5934_v51, %v5643_v23  ;;  %v2259_v9 = vrot.slane %v5932_v49, %v5641_v21 }
 0x513   :  { %2214 = vadd.xlane.f32.xlu1 %v2213_v15  ;;  %v2231_v26 = vadd.f32 %v2230_v16, %v2224_v19  ;;  %v2754_v15 = vunpack.c.h.s8.bf16 %v2434_v42  ;;  %v2756_v16 = vunpack.c.h.s8.bf16 %v2436_v22  ;;  %v5919_v19 = vld [vmem:[#allocation12 + $0x208] sm:$0xff]  ;;  %v2308_v29 = vrot.slane %v5934_v51, %v5641_v21 }
 0x514   :  { %3342 = vmatpush1.bf16.msra.mxu1 %v2731_v2  ;;  %v2762_v33 = vunpack.c.l.s8.bf16 %v5919_v19  ;;  %v2271_v54 = vrot.slane %v5932_v49, %v5647_v25  ;;  %v2320_v20 = vrot.slane %v5934_v51, %v5647_v25  ;;  %v2267_v13 = vrot.slane %v5932_v49, %v5645_v24 }
 0x515   :  { %3178 = vmatpush1.bf16.msra.mxu0 %v2729_v56  ;;  %3343 = vmatprep.subr.bf16.mxu1 %v2740_v5  ;;  %v2316_v57 = vrot.slane %v5934_v51, %v5645_v24  ;;  %v2279_v41 = vrot.slane %v5932_v49, %v5657_v35  ;;  %v2328_v61 = vrot.slane %v5934_v51, %v5657_v35 }
 0x516   :  { %3179 = vmatprep.subr.bf16.mxu0 %v2738_v43  ;;  %v2275_v17 = vrot.slane %v5932_v49, %v5655_v34  ;;  %v2324_v2 = vrot.slane %v5934_v51, %v5655_v34 }
 0x517   :  { %2232 = vadd.xlane.f32.xlu1 %v2231_v26  ;;  %v5921_v26 = vld [vmem:[#allocation12 + $0x218] sm:$0xff] }
 0x518   :  { %3344 = vmatpush1.bf16.msra.mxu1 %v2739_v63  ;;  %v2764_v44 = vunpack.c.l.s8.bf16 %v5921_v26 }
 0x519   :  { %3180 = vmatpush1.bf16.msra.mxu0 %v2737_v6  ;;  %3345 = vmatprep.subr.bf16.mxu1 %v2748_v10  ;;  %v2287_v6 = vrot.slane %v5932_v49, %v5681_v55 }
 0x51a   :  { %3181 = vmatprep.subr.bf16.mxu0 %v2746_v53 }
 0x51c   :  { %3346 = vmatpush1.bf16.msra.mxu1 %v2747_v14 }
 0x51d   :  { %3182 = vmatpush1.bf16.msra.mxu0 %v2745_v12  ;;  %3347 = vmatprep.subr.bf16.mxu1 %v2756_v16  ;;  %v2443_v16 = vld [vmem:[#allocation12 + $0x210] sm:$0xff] }
 0x51e   :  { %3183 = vmatprep.subr.bf16.mxu0 %v2754_v15  ;;  %v2441_v15 = vld [vmem:[#allocation12 + $0x200] sm:$0xff] }
 0x520   :  { %3348 = vmatpush1.bf16.msra.mxu1 %v2755_v32 }
 0x521   :  { %3184 = vmatpush1.bf16.msra.mxu0 %v2753_v27  ;;  %3358 = vmatprep.subr.bf16.mxu1 %v2764_v44 }
 0x522   :  { %3194 = vmatprep.subr.bf16.mxu0 %v2762_v33 }
 0x5a0   :  { %v2215_v39 = vpop.xlane.xlu1 %2214 }
 0x5a1   :  { %v5925_v8 = vmul.f32 0.0009765625, %v2215_v39 }
 0x5a3   :  { %v2235_v47 = vmul.f32 %v5925_v8, %v5925_v8  ;;  %v2238_v60 = vsub.f32 %v5868_v30, %v5925_v8  ;;  %v2237_v0 = vsub.f32 %v5866_v28, %v5925_v8  ;;  %v2240_v36 = vsub.f32 %v5886_v50, %v5925_v8 }
 0x5a4   :  { %v2233_v46 = vpop.xlane.xlu1 %2232  ;;  %v2239_v18 = vsub.f32 %v5877_v45, %v5925_v8  ;;  %v2242_v58 = vsub.f32 %v5900_v4, %v5925_v8  ;;  %v2241_v56 = vsub.f32 %v5898_v3, %v5925_v8  ;;  %v2244_v30 = vsub.f32 %v5911_v59, %v5925_v8 }
 0x5a5   :  { %v2234_v48 = vmul.f32 0.0009765625, %v2233_v46 }
 0x5a7   :  { %v2236_v7 = vsub.f32 %v2234_v48, %v2235_v47 }
 0x5a9   :  { %v2245_v62 = vadd.f32 1e-05, %v2236_v7  ;;  %v2761_v7 = vunpack.c.l.s8.bf16 %v2441_v15 }
 0x5ab   :  { %5132 = vrsqrt.f32 %v2245_v62  ;;  %v2336_v62 = vrot.slane %v5934_v51, %v5681_v55 }
 0x5b5   :  { %v5133_v31 = vpop.eup %5132 }
 0x5b6   :  { %v2248_v28 = vmul.f32 %v5133_v31, %v2238_v60  ;;  %v2247_v43 = vmul.f32 %v5133_v31, %v2237_v0  ;;  %v2250_v5 = vmul.f32 %v5133_v31, %v2240_v36  ;;  %v2249_v50 = vmul.f32 %v5133_v31, %v2239_v18  ;;  %v2449_v36 = vld [vmem:[#allocation12 + $0x240] sm:$0xff]  ;;  %v2451_v18 = vld [vmem:[#allocation12 + $0x250] sm:$0xff] }
 0x5b7   :  { %v2252_v42 = vmul.f32 %v5133_v31, %v2242_v58  ;;  %v2251_v22 = vmul.f32 %v5133_v31, %v2241_v56  ;;  %v2254_v45 = vmul.f32 %v5133_v31, %v2244_v30  ;;  %v2283_v60 = vrot.slane %v5932_v49, %v5663_v40 }
 0x5b8   :  { %v2297_v4 = vmul.f32 %v2263_v52, %v2248_v28  ;;  %v2296_v63 = vmul.f32 %v2259_v9, %v2247_v43  ;;  %v2299_v53 = vmul.f32 %v2271_v54, %v2250_v5  ;;  %v2298_v3 = vmul.f32 %v2267_v13, %v2249_v50  ;;  %v2450_v13 = vld [vmem:[#allocation12 + $0x248] sm:$0xff]  ;;  %v2460_v5 = vld [vmem:[#allocation12 + $0x298] sm:$0xff] }
 0x5b9   :  { %v2301_v10 = vmul.f32 %v2279_v41, %v2252_v42  ;;  %v2300_v11 = vmul.f32 %v2275_v17, %v2251_v22  ;;  %v2303_v33 = vmul.f32 %v2287_v6, %v2254_v45  ;;  %v2763_v9 = vunpack.c.l.s8.bf16 %v2443_v16  ;;  %v2458_v43 = vld [vmem:[#allocation12 + $0x288] sm:$0xff]  ;;  %v2457_v45 = vld [vmem:[#allocation12 + $0x280] sm:$0xff]  ;;  %v2459_v6 = vld [vmem:[#allocation12 + $0x290] sm:$0xff] }
 0x5ba   :  { %v2346_v37 = vadd.f32 %v2312_v1, %v2297_v4  ;;  %v2345_v12 = vadd.f32 %v2308_v29, %v2296_v63  ;;  %v2348_v14 = vadd.f32 %v2320_v20, %v2299_v53  ;;  %v5976_v59 = vadd.f32 %v2316_v57, %v2298_v3  ;;  %v2452_v57 = vld [vmem:[#allocation12 + $0x258] sm:$0xff] }
 0x5bb   :  { %v5978_v27 = vadd.f32 %v2328_v61, %v2301_v10  ;;  %v5980_v32 = vadd.f32 %v2324_v2, %v2300_v11  ;;  %v2770_v54 = vunpack.c.h.s8.bf16 %v5919_v19  ;;  %v2772_v20 = vunpack.c.h.s8.bf16 %v5921_v26  ;;  %v2466_v10 = vld [vmem:[#allocation12 + $0x2c8] sm:$0xff]  ;;  %v2468_v11 = vld [vmem:[#allocation12 + $0x2d8] sm:$0xff] }
 0x5bc   :  { %vm2354_vm9 = vcmp.gt.f32.partialorder %v2346_v37, 0.0  ;;  %v2362_v44 = vmul.f32 0.01, %v2346_v37  ;;  %vm2353_vm10 = vcmp.gt.f32.partialorder %v2345_v12, 0.0  ;;  %v2361_v39 = vmul.f32 0.01, %v2345_v12 }
 0x5bd   :  { %vm2356_vm11 = vcmp.gt.f32.partialorder %v2348_v14, 0.0  ;;  %v2364_v46 = vmul.f32 0.01, %v2348_v14  ;;  %v2243_v41 = vsub.f32 %v5905_v38, %v5925_v8  ;;  %v5998_v17 = vadd.f32 %v2336_v62, %v2303_v33  ;;  %v2467_v33 = vld [vmem:[#allocation12 + $0x2d0] sm:$0xff] }
 0x5be   :  { %v2370_v47 = vsel %vm2354_vm9, %v2346_v37, %v2362_v44  ;;  %v2369_v48 = vsel %vm2353_vm10, %v2345_v12, %v2361_v39  ;;  %v2769_v19 = vunpack.c.h.s8.bf16 %v2441_v15  ;;  %v2771_v26 = vunpack.c.h.s8.bf16 %v2443_v16  ;;  %v2465_v16 = vld [vmem:[#allocation12 + $0x2c0] sm:$0xff] }
 0x5bf   :  { %v5984_v52 = vpack.c.bf16 %v2370_v47, %v2370_v47  ;;  %v5986_v1 = vpack.c.bf16 %v2369_v48, %v2369_v48  ;;  %v2372_v29 = vsel %vm2356_vm11, %v2348_v14, %v2364_v46  ;;  %v2253_v0 = vmul.f32 %v5133_v31, %v2243_v41  ;;  %v2474_v48 = vld [vmem:[#allocation12 + $0x308] sm:$0xff] }
 0x5c0   :  { %v5996_v61 = vpack.c.bf16 %v2372_v29, %v2372_v29  ;;  %v2778_v38 = vunpack.c.l.s8.bf16 %v2450_v13  ;;  %v2780_v8 = vunpack.c.l.s8.bf16 %v2452_v57  ;;  %v2332_v58 = vrot.slane %v5934_v51, %v5663_v40 }
 0x5c1   :  { %3185 = vmatprep.mubr.bf16.mxu0 %v5984_v52  ;;  %3349 = vmatprep.mubr.bf16.mxu1 %v5984_v52  ;;  %v2302_v56 = vmul.f32 %v2283_v60, %v2253_v0  ;;  %v2777_v49 = vunpack.c.l.s8.bf16 %v2449_v36  ;;  %v2779_v2 = vunpack.c.l.s8.bf16 %v2451_v18  ;;  %v2786_v31 = vunpack.c.h.s8.bf16 %v2450_v13  ;;  %v2475_v13 = vld [vmem:[#allocation12 + $0x310] sm:$0xff]  ;;  %v2484_v0 = vld [vmem:[#allocation12 + $0x358] sm:$0xff] }
 0x5c2   :  { %3186 = vmatmul.mubr.bf16.vlgmr.msra.gmra.mrb[16].mxu0 %v5986_v1  ;;  %3350 = vmatmul.mubr.bf16.vlgmr.msra.gmra.mrb[16].mxu1 %v5986_v1  ;;  %v2788_v30 = vunpack.c.h.s8.bf16 %v2452_v57  ;;  %v2785_v50 = vunpack.c.h.s8.bf16 %v2449_v36  ;;  %v2787_v42 = vunpack.c.h.s8.bf16 %v2451_v18  ;;  %v2794_v51 = vunpack.c.l.s8.bf16 %v2458_v43 }
 0x5c3   :  { %3195 = vmatpush1.bf16.msra.mxu0 %v2761_v7  ;;  %3359 = vmatpush1.bf16.msra.mxu1 %v2763_v9  ;;  %v6006_v28 = vadd.f32 %v2332_v58, %v2302_v56  ;;  %v2796_v22 = vunpack.c.l.s8.bf16 %v2460_v5  ;;  %v2793_v4 = vunpack.c.l.s8.bf16 %v2457_v45  ;;  %v2795_v63 = vunpack.c.l.s8.bf16 %v2459_v6  ;;  %v2476_v7 = vld [vmem:[#allocation12 + $0x318] sm:$0xff]  ;;  %v2481_v58 = vld [vmem:[#allocation12 + $0x340] sm:$0xff]  ;;  %v2483_v56 = vld [vmem:[#allocation12 + $0x350] sm:$0xff] }
 0x5c4   :  { %3226 = vmatprep.mubr.bf16.mxu0 %v5996_v61  ;;  %3390 = vmatprep.mubr.bf16.mxu1 %v5996_v61  ;;  %v2802_v53 = vunpack.c.h.s8.bf16 %v2458_v43  ;;  %v2804_v3 = vunpack.c.h.s8.bf16 %v2460_v5  ;;  %v2801_v37 = vunpack.c.h.s8.bf16 %v2457_v45  ;;  %v2803_v12 = vunpack.c.h.s8.bf16 %v2459_v6  ;;  %v2490_v43 = vld [vmem:[#allocation12 + $0x388] sm:$0xff]  ;;  %v2492_v5 = vld [vmem:[#allocation12 + $0x398] sm:$0xff]  ;;  %v2489_v45 = vld [vmem:[#allocation12 + $0x380] sm:$0xff] }
 0x5c5   :  { %3196 = vmatprep.subr.bf16.mxu0 %v2770_v54  ;;  %3360 = vmatprep.subr.bf16.mxu1 %v2772_v20  ;;  %v2810_v14 = vunpack.c.l.s8.bf16 %v2466_v10  ;;  %v2812_v15 = vunpack.c.l.s8.bf16 %v2468_v11  ;;  %v2809_v44 = vunpack.c.l.s8.bf16 %v2465_v16  ;;  %v2811_v39 = vunpack.c.l.s8.bf16 %v2467_v33  ;;  %v2473_v20 = vld [vmem:[#allocation12 + $0x300] sm:$0xff]  ;;  %v2491_v6 = vld [vmem:[#allocation12 + $0x390] sm:$0xff] }
 0x5c6   :  { %v2818_v46 = vunpack.c.h.s8.bf16 %v2466_v10  ;;  %v2820_v47 = vunpack.c.h.s8.bf16 %v2468_v11  ;;  %v2817_v62 = vunpack.c.h.s8.bf16 %v2465_v16  ;;  %v2819_v9 = vunpack.c.h.s8.bf16 %v2467_v33  ;;  %v2498_v10 = vld [vmem:[#allocation12 + $0x3c8] sm:$0xff]  ;;  %v2500_v11 = vld [vmem:[#allocation12 + $0x3d8] sm:$0xff]  ;;  %v2497_v16 = vld [vmem:[#allocation12 + $0x3c0] sm:$0xff] }
 0x5c7   :  { %3197 = vmatpush1.bf16.msra.mxu0 %v2769_v19  ;;  %3361 = vmatpush1.bf16.msra.mxu1 %v2771_v26  ;;  %v2826_v29 = vunpack.c.l.s8.bf16 %v2474_v48  ;;  %v2828_v54 = vunpack.c.l.s8.bf16 %v2476_v7  ;;  %v2825_v57 = vunpack.c.l.s8.bf16 %v2473_v20  ;;  %v2827_v41 = vunpack.c.l.s8.bf16 %v2475_v13  ;;  %v2482_v26 = vld [vmem:[#allocation12 + $0x348] sm:$0xff]  ;;  %v2499_v33 = vld [vmem:[#allocation12 + $0x3d0] sm:$0xff] }
 0x5c8   :  { %3198 = vmatprep.subr.bf16.mxu0 %v2778_v38  ;;  %3362 = vmatprep.subr.bf16.mxu1 %v2780_v8  ;;  %v2834_v60 = vunpack.c.h.s8.bf16 %v2474_v48  ;;  %v2836_v19 = vunpack.c.h.s8.bf16 %v2476_v7  ;;  %v2833_v38 = vunpack.c.h.s8.bf16 %v2473_v20  ;;  %v2835_v8 = vunpack.c.h.s8.bf16 %v2475_v13  ;;  %v2506_v7 = vld [vmem:[#allocation12 + $0x408] sm:$0xff] }
 0x5c9   :  { %v2842_v36 = vunpack.c.l.s8.bf16 %v2482_v26  ;;  %v2844_v18 = vunpack.c.l.s8.bf16 %v2484_v0  ;;  %v2363_v48 = vmul.f32 0.01, %v5976_v59  ;;  %vm2355_vm12 = vcmp.gt.f32.partialorder %v5976_v59, 0.0 }
 0x5ca   :  { %vm2358_vm13 = vcmp.gt.f32.partialorder %v5978_v27, 0.0  ;;  %v2890_v20 = vunpack.c.l.s8.bf16 %v2506_v7  ;;  %vm2357_vm14 = vcmp.gt.f32.partialorder %v5980_v32, 0.0  ;;  %vm2360_vm15 = vcmp.gt.f32.partialorder %v5998_v17, 0.0 }
 0x5cb   :  { %3199 = vmatpush1.bf16.msra.mxu0 %v2777_v49  ;;  %3363 = vmatpush1.bf16.msra.mxu1 %v2779_v2  ;;  %v2841_v49 = vunpack.c.l.s8.bf16 %v2481_v58  ;;  %v2843_v2 = vunpack.c.l.s8.bf16 %v2483_v56  ;;  %vm2359_vm0 = vcmp.gt.f32.partialorder %v6006_v28, 0.0 }
 0x5cc   :  { %3200 = vmatprep.subr.bf16.mxu0 %v2786_v31  ;;  %3364 = vmatprep.subr.bf16.mxu1 %v2788_v30  ;;  %v2850_v31 = vunpack.c.h.s8.bf16 %v2482_v26  ;;  %v2852_v30 = vunpack.c.h.s8.bf16 %v2484_v0 }
 0x5cf   :  { %3201 = vmatpush1.bf16.msra.mxu0 %v2785_v50  ;;  %3365 = vmatpush1.bf16.msra.mxu1 %v2787_v42  ;;  %v2849_v50 = vunpack.c.h.s8.bf16 %v2481_v58  ;;  %v2851_v42 = vunpack.c.h.s8.bf16 %v2483_v56  ;;  %v2514_v58 = vld [vmem:[#allocation12 + $0x448] sm:$0xff] }
 0x5d0   :  { %3202 = vmatprep.subr.bf16.mxu0 %v2794_v51  ;;  %3366 = vmatprep.subr.bf16.mxu1 %v2796_v22  ;;  %v2858_v51 = vunpack.c.l.s8.bf16 %v2490_v43  ;;  %v2860_v22 = vunpack.c.l.s8.bf16 %v2492_v5 }
 0x5d3   :  { %3203 = vmatpush1.bf16.msra.mxu0 %v2793_v4  ;;  %3367 = vmatpush1.bf16.msra.mxu1 %v2795_v63  ;;  %v2857_v4 = vunpack.c.l.s8.bf16 %v2489_v45  ;;  %v2859_v63 = vunpack.c.l.s8.bf16 %v2491_v6 }
 0x5d4   :  { %3204 = vmatprep.subr.bf16.mxu0 %v2802_v53  ;;  %3368 = vmatprep.subr.bf16.mxu1 %v2804_v3  ;;  %v2866_v53 = vunpack.c.h.s8.bf16 %v2490_v43  ;;  %v2868_v3 = vunpack.c.h.s8.bf16 %v2492_v5 }
 0x5d7   :  { %3205 = vmatpush1.bf16.msra.mxu0 %v2801_v37  ;;  %3369 = vmatpush1.bf16.msra.mxu1 %v2803_v12  ;;  %v2865_v37 = vunpack.c.h.s8.bf16 %v2489_v45  ;;  %v2867_v12 = vunpack.c.h.s8.bf16 %v2491_v6 }
 0x5d8   :  { %3206 = vmatprep.subr.bf16.mxu0 %v2810_v14  ;;  %3370 = vmatprep.subr.bf16.mxu1 %v2812_v15  ;;  %v2874_v14 = vunpack.c.l.s8.bf16 %v2498_v10  ;;  %v2876_v15 = vunpack.c.l.s8.bf16 %v2500_v11 }
 0x5db   :  { %3207 = vmatpush1.bf16.msra.mxu0 %v2809_v44  ;;  %3371 = vmatpush1.bf16.msra.mxu1 %v2811_v39  ;;  %v2873_v44 = vunpack.c.l.s8.bf16 %v2497_v16  ;;  %v2875_v39 = vunpack.c.l.s8.bf16 %v2499_v33 }
 0x5dc   :  { %3208 = vmatprep.subr.bf16.mxu0 %v2818_v46  ;;  %3372 = vmatprep.subr.bf16.mxu1 %v2820_v47  ;;  %v2882_v46 = vunpack.c.h.s8.bf16 %v2498_v10  ;;  %v2884_v47 = vunpack.c.h.s8.bf16 %v2500_v11 }
 0x5df   :  { %3209 = vmatpush1.bf16.msra.mxu0 %v2817_v62  ;;  %3373 = vmatpush1.bf16.msra.mxu1 %v2819_v9  ;;  %v2508_v62 = vld [vmem:[#allocation12 + $0x418] sm:$0xff]  ;;  %v2366_v9 = vmul.f32 0.01, %v5978_v27 }
 0x5e0   :  { %3210 = vmatprep.subr.bf16.mxu0 %v2826_v29  ;;  %3374 = vmatprep.subr.bf16.mxu1 %v2828_v54  ;;  %v2881_v29 = vunpack.c.h.s8.bf16 %v2497_v16  ;;  %v2883_v54 = vunpack.c.h.s8.bf16 %v2499_v33  ;;  %v2892_v13 = vunpack.c.l.s8.bf16 %v2508_v62 }
 0x5e3   :  { %3211 = vmatpush1.bf16.msra.mxu0 %v2825_v57  ;;  %3375 = vmatpush1.bf16.msra.mxu1 %v2827_v41  ;;  %v2505_v57 = vld [vmem:[#allocation12 + $0x400] sm:$0xff]  ;;  %v2371_v41 = vsel %vm2355_vm12, %v5976_v59, %v2363_v48  ;;  %v2516_v59 = vld [vmem:[#allocation12 + $0x458] sm:$0xff] }
 0x5e4   :  { %3212 = vmatprep.subr.bf16.mxu0 %v2834_v60  ;;  %3376 = vmatprep.subr.bf16.mxu1 %v2836_v19  ;;  %v2507_v60 = vld [vmem:[#allocation12 + $0x410] sm:$0xff]  ;;  %v2374_v19 = vsel %vm2358_vm13, %v5978_v27, %v2366_v9  ;;  %v2889_v26 = vunpack.c.l.s8.bf16 %v2505_v57  ;;  %v6014_v0 = vpack.c.bf16 %v2371_v41, %v2371_v41  ;;  %v2897_v27 = vunpack.c.h.s8.bf16 %v2505_v57  ;;  %v2537_v41 = vld [vmem:[#allocation12 + $0x500] sm:$0xff] }
 0x5e5   :  { %v2899_v56 = vunpack.c.h.s8.bf16 %v2507_v60 }
 0x5e7   :  { %3213 = vmatpush1.bf16.msra.mxu0 %v2833_v38  ;;  %3377 = vmatpush1.bf16.msra.mxu1 %v2835_v8  ;;  %v2891_v38 = vunpack.c.l.s8.bf16 %v2507_v60  ;;  %v6016_v8 = vpack.c.bf16 %v2374_v19, %v2374_v19  ;;  %v2539_v19 = vld [vmem:[#allocation12 + $0x510] sm:$0xff] }
 0x5e8   :  { %3214 = vmatprep.subr.bf16.mxu0 %v2842_v36  ;;  %3378 = vmatprep.subr.bf16.mxu1 %v2844_v18  ;;  %v2898_v36 = vunpack.c.h.s8.bf16 %v2506_v7  ;;  %v2900_v18 = vunpack.c.h.s8.bf16 %v2508_v62 }
 0x5eb   :  { %3215 = vmatpush1.bf16.msra.mxu0 %v2841_v49  ;;  %3379 = vmatpush1.bf16.msra.mxu1 %v2843_v2  ;;  %v2906_v49 = vunpack.c.l.s8.bf16 %v2514_v58  ;;  %v2513_v2 = vld [vmem:[#allocation12 + $0x440] sm:$0xff] }
 0x5ec   :  { %3216 = vmatprep.subr.bf16.mxu0 %v2850_v31  ;;  %3380 = vmatprep.subr.bf16.mxu1 %v2852_v30  ;;  %v2908_v31 = vunpack.c.l.s8.bf16 %v2516_v59  ;;  %v2515_v30 = vld [vmem:[#allocation12 + $0x450] sm:$0xff]  ;;  %v2905_v43 = vunpack.c.l.s8.bf16 %v2513_v2  ;;  %v2913_v45 = vunpack.c.h.s8.bf16 %v2513_v2  ;;  %v2545_v2 = vld [vmem:[#allocation12 + $0x540] sm:$0xff] }
 0x5ed   :  { %v2907_v5 = vunpack.c.l.s8.bf16 %v2515_v30  ;;  %v2915_v6 = vunpack.c.h.s8.bf16 %v2515_v30  ;;  %v2547_v30 = vld [vmem:[#allocation12 + $0x550] sm:$0xff] }
 0x5ef   :  { %3217 = vmatpush1.bf16.msra.mxu0 %v2849_v50  ;;  %3381 = vmatpush1.bf16.msra.mxu1 %v2851_v42  ;;  %v2914_v50 = vunpack.c.h.s8.bf16 %v2514_v58  ;;  %v2916_v42 = vunpack.c.h.s8.bf16 %v2516_v59  ;;  %v2546_v58 = vld [vmem:[#allocation12 + $0x548] sm:$0xff]  ;;  %v2548_v59 = vld [vmem:[#allocation12 + $0x558] sm:$0xff] }
 0x5f0   :  { %3218 = vmatprep.subr.bf16.mxu0 %v2858_v51  ;;  %3382 = vmatprep.subr.bf16.mxu1 %v2860_v22  ;;  %v2522_v51 = vld [vmem:[#allocation12 + $0x488] sm:$0xff]  ;;  %v2524_v22 = vld [vmem:[#allocation12 + $0x498] sm:$0xff] }
 0x5f3   :  { %3219 = vmatpush1.bf16.msra.mxu0 %v2857_v4  ;;  %3383 = vmatpush1.bf16.msra.mxu1 %v2859_v63  ;;  %v2922_v4 = vunpack.c.l.s8.bf16 %v2522_v51  ;;  %v2521_v63 = vld [vmem:[#allocation12 + $0x480] sm:$0xff] }
 0x5f4   :  { %3220 = vmatprep.subr.bf16.mxu0 %v2866_v53  ;;  %3384 = vmatprep.subr.bf16.mxu1 %v2868_v3  ;;  %v2924_v53 = vunpack.c.l.s8.bf16 %v2524_v22  ;;  %v2523_v3 = vld [vmem:[#allocation12 + $0x490] sm:$0xff]  ;;  %v2921_v10 = vunpack.c.l.s8.bf16 %v2521_v63  ;;  %v2929_v16 = vunpack.c.h.s8.bf16 %v2521_v63  ;;  %v2553_v63 = vld [vmem:[#allocation12 + $0x580] sm:$0xff] }
 0x5f5   :  { %v2923_v11 = vunpack.c.l.s8.bf16 %v2523_v3  ;;  %v2931_v33 = vunpack.c.h.s8.bf16 %v2523_v3  ;;  %v2555_v3 = vld [vmem:[#allocation12 + $0x590] sm:$0xff] }
 0x5f7   :  { %3221 = vmatpush1.bf16.msra.mxu0 %v2865_v37  ;;  %3385 = vmatpush1.bf16.msra.mxu1 %v2867_v12  ;;  %v2930_v37 = vunpack.c.h.s8.bf16 %v2522_v51  ;;  %v2932_v12 = vunpack.c.h.s8.bf16 %v2524_v22  ;;  %v2554_v51 = vld [vmem:[#allocation12 + $0x588] sm:$0xff]  ;;  %v2556_v22 = vld [vmem:[#allocation12 + $0x598] sm:$0xff] }
 0x5f8   :  { %3222 = vmatprep.subr.bf16.mxu0 %v2874_v14  ;;  %3386 = vmatprep.subr.bf16.mxu1 %v2876_v15  ;;  %v2530_v14 = vld [vmem:[#allocation12 + $0x4c8] sm:$0xff]  ;;  %v2532_v15 = vld [vmem:[#allocation12 + $0x4d8] sm:$0xff] }
 0x5f9   :  { %v2946_v62 = vunpack.c.h.s8.bf16 %v2530_v14  ;;  %v2948_v9 = vunpack.c.h.s8.bf16 %v2532_v15 }
 0x5fb   :  { %3223 = vmatpush1.bf16.msra.mxu0 %v2873_v44  ;;  %3387 = vmatpush1.bf16.msra.mxu1 %v2875_v39  ;;  %v2938_v44 = vunpack.c.l.s8.bf16 %v2530_v14  ;;  %v2529_v39 = vld [vmem:[#allocation12 + $0x4c0] sm:$0xff]  ;;  %v2562_v14 = vld [vmem:[#allocation12 + $0x5c8] sm:$0xff] }
 0x5fc   :  { %3224 = vmatprep.subr.bf16.mxu0 %v2882_v46  ;;  %3388 = vmatprep.subr.bf16.mxu1 %v2884_v47  ;;  %v2940_v46 = vunpack.c.l.s8.bf16 %v2532_v15  ;;  %v2531_v47 = vld [vmem:[#allocation12 + $0x4d0] sm:$0xff]  ;;  %v2937_v48 = vunpack.c.l.s8.bf16 %v2529_v39  ;;  %v2564_v15 = vld [vmem:[#allocation12 + $0x5d8] sm:$0xff] }
 0x5fd   :  { %v2939_v7 = vunpack.c.l.s8.bf16 %v2531_v47 }
 0x5ff   :  { %3225 = vmatpush1.bf16.msra.mxu0 %v2881_v29  ;;  %3389 = vmatpush1.bf16.msra.mxu1 %v2883_v54  ;;  %v2538_v29 = vld [vmem:[#allocation12 + $0x508] sm:$0xff]  ;;  %v2540_v54 = vld [vmem:[#allocation12 + $0x518] sm:$0xff] }
 0x600   :  { %3235 = vmatprep.subr.bf16.mxu0 %v2890_v20  ;;  %3399 = vmatprep.subr.bf16.mxu1 %v2892_v13  ;;  %v2945_v20 = vunpack.c.h.s8.bf16 %v2529_v39  ;;  %v2947_v13 = vunpack.c.h.s8.bf16 %v2531_v47  ;;  %v2954_v57 = vunpack.c.l.s8.bf16 %v2538_v29  ;;  %v2956_v60 = vunpack.c.l.s8.bf16 %v2540_v54  ;;  %v2561_v39 = vld [vmem:[#allocation12 + $0x5c0] sm:$0xff]  ;;  %v2563_v47 = vld [vmem:[#allocation12 + $0x5d0] sm:$0xff] }
 0x602   :  { %3227 = vmatmul.mubr.bf16.vlgmr.msra.gmra.mrb[16].mxu0 %v6014_v0  ;;  %3391 = vmatmul.mubr.bf16.vlgmr.msra.gmra.mrb[16].mxu1 %v6014_v0 }
 0x603   :  { %3236 = vmatpush1.bf16.msra.mxu0 %v2889_v26  ;;  %3267 = vmatprep.mubr.bf16.mxu0 %v6016_v8  ;;  %v2953_v26 = vunpack.c.l.s8.bf16 %v2537_v41 }
 0x604   :  { %3400 = vmatpush1.bf16.msra.mxu1 %v2891_v38  ;;  %3431 = vmatprep.mubr.bf16.mxu1 %v6016_v8  ;;  %v2955_v38 = vunpack.c.l.s8.bf16 %v2539_v19 }
 0x605   :  { %3237 = vmatprep.subr.bf16.mxu0 %v2898_v36  ;;  %3401 = vmatprep.subr.bf16.mxu1 %v2900_v18  ;;  %v2962_v36 = vunpack.c.h.s8.bf16 %v2538_v29  ;;  %v2964_v18 = vunpack.c.h.s8.bf16 %v2540_v54  ;;  %v2365_v29 = vmul.f32 0.01, %v5980_v32  ;;  %v2570_v54 = vld [vmem:[#allocation12 + $0x608] sm:$0xff] }
 0x607   :  { %3238 = vmatpush1.bf16.msra.mxu0 %v2897_v27  ;;  %v2961_v27 = vunpack.c.h.s8.bf16 %v2537_v41  ;;  %v3011_v41 = vunpack.c.h.s8.bf16 %v2563_v47 }
 0x608   :  { %3402 = vmatpush1.bf16.msra.mxu1 %v2899_v56  ;;  %3239 = vmatprep.subr.bf16.mxu0 %v2906_v49  ;;  %v2963_v56 = vunpack.c.h.s8.bf16 %v2539_v19  ;;  %v2970_v49 = vunpack.c.l.s8.bf16 %v2546_v58  ;;  %v2569_v19 = vld [vmem:[#allocation12 + $0x600] sm:$0xff] }
 0x609   :  { %3403 = vmatprep.subr.bf16.mxu1 %v2908_v31  ;;  %v2972_v31 = vunpack.c.l.s8.bf16 %v2548_v59 }
 0x60b   :  { %3240 = vmatpush1.bf16.msra.mxu0 %v2905_v43  ;;  %v2969_v43 = vunpack.c.l.s8.bf16 %v2545_v2 }
 0x60c   :  { %3404 = vmatpush1.bf16.msra.mxu1 %v2907_v5  ;;  %3241 = vmatprep.subr.bf16.mxu0 %v2914_v50  ;;  %v2971_v5 = vunpack.c.l.s8.bf16 %v2547_v30  ;;  %v2978_v50 = vunpack.c.h.s8.bf16 %v2546_v58 }
 0x60d   :  { %3405 = vmatprep.subr.bf16.mxu1 %v2916_v42  ;;  %v2980_v42 = vunpack.c.h.s8.bf16 %v2548_v59 }
 0x60f   :  { %3242 = vmatpush1.bf16.msra.mxu0 %v2913_v45  ;;  %v2977_v45 = vunpack.c.h.s8.bf16 %v2545_v2 }
 0x610   :  { %3406 = vmatpush1.bf16.msra.mxu1 %v2915_v6  ;;  %3243 = vmatprep.subr.bf16.mxu0 %v2922_v4  ;;  %v2979_v6 = vunpack.c.h.s8.bf16 %v2547_v30  ;;  %v2986_v4 = vunpack.c.l.s8.bf16 %v2554_v51  ;;  %v3025_v30 = vunpack.c.h.s8.bf16 %v2569_v19 }
 0x611   :  { %3407 = vmatprep.subr.bf16.mxu1 %v2924_v53  ;;  %v2988_v53 = vunpack.c.l.s8.bf16 %v2556_v22 }
 0x613   :  { %3244 = vmatpush1.bf16.msra.mxu0 %v2921_v10  ;;  %v2985_v10 = vunpack.c.l.s8.bf16 %v2553_v63 }
 0x614   :  { %3408 = vmatpush1.bf16.msra.mxu1 %v2923_v11  ;;  %3245 = vmatprep.subr.bf16.mxu0 %v2930_v37  ;;  %v2987_v11 = vunpack.c.l.s8.bf16 %v2555_v3  ;;  %v2994_v37 = vunpack.c.h.s8.bf16 %v2554_v51 }
 0x615   :  { %3409 = vmatprep.subr.bf16.mxu1 %v2932_v12  ;;  %v2996_v12 = vunpack.c.h.s8.bf16 %v2556_v22 }
 0x617   :  { %3246 = vmatpush1.bf16.msra.mxu0 %v2929_v16  ;;  %v2993_v16 = vunpack.c.h.s8.bf16 %v2553_v63  ;;  %v2588_v63 = vld [vmem:[#allocation12 + $0x698] sm:$0xff] }
 0x618   :  { %3410 = vmatpush1.bf16.msra.mxu1 %v2931_v33  ;;  %3247 = vmatprep.subr.bf16.mxu0 %v2938_v44  ;;  %v2995_v33 = vunpack.c.h.s8.bf16 %v2555_v3  ;;  %v3002_v44 = vunpack.c.l.s8.bf16 %v2562_v14 }
 0x619   :  { %3411 = vmatprep.subr.bf16.mxu1 %v2940_v46  ;;  %v3004_v46 = vunpack.c.l.s8.bf16 %v2564_v15 }
 0x61b   :  { %3248 = vmatpush1.bf16.msra.mxu0 %v2937_v48  ;;  %v3001_v48 = vunpack.c.l.s8.bf16 %v2561_v39 }
 0x61c   :  { %3412 = vmatpush1.bf16.msra.mxu1 %v2939_v7  ;;  %3249 = vmatprep.subr.bf16.mxu0 %v2946_v62  ;;  %v3003_v7 = vunpack.c.l.s8.bf16 %v2563_v47  ;;  %v3010_v62 = vunpack.c.h.s8.bf16 %v2562_v14 }
 0x61d   :  { %3413 = vmatprep.subr.bf16.mxu1 %v2948_v9  ;;  %v3012_v9 = vunpack.c.h.s8.bf16 %v2564_v15 }
 0x61f   :  { %3250 = vmatpush1.bf16.msra.mxu0 %v2945_v20  ;;  %v2572_v20 = vld [vmem:[#allocation12 + $0x618] sm:$0xff] }
 0x620   :  { %3414 = vmatpush1.bf16.msra.mxu1 %v2947_v13  ;;  %3251 = vmatprep.subr.bf16.mxu0 %v2954_v57  ;;  %v3009_v13 = vunpack.c.h.s8.bf16 %v2561_v39  ;;  %v2368_v57 = vmul.f32 0.01, %v5998_v17  ;;  %v2596_v39 = vld [vmem:[#allocation12 + $0x6d8] sm:$0xff] }
 0x621   :  { %3415 = vmatprep.subr.bf16.mxu1 %v2956_v60  ;;  %v3018_v60 = vunpack.c.l.s8.bf16 %v2570_v54 }
 0x622   :  { %v2376_v58 = vsel %vm2360_vm15, %v5998_v17, %v2368_v57  ;;  %v2602_v57 = vld [vmem:[#allocation12 + $0x708] sm:$0xff] }
 0x623   :  { %3252 = vmatpush1.bf16.msra.mxu0 %v2953_v26  ;;  %v2373_v26 = vsel %vm2357_vm14, %v5980_v32, %v2365_v29  ;;  %v6031_v2 = vpack.c.bf16 %v2376_v58, %v2376_v58  ;;  %v2580_v32 = vld [vmem:[#allocation12 + $0x658] sm:$0xff] }
 0x624   :  { %3416 = vmatpush1.bf16.msra.mxu1 %v2955_v38  ;;  %3253 = vmatprep.subr.bf16.mxu0 %v2962_v36  ;;  %v3020_v38 = vunpack.c.l.s8.bf16 %v2572_v20  ;;  %v2571_v36 = vld [vmem:[#allocation12 + $0x610] sm:$0xff]  ;;  %v6028_v59 = vpack.c.bf16 %v2373_v26, %v2373_v26  ;;  %v3082_v26 = vunpack.c.l.s8.bf16 %v2602_v57 }
 0x625   :  { %3417 = vmatprep.subr.bf16.mxu1 %v2964_v18  ;;  %v3017_v18 = vunpack.c.l.s8.bf16 %v2569_v19  ;;  %v3027_v17 = vunpack.c.h.s8.bf16 %v2571_v36 }
 0x627   :  { %3254 = vmatpush1.bf16.msra.mxu0 %v2961_v27  ;;  %v3019_v27 = vunpack.c.l.s8.bf16 %v2571_v36 }
 0x628   :  { %3418 = vmatpush1.bf16.msra.mxu1 %v2963_v56  ;;  %3255 = vmatprep.subr.bf16.mxu0 %v2970_v49  ;;  %v3026_v56 = vunpack.c.h.s8.bf16 %v2570_v54  ;;  %v2578_v49 = vld [vmem:[#allocation12 + $0x648] sm:$0xff] }
 0x629   :  { %3419 = vmatprep.subr.bf16.mxu1 %v2972_v31  ;;  %v3028_v31 = vunpack.c.h.s8.bf16 %v2572_v20 }
 0x62b   :  { %3256 = vmatpush1.bf16.msra.mxu0 %v2969_v43  ;;  %v3034_v43 = vunpack.c.l.s8.bf16 %v2578_v49 }
 0x62c   :  { %3420 = vmatpush1.bf16.msra.mxu1 %v2971_v5  ;;  %3257 = vmatprep.subr.bf16.mxu0 %v2978_v50  ;;  %v2577_v5 = vld [vmem:[#allocation12 + $0x640] sm:$0xff]  ;;  %v3036_v50 = vunpack.c.l.s8.bf16 %v2580_v32 }
 0x62d   :  { %3421 = vmatprep.subr.bf16.mxu1 %v2980_v42  ;;  %v2579_v42 = vld [vmem:[#allocation12 + $0x650] sm:$0xff]  ;;  %v3033_v51 = vunpack.c.l.s8.bf16 %v2577_v5 }
 0x62e   :  { %v3035_v22 = vunpack.c.l.s8.bf16 %v2579_v42  ;;  %v3043_v3 = vunpack.c.h.s8.bf16 %v2579_v42  ;;  %v2611_v42 = vld [vmem:[#allocation12 + $0x750] sm:$0xff] }
 0x62f   :  { %3258 = vmatpush1.bf16.msra.mxu0 %v2977_v45  ;;  %v3042_v45 = vunpack.c.h.s8.bf16 %v2578_v49 }
 0x630   :  { %3422 = vmatpush1.bf16.msra.mxu1 %v2979_v6  ;;  %3259 = vmatprep.subr.bf16.mxu0 %v2986_v4  ;;  %v3044_v6 = vunpack.c.h.s8.bf16 %v2580_v32  ;;  %v2586_v4 = vld [vmem:[#allocation12 + $0x688] sm:$0xff]  ;;  %v2612_v32 = vld [vmem:[#allocation12 + $0x758] sm:$0xff] }
 0x631   :  { %3423 = vmatprep.subr.bf16.mxu1 %v2988_v53  ;;  %v3041_v53 = vunpack.c.h.s8.bf16 %v2577_v5  ;;  %v2609_v5 = vld [vmem:[#allocation12 + $0x740] sm:$0xff] }
 0x633   :  { %3260 = vmatpush1.bf16.msra.mxu0 %v2985_v10  ;;  %v3050_v10 = vunpack.c.l.s8.bf16 %v2586_v4 }
 0x634   :  { %3424 = vmatpush1.bf16.msra.mxu1 %v2987_v11  ;;  %3261 = vmatprep.subr.bf16.mxu0 %v2994_v37  ;;  %v2585_v11 = vld [vmem:[#allocation12 + $0x680] sm:$0xff]  ;;  %v3052_v37 = vunpack.c.l.s8.bf16 %v2588_v63 }
 0x635   :  { %3425 = vmatprep.subr.bf16.mxu1 %v2996_v12  ;;  %v2587_v12 = vld [vmem:[#allocation12 + $0x690] sm:$0xff]  ;;  %v3049_v14 = vunpack.c.l.s8.bf16 %v2585_v11 }
 0x636   :  { %v3051_v15 = vunpack.c.l.s8.bf16 %v2587_v12  ;;  %v3059_v47 = vunpack.c.h.s8.bf16 %v2587_v12  ;;  %v2619_v12 = vld [vmem:[#allocation12 + $0x790] sm:$0xff] }
 0x637   :  { %3262 = vmatpush1.bf16.msra.mxu0 %v2993_v16  ;;  %v3058_v16 = vunpack.c.h.s8.bf16 %v2586_v4  ;;  %v2618_v4 = vld [vmem:[#allocation12 + $0x788] sm:$0xff] }
 0x638   :  { %3426 = vmatpush1.bf16.msra.mxu1 %v2995_v33  ;;  %3263 = vmatprep.subr.bf16.mxu0 %v3002_v44  ;;  %v3060_v33 = vunpack.c.h.s8.bf16 %v2588_v63  ;;  %v2594_v44 = vld [vmem:[#allocation12 + $0x6c8] sm:$0xff]  ;;  %v2620_v63 = vld [vmem:[#allocation12 + $0x798] sm:$0xff] }
 0x639   :  { %3427 = vmatprep.subr.bf16.mxu1 %v3004_v46  ;;  %v3057_v46 = vunpack.c.h.s8.bf16 %v2585_v11  ;;  %v3074_v20 = vunpack.c.h.s8.bf16 %v2594_v44  ;;  %v2617_v11 = vld [vmem:[#allocation12 + $0x780] sm:$0xff] }
 0x63b   :  { %3264 = vmatpush1.bf16.msra.mxu0 %v3001_v48  ;;  %v3066_v48 = vunpack.c.l.s8.bf16 %v2594_v44  ;;  %v2626_v44 = vld [vmem:[#allocation12 + $0x7c8] sm:$0xff] }
 0x63c   :  { %3428 = vmatpush1.bf16.msra.mxu1 %v3003_v7  ;;  %3265 = vmatprep.subr.bf16.mxu0 %v3010_v62  ;;  %v2593_v7 = vld [vmem:[#allocation12 + $0x6c0] sm:$0xff]  ;;  %v3068_v62 = vunpack.c.l.s8.bf16 %v2596_v39 }
 0x63d   :  { %3429 = vmatprep.subr.bf16.mxu1 %v3012_v9  ;;  %v2595_v9 = vld [vmem:[#allocation12 + $0x6d0] sm:$0xff]  ;;  %v3065_v29 = vunpack.c.l.s8.bf16 %v2593_v7 }
 0x63e   :  { %v3067_v54 = vunpack.c.l.s8.bf16 %v2595_v9  ;;  %v3075_v19 = vunpack.c.h.s8.bf16 %v2595_v9  ;;  %v2627_v9 = vld [vmem:[#allocation12 + $0x7d0] sm:$0xff] }
 0x63f   :  { %3266 = vmatpush1.bf16.msra.mxu0 %v3009_v13  ;;  %v3076_v13 = vunpack.c.h.s8.bf16 %v2596_v39  ;;  %v2628_v39 = vld [vmem:[#allocation12 + $0x7d8] sm:$0xff] }
 0x640   :  { %3430 = vmatpush1.bf16.msra.mxu1 %v3011_v41  ;;  %3276 = vmatprep.subr.bf16.mxu0 %v3018_v60  ;;  %v2604_v41 = vld [vmem:[#allocation12 + $0x718] sm:$0xff]  ;;  %v3073_v60 = vunpack.c.h.s8.bf16 %v2593_v7  ;;  %v2625_v7 = vld [vmem:[#allocation12 + $0x7c0] sm:$0xff] }
 0x641   :  { %3440 = vmatprep.subr.bf16.mxu1 %v3020_v38  ;;  %v2601_v38 = vld [vmem:[#allocation12 + $0x700] sm:$0xff]  ;;  %v3084_v36 = vunpack.c.l.s8.bf16 %v2604_v41  ;;  %v3092_v49 = vunpack.c.h.s8.bf16 %v2604_v41  ;;  %v2382_v41 = vld [vmem:[#allocation12 + $0x28] sm:$0xff] }
 0x642   :  { %3268 = vmatmul.mubr.bf16.vlgmr.msra.gmra.mrb[16].mxu0 %v6028_v59  ;;  %v3081_v58 = vunpack.c.l.s8.bf16 %v2601_v38 }
 0x643   :  { %3432 = vmatmul.mubr.bf16.vlgmr.msra.gmra.mrb[16].mxu1 %v6028_v59  ;;  %3277 = vmatpush1.bf16.msra.mxu0 %v3017_v18  ;;  %v2603_v18 = vld [vmem:[#allocation12 + $0x710] sm:$0xff] }
 0x644   :  { %3308 = vmatprep.mubr.bf16.mxu0 %v6031_v2  ;;  %3441 = vmatpush1.bf16.msra.mxu1 %v3019_v27  ;;  %v3083_v27 = vunpack.c.l.s8.bf16 %v2603_v18 }
 0x645   :  { %3472 = vmatprep.mubr.bf16.mxu1 %v6031_v2  ;;  %3278 = vmatprep.subr.bf16.mxu0 %v3026_v56  ;;  %v3090_v56 = vunpack.c.h.s8.bf16 %v2602_v57  ;;  %v2367_v57 = vmul.f32 0.01, %v6006_v28 }
 0x646   :  { %3442 = vmatprep.subr.bf16.mxu1 %v3028_v31  ;;  %v2610_v31 = vld [vmem:[#allocation12 + $0x748] sm:$0xff] }
 0x647   :  { %3279 = vmatpush1.bf16.msra.mxu0 %v3025_v30  ;;  %v3089_v30 = vunpack.c.h.s8.bf16 %v2601_v38  ;;  %v2638_v38 = vunpack.c.l.s8.bf16 %v2382_v41 }
 0x648   :  { %3443 = vmatpush1.bf16.msra.mxu1 %v3027_v17  ;;  %3280 = vmatprep.subr.bf16.mxu0 %v3034_v43  ;;  %v3091_v17 = vunpack.c.h.s8.bf16 %v2603_v18  ;;  %v3098_v43 = vunpack.c.l.s8.bf16 %v2610_v31  ;;  %v2375_v18 = vsel %vm2359_vm0, %v6006_v28, %v2367_v57 }
 0x649   :  { %3444 = vmatprep.subr.bf16.mxu1 %v3036_v50  ;;  %v3100_v50 = vunpack.c.l.s8.bf16 %v2612_v32 }
 0x64b   :  { %3281 = vmatpush1.bf16.msra.mxu0 %v3033_v51  ;;  %v3097_v51 = vunpack.c.l.s8.bf16 %v2609_v5 }
 0x64c   :  { %3445 = vmatpush1.bf16.msra.mxu1 %v3035_v22  ;;  %3282 = vmatprep.subr.bf16.mxu0 %v3042_v45  ;;  %v3099_v22 = vunpack.c.l.s8.bf16 %v2611_v42  ;;  %v3106_v45 = vunpack.c.h.s8.bf16 %v2610_v31 }
 0x64d   :  { %3446 = vmatprep.subr.bf16.mxu1 %v3044_v6  ;;  %v3108_v6 = vunpack.c.h.s8.bf16 %v2612_v32  ;;  %v2646_v32 = vunpack.c.h.s8.bf16 %v2382_v41  ;;  %v2414_v41 = vld [vmem:[#allocation12 + $0x128] sm:$0xff] }
 0x64f   :  { %3283 = vmatpush1.bf16.msra.mxu0 %v3041_v53  ;;  %v3105_v53 = vunpack.c.h.s8.bf16 %v2609_v5 }
 0x650   :  { %3447 = vmatpush1.bf16.msra.mxu1 %v3043_v3  ;;  %3284 = vmatprep.subr.bf16.mxu0 %v3050_v10  ;;  %v3107_v3 = vunpack.c.h.s8.bf16 %v2611_v42  ;;  %v3114_v10 = vunpack.c.l.s8.bf16 %v2618_v4  ;;  %v2389_v42 = vld [vmem:[#allocation12 + $0x60] sm:$0xff] }
 0x651   :  { %3448 = vmatprep.subr.bf16.mxu1 %v3052_v37  ;;  %v3116_v37 = vunpack.c.l.s8.bf16 %v2620_v63 }
 0x653   :  { %3285 = vmatpush1.bf16.msra.mxu0 %v3049_v14  ;;  %v3113_v14 = vunpack.c.l.s8.bf16 %v2617_v11 }
 0x654   :  { %3449 = vmatpush1.bf16.msra.mxu1 %v3051_v15  ;;  %3286 = vmatprep.subr.bf16.mxu0 %v3058_v16  ;;  %v3115_v15 = vunpack.c.l.s8.bf16 %v2619_v12  ;;  %v3122_v16 = vunpack.c.h.s8.bf16 %v2618_v4 }
 0x655   :  { %3450 = vmatprep.subr.bf16.mxu1 %v3060_v33  ;;  %v3124_v33 = vunpack.c.h.s8.bf16 %v2620_v63 }
 0x657   :  { %3287 = vmatpush1.bf16.msra.mxu0 %v3057_v46  ;;  %v3121_v46 = vunpack.c.h.s8.bf16 %v2617_v11 }
 0x658   :  { %3451 = vmatpush1.bf16.msra.mxu1 %v3059_v47  ;;  %3288 = vmatprep.subr.bf16.mxu0 %v3066_v48  ;;  %v3123_v47 = vunpack.c.h.s8.bf16 %v2619_v12  ;;  %v3130_v48 = vunpack.c.l.s8.bf16 %v2626_v44 }
 0x659   :  { %3452 = vmatprep.subr.bf16.mxu1 %v3068_v62  ;;  %v3132_v62 = vunpack.c.l.s8.bf16 %v2628_v39 }
 0x65b   :  { %3289 = vmatpush1.bf16.msra.mxu0 %v3065_v29  ;;  %v3129_v29 = vunpack.c.l.s8.bf16 %v2625_v7 }
 0x65c   :  { %3453 = vmatpush1.bf16.msra.mxu1 %v3067_v54  ;;  %3290 = vmatprep.subr.bf16.mxu0 %v3074_v20  ;;  %v3131_v54 = vunpack.c.l.s8.bf16 %v2627_v9  ;;  %v3138_v20 = vunpack.c.h.s8.bf16 %v2626_v44 }
 0x65d   :  { %3454 = vmatprep.subr.bf16.mxu1 %v3076_v13  ;;  %v3140_v13 = vunpack.c.h.s8.bf16 %v2628_v39  ;;  %v2406_v39 = vld [vmem:[#allocation12 + $0xe8] sm:$0xff] }
 0x65f   :  { %3291 = vmatpush1.bf16.msra.mxu0 %v3073_v60  ;;  %v2384_v60 = vld [vmem:[#allocation12 + $0x38] sm:$0xff] }
 0x660   :  { %3455 = vmatpush1.bf16.msra.mxu1 %v3075_v19  ;;  %3292 = vmatprep.subr.bf16.mxu0 %v3082_v26  ;;  %v3137_v19 = vunpack.c.h.s8.bf16 %v2625_v7  ;;  %v3139_v26 = vunpack.c.h.s8.bf16 %v2627_v9  ;;  %v2686_v7 = vunpack.c.l.s8.bf16 %v2406_v39 }
 0x661   :  { %3456 = vmatprep.subr.bf16.mxu1 %v3084_v36  ;;  %v2381_v36 = vld [vmem:[#allocation12 + $0x20] sm:$0xff] }
 0x662   :  { %v2645_v28 = vunpack.c.h.s8.bf16 %v2381_v36 }
 0x663   :  { %3293 = vmatpush1.bf16.msra.mxu0 %v3081_v58  ;;  %v2640_v58 = vunpack.c.l.s8.bf16 %v2384_v60 }
 0x664   :  { %3457 = vmatpush1.bf16.msra.mxu1 %v3083_v27  ;;  %3294 = vmatprep.subr.bf16.mxu0 %v3090_v56  ;;  %v2383_v27 = vld [vmem:[#allocation12 + $0x30] sm:$0xff]  ;;  %v2637_v56 = vunpack.c.l.s8.bf16 %v2381_v36  ;;  %v2413_v36 = vld [vmem:[#allocation12 + $0x120] sm:$0xff] }
 0x665   :  { %3458 = vmatprep.subr.bf16.mxu1 %v3092_v49  ;;  %v6039_v49 = vpack.c.bf16 %v2375_v18, %v2375_v18  ;;  %v2639_v31 = vunpack.c.l.s8.bf16 %v2383_v27  ;;  %v2647_v5 = vunpack.c.h.s8.bf16 %v2383_v27  ;;  %v2701_v27 = vunpack.c.l.s8.bf16 %v2413_v36 }
 0x667   :  { %3295 = vmatpush1.bf16.msra.mxu0 %v3089_v30  ;;  %v2390_v30 = vld [vmem:[#allocation12 + $0x68] sm:$0xff] }
 0x668   :  { %3459 = vmatpush1.bf16.msra.mxu1 %v3091_v17  ;;  %3296 = vmatprep.subr.bf16.mxu0 %v3098_v43  ;;  %v2648_v17 = vunpack.c.h.s8.bf16 %v2384_v60  ;;  %v2392_v43 = vld [vmem:[#allocation12 + $0x78] sm:$0xff]  ;;  %v2662_v4 = vunpack.c.h.s8.bf16 %v2390_v30 }
 0x669   :  { %3460 = vmatprep.subr.bf16.mxu1 %v3100_v50  ;;  %v2654_v50 = vunpack.c.l.s8.bf16 %v2390_v30  ;;  %v2664_v63 = vunpack.c.h.s8.bf16 %v2392_v43  ;;  %v2416_v60 = vld [vmem:[#allocation12 + $0x138] sm:$0xff]  ;;  %v2422_v30 = vld [vmem:[#allocation12 + $0x168] sm:$0xff] }
 0x66a   :  { %v2704_v18 = vunpack.c.l.s8.bf16 %v2416_v60 }
 0x66b   :  { %3297 = vmatpush1.bf16.msra.mxu0 %v3097_v51  ;;  %v2656_v51 = vunpack.c.l.s8.bf16 %v2392_v43  ;;  %v2709_v43 = vunpack.c.h.s8.bf16 %v2413_v36 }
 0x66c   :  { %3461 = vmatpush1.bf16.msra.mxu1 %v3099_v22  ;;  %3298 = vmatprep.subr.bf16.mxu0 %v3106_v45  ;;  %v2391_v22 = vld [vmem:[#allocation12 + $0x70] sm:$0xff]  ;;  %v2653_v45 = vunpack.c.l.s8.bf16 %v2389_v42 }
 0x66d   :  { %3462 = vmatprep.subr.bf16.mxu1 %v3108_v6  ;;  %v2655_v6 = vunpack.c.l.s8.bf16 %v2391_v22  ;;  %v2663_v11 = vunpack.c.h.s8.bf16 %v2391_v22 }
 0x66f   :  { %3299 = vmatpush1.bf16.msra.mxu0 %v3105_v53  ;;  %v2398_v53 = vld [vmem:[#allocation12 + $0xa8] sm:$0xff] }
 0x670   :  { %3463 = vmatpush1.bf16.msra.mxu1 %v3107_v3  ;;  %3300 = vmatprep.subr.bf16.mxu0 %v3114_v10  ;;  %v2400_v3 = vld [vmem:[#allocation12 + $0xb8] sm:$0xff]  ;;  %v2661_v10 = vunpack.c.h.s8.bf16 %v2389_v42 }
 0x671   :  { %3464 = vmatprep.subr.bf16.mxu1 %v3116_v37  ;;  %v2397_v37 = vld [vmem:[#allocation12 + $0xa0] sm:$0xff]  ;;  %v2672_v12 = vunpack.c.l.s8.bf16 %v2400_v3  ;;  %v2680_v44 = vunpack.c.h.s8.bf16 %v2400_v3 }
 0x673   :  { %3301 = vmatpush1.bf16.msra.mxu0 %v3113_v14  ;;  %v2399_v14 = vld [vmem:[#allocation12 + $0xb0] sm:$0xff] }
 0x674   :  { %3465 = vmatpush1.bf16.msra.mxu1 %v3115_v15  ;;  %3302 = vmatprep.subr.bf16.mxu0 %v3122_v16  ;;  %v2669_v15 = vunpack.c.l.s8.bf16 %v2397_v37  ;;  %v2671_v16 = vunpack.c.l.s8.bf16 %v2399_v14 }
 0x675   :  { %3466 = vmatprep.subr.bf16.mxu1 %v3124_v33  ;;  %v2678_v33 = vunpack.c.h.s8.bf16 %v2398_v53 }
 0x677   :  { %3303 = vmatpush1.bf16.msra.mxu0 %v3121_v46  ;;  %v2408_v46 = vld [vmem:[#allocation12 + $0xf8] sm:$0xff] }
 0x678   :  { %3467 = vmatpush1.bf16.msra.mxu1 %v3123_v47  ;;  %3304 = vmatprep.subr.bf16.mxu0 %v3130_v48  ;;  %v2677_v47 = vunpack.c.h.s8.bf16 %v2397_v37  ;;  %v2679_v48 = vunpack.c.h.s8.bf16 %v2399_v14  ;;  %v2688_v9 = vunpack.c.l.s8.bf16 %v2408_v46  ;;  %v2696_v57 = vunpack.c.h.s8.bf16 %v2408_v46 }
 0x679   :  { %3468 = vmatprep.subr.bf16.mxu1 %v3132_v62  ;;  %v2405_v62 = vld [vmem:[#allocation12 + $0xe0] sm:$0xff] }
 0x67b   :  { %3305 = vmatpush1.bf16.msra.mxu0 %v3129_v29  ;;  %v2407_v29 = vld [vmem:[#allocation12 + $0xf0] sm:$0xff] }
 0x67c   :  { %3469 = vmatpush1.bf16.msra.mxu1 %v3131_v54  ;;  %3306 = vmatprep.subr.bf16.mxu0 %v3138_v20  ;;  %v2685_v54 = vunpack.c.l.s8.bf16 %v2405_v62  ;;  %v2687_v20 = vunpack.c.l.s8.bf16 %v2407_v29 }
 0x67d   :  { %3470 = vmatprep.subr.bf16.mxu1 %v3140_v13  ;;  %v2694_v13 = vunpack.c.h.s8.bf16 %v2406_v39  ;;  %v2440_v39 = vld [vmem:[#allocation12 + $0x1f8] sm:$0xff] }
 0x67f   :  { %3307 = vmatpush1.bf16.msra.mxu0 %v3137_v19  ;;  %v2693_v19 = vunpack.c.h.s8.bf16 %v2405_v62  ;;  %v2752_v62 = vunpack.c.l.s8.bf16 %v2440_v39 }
 0x680   :  { %3471 = vmatpush1.bf16.msra.mxu1 %v3139_v26  ;;  %3481 = vmatprep.subr.bf16.mxu0 %v2638_v38  ;;  %v2695_v26 = vunpack.c.h.s8.bf16 %v2407_v29  ;;  %v2702_v38 = vunpack.c.l.s8.bf16 %v2414_v41 }
 0x681   :  { %3645 = vmatprep.subr.bf16.mxu1 %v2640_v58  ;;  %v2415_v58 = vld [vmem:[#allocation12 + $0x130] sm:$0xff] }
 0x682   :  { %3309 = vmatmul.mubr.bf16.vlgmr.msra.gmra.mrb[16].mxu0 %v6039_v49 }
 0x683   :  { %3473 = vmatmul.mubr.bf16.vlgmr.msra.gmra.mrb[16].mxu1 %v6039_v49  ;;  %3482 = vmatpush1.bf16.msra.mxu0 %v2637_v56  ;;  %v2703_v56 = vunpack.c.l.s8.bf16 %v2415_v58 }
 0x684   :  { %3513 = vmatprep.mubr.bf16.mxu0 %v5984_v52  ;;  %3646 = vmatpush1.bf16.msra.mxu1 %v2639_v31  ;;  %v2710_v31 = vunpack.c.h.s8.bf16 %v2414_v41  ;;  %v2448_v41 = vld [vmem:[#allocation12 + $0x238] sm:$0xff] }
 0x685   :  { %3677 = vmatprep.mubr.bf16.mxu1 %v5984_v52  ;;  %3483 = vmatprep.subr.bf16.mxu0 %v2646_v32  ;;  %v2670_v52 = vunpack.c.l.s8.bf16 %v2398_v53  ;;  %v2712_v32 = vunpack.c.h.s8.bf16 %v2416_v60  ;;  %v2432_v53 = vld [vmem:[#allocation12 + $0x1b8] sm:$0xff]  ;;  %v2768_v36 = vunpack.c.l.s8.bf16 %v2448_v41 }
 0x686   :  { %3647 = vmatprep.subr.bf16.mxu1 %v2648_v17  ;;  %v2424_v17 = vld [vmem:[#allocation12 + $0x178] sm:$0xff]  ;;  %v2736_v37 = vunpack.c.l.s8.bf16 %v2432_v53 }
 0x687   :  { %3484 = vmatpush1.bf16.msra.mxu0 %v2645_v28  ;;  %v2711_v28 = vunpack.c.h.s8.bf16 %v2415_v58  ;;  %v2720_v42 = vunpack.c.l.s8.bf16 %v2424_v17 }
 0x688   :  { %3648 = vmatpush1.bf16.msra.mxu1 %v2647_v5  ;;  %3485 = vmatprep.subr.bf16.mxu0 %v2654_v50  ;;  %v2718_v5 = vunpack.c.l.s8.bf16 %v2422_v30  ;;  %v2421_v50 = vld [vmem:[#allocation12 + $0x160] sm:$0xff] }
 0x689   :  { %3649 = vmatprep.subr.bf16.mxu1 %v2656_v51  ;;  %v2423_v51 = vld [vmem:[#allocation12 + $0x170] sm:$0xff]  ;;  %v2717_v22 = vunpack.c.l.s8.bf16 %v2421_v50  ;;  %v2725_v3 = vunpack.c.h.s8.bf16 %v2421_v50 }
 0x68b   :  { %3486 = vmatpush1.bf16.msra.mxu0 %v2653_v45  ;;  %v2719_v45 = vunpack.c.l.s8.bf16 %v2423_v51 }
 0x68c   :  { %3650 = vmatpush1.bf16.msra.mxu1 %v2655_v6  ;;  %3487 = vmatprep.subr.bf16.mxu0 %v2662_v4  ;;  %v2726_v6 = vunpack.c.h.s8.bf16 %v2422_v30  ;;  %v2728_v4 = vunpack.c.h.s8.bf16 %v2424_v17  ;;  %v2456_v30 = vld [vmem:[#allocation12 + $0x278] sm:$0xff] }
 0x68d   :  { %3651 = vmatprep.subr.bf16.mxu1 %v2664_v63  ;;  %v2430_v63 = vld [vmem:[#allocation12 + $0x1a8] sm:$0xff]  ;;  %v2784_v50 = vunpack.c.l.s8.bf16 %v2456_v30 }
 0x68f   :  { %3488 = vmatpush1.bf16.msra.mxu0 %v2661_v10  ;;  %v2727_v10 = vunpack.c.h.s8.bf16 %v2423_v51 }
 0x690   :  { %3652 = vmatpush1.bf16.msra.mxu1 %v2663_v11  ;;  %3489 = vmatprep.subr.bf16.mxu0 %v2670_v52  ;;  %v2734_v11 = vunpack.c.l.s8.bf16 %v2430_v63  ;;  %v2429_v52 = vld [vmem:[#allocation12 + $0x1a0] sm:$0xff] }
 0x691   :  { %3653 = vmatprep.subr.bf16.mxu1 %v2672_v12  ;;  %v2431_v12 = vld [vmem:[#allocation12 + $0x1b0] sm:$0xff]  ;;  %v2733_v14 = vunpack.c.l.s8.bf16 %v2429_v52  ;;  %v2741_v46 = vunpack.c.h.s8.bf16 %v2429_v52 }
 0x693   :  { %3490 = vmatpush1.bf16.msra.mxu0 %v2669_v15  ;;  %v2735_v15 = vunpack.c.l.s8.bf16 %v2431_v12 }
 0x694   :  { %3654 = vmatpush1.bf16.msra.mxu1 %v2671_v16  ;;  %3491 = vmatprep.subr.bf16.mxu0 %v2678_v33  ;;  %v2742_v16 = vunpack.c.h.s8.bf16 %v2430_v63  ;;  %v2744_v33 = vunpack.c.h.s8.bf16 %v2432_v53 }
 0x695   :  { %3655 = vmatprep.subr.bf16.mxu1 %v2680_v44  ;;  %v2438_v44 = vld [vmem:[#allocation12 + $0x1e8] sm:$0xff] }
 0x697   :  { %3492 = vmatpush1.bf16.msra.mxu0 %v2677_v47  ;;  %v2743_v47 = vunpack.c.h.s8.bf16 %v2431_v12 }
 0x698   :  { %3656 = vmatpush1.bf16.msra.mxu1 %v2679_v48  ;;  %3493 = vmatprep.subr.bf16.mxu0 %v2686_v7  ;;  %v2750_v48 = vunpack.c.l.s8.bf16 %v2438_v44  ;;  %v2437_v7 = vld [vmem:[#allocation12 + $0x1e0] sm:$0xff] }
 0x699   :  { %3657 = vmatprep.subr.bf16.mxu1 %v2688_v9  ;;  %v2439_v9 = vld [vmem:[#allocation12 + $0x1f0] sm:$0xff]  ;;  %v2749_v29 = vunpack.c.l.s8.bf16 %v2437_v7  ;;  %v2757_v60 = vunpack.c.h.s8.bf16 %v2437_v7 }
 0x69b   :  { %3494 = vmatpush1.bf16.msra.mxu0 %v2685_v54  ;;  %v2751_v54 = vunpack.c.l.s8.bf16 %v2439_v9 }
 0x69c   :  { %3658 = vmatpush1.bf16.msra.mxu1 %v2687_v20  ;;  %3495 = vmatprep.subr.bf16.mxu0 %v2694_v13  ;;  %v2758_v20 = vunpack.c.h.s8.bf16 %v2438_v44  ;;  %v2760_v13 = vunpack.c.h.s8.bf16 %v2440_v39 }
 0x69d   :  { %3659 = vmatprep.subr.bf16.mxu1 %v2696_v57  ;;  %v2446_v57 = vld [vmem:[#allocation12 + $0x228] sm:$0xff] }
 0x69f   :  { %3496 = vmatpush1.bf16.msra.mxu0 %v2693_v19  ;;  %v2759_v19 = vunpack.c.h.s8.bf16 %v2439_v9 }
 0x6a0   :  { %3660 = vmatpush1.bf16.msra.mxu1 %v2695_v26  ;;  %3497 = vmatprep.subr.bf16.mxu0 %v2702_v38  ;;  %v2766_v26 = vunpack.c.l.s8.bf16 %v2446_v57  ;;  %v2445_v38 = vld [vmem:[#allocation12 + $0x220] sm:$0xff] }
 0x6a1   :  { %3661 = vmatprep.subr.bf16.mxu1 %v2704_v18  ;;  %v2447_v18 = vld [vmem:[#allocation12 + $0x230] sm:$0xff]  ;;  %v2765_v58 = vunpack.c.l.s8.bf16 %v2445_v38  ;;  %v2773_v17 = vunpack.c.h.s8.bf16 %v2445_v38 }
 0x6a3   :  { %3498 = vmatpush1.bf16.msra.mxu0 %v2701_v27  ;;  %v2767_v27 = vunpack.c.l.s8.bf16 %v2447_v18 }
 0x6a4   :  { %3662 = vmatpush1.bf16.msra.mxu1 %v2703_v56  ;;  %3499 = vmatprep.subr.bf16.mxu0 %v2710_v31  ;;  %v2774_v56 = vunpack.c.h.s8.bf16 %v2446_v57  ;;  %v2454_v31 = vld [vmem:[#allocation12 + $0x268] sm:$0xff] }
 0x6a5   :  { %3663 = vmatprep.subr.bf16.mxu1 %v2712_v32  ;;  %v2776_v32 = vunpack.c.h.s8.bf16 %v2448_v41 }
 0x6a7   :  { %3500 = vmatpush1.bf16.msra.mxu0 %v2709_v43  ;;  %v2775_v43 = vunpack.c.h.s8.bf16 %v2447_v18 }
 0x6a8   :  { %3664 = vmatpush1.bf16.msra.mxu1 %v2711_v28  ;;  %3501 = vmatprep.subr.bf16.mxu0 %v2718_v5  ;;  %v2782_v28 = vunpack.c.l.s8.bf16 %v2454_v31  ;;  %v2453_v5 = vld [vmem:[#allocation12 + $0x260] sm:$0xff] }
 0x6a9   :  { %3665 = vmatprep.subr.bf16.mxu1 %v2720_v42  ;;  %v2455_v42 = vld [vmem:[#allocation12 + $0x270] sm:$0xff]  ;;  %v2781_v51 = vunpack.c.l.s8.bf16 %v2453_v5  ;;  %v2789_v63 = vunpack.c.h.s8.bf16 %v2453_v5 }
 0x6aa   :  { %v2791_v53 = vunpack.c.h.s8.bf16 %v2455_v42 }
 0x6ab   :  { %3502 = vmatpush1.bf16.msra.mxu0 %v2717_v22  ;;  %v2783_v22 = vunpack.c.l.s8.bf16 %v2455_v42 }
 0x6ac   :  { %3666 = vmatpush1.bf16.msra.mxu1 %v2719_v45  ;;  %3503 = vmatprep.subr.bf16.mxu0 %v2726_v6  ;;  %v2792_v45 = vunpack.c.h.s8.bf16 %v2456_v30  ;;  %v2462_v6 = vld [vmem:[#allocation12 + $0x2a8] sm:$0xff] }
 0x6ad   :  { %3667 = vmatprep.subr.bf16.mxu1 %v2728_v4  ;;  %v2464_v4 = vld [vmem:[#allocation12 + $0x2b8] sm:$0xff]  ;;  %v2806_v12 = vunpack.c.h.s8.bf16 %v2462_v6 }
 0x6af   :  { %3504 = vmatpush1.bf16.msra.mxu0 %v2725_v3  ;;  %v2461_v3 = vld [vmem:[#allocation12 + $0x2a0] sm:$0xff] }
 0x6b0   :  { %3668 = vmatpush1.bf16.msra.mxu1 %v2727_v10  ;;  %3505 = vmatprep.subr.bf16.mxu0 %v2734_v11  ;;  %v2800_v10 = vunpack.c.l.s8.bf16 %v2464_v4  ;;  %v2463_v11 = vld [vmem:[#allocation12 + $0x2b0] sm:$0xff]  ;;  %v2797_v52 = vunpack.c.l.s8.bf16 %v2461_v3 }
 0x6b1   :  { %3669 = vmatprep.subr.bf16.mxu1 %v2736_v37  ;;  %v2799_v37 = vunpack.c.l.s8.bf16 %v2463_v11  ;;  %v2807_v44 = vunpack.c.h.s8.bf16 %v2463_v11 }
 0x6b3   :  { %3506 = vmatpush1.bf16.msra.mxu0 %v2733_v14  ;;  %v2808_v14 = vunpack.c.h.s8.bf16 %v2464_v4 }
 0x6b4   :  { %3670 = vmatpush1.bf16.msra.mxu1 %v2735_v15  ;;  %3507 = vmatprep.subr.bf16.mxu0 %v2742_v16  ;;  %v2470_v15 = vld [vmem:[#allocation12 + $0x2e8] sm:$0xff]  ;;  %v2472_v16 = vld [vmem:[#allocation12 + $0x2f8] sm:$0xff] }
 0x6b5   :  { %3671 = vmatprep.subr.bf16.mxu1 %v2744_v33  ;;  %v2805_v33 = vunpack.c.h.s8.bf16 %v2461_v3  ;;  %v2814_v39 = vunpack.c.l.s8.bf16 %v2470_v15  ;;  %v2822_v9 = vunpack.c.h.s8.bf16 %v2470_v15 }
 0x6b7   :  { %3508 = vmatpush1.bf16.msra.mxu0 %v2741_v46  ;;  %v2469_v46 = vld [vmem:[#allocation12 + $0x2e0] sm:$0xff] }
 0x6b8   :  { %3672 = vmatpush1.bf16.msra.mxu1 %v2743_v47  ;;  %3509 = vmatprep.subr.bf16.mxu0 %v2750_v48  ;;  %v2816_v47 = vunpack.c.l.s8.bf16 %v2472_v16  ;;  %v2471_v48 = vld [vmem:[#allocation12 + $0x2f0] sm:$0xff]  ;;  %v2813_v7 = vunpack.c.l.s8.bf16 %v2469_v46 }
 0x6b9   :  { %3673 = vmatprep.subr.bf16.mxu1 %v2752_v62  ;;  %v2815_v62 = vunpack.c.l.s8.bf16 %v2471_v48  ;;  %v2823_v57 = vunpack.c.h.s8.bf16 %v2471_v48 }
 0x6bb   :  { %3510 = vmatpush1.bf16.msra.mxu0 %v2749_v29  ;;  %v2824_v29 = vunpack.c.h.s8.bf16 %v2472_v16 }
 0x6bc   :  { %3674 = vmatpush1.bf16.msra.mxu1 %v2751_v54  ;;  %3511 = vmatprep.subr.bf16.mxu0 %v2758_v20  ;;  %v2478_v54 = vld [vmem:[#allocation12 + $0x328] sm:$0xff]  ;;  %v2480_v20 = vld [vmem:[#allocation12 + $0x338] sm:$0xff] }
 0x6bd   :  { %3675 = vmatprep.subr.bf16.mxu1 %v2760_v13  ;;  %v2821_v13 = vunpack.c.h.s8.bf16 %v2469_v46  ;;  %v2830_v41 = vunpack.c.l.s8.bf16 %v2478_v54  ;;  %v2838_v18 = vunpack.c.h.s8.bf16 %v2478_v54 }
 0x6bf   :  { %3512 = vmatpush1.bf16.msra.mxu0 %v2757_v60  ;;  %v2477_v60 = vld [vmem:[#allocation12 + $0x320] sm:$0xff] }
 0x6c0   :  { %3676 = vmatpush1.bf16.msra.mxu1 %v2759_v19  ;;  %3522 = vmatprep.subr.bf16.mxu0 %v2766_v26  ;;  %v2832_v19 = vunpack.c.l.s8.bf16 %v2480_v20  ;;  %v2479_v26 = vld [vmem:[#allocation12 + $0x330] sm:$0xff]  ;;  %v2829_v38 = vunpack.c.l.s8.bf16 %v2477_v60 }
 0x6c1   :  { %3686 = vmatprep.subr.bf16.mxu1 %v2768_v36  ;;  %v2831_v36 = vunpack.c.l.s8.bf16 %v2479_v26 }
 0x6c2   :  { %3514 = vmatmul.mubr.bf16.vlgmr.msra.gmra.mrb[20].mxu0 %v5986_v1 }
 0x6c3   :  { %3678 = vmatmul.mubr.bf16.vlgmr.msra.gmra.mrb[20].mxu1 %v5986_v1  ;;  %3523 = vmatpush1.bf16.msra.mxu0 %v2765_v58  ;;  %v2790_v1 = vunpack.c.h.s8.bf16 %v2454_v31  ;;  %v2840_v58 = vunpack.c.h.s8.bf16 %v2480_v20  ;;  %v2837_v31 = vunpack.c.h.s8.bf16 %v2477_v60 }
 0x6c4   :  { %3554 = vmatprep.mubr.bf16.mxu0 %v5996_v61  ;;  %3687 = vmatpush1.bf16.msra.mxu1 %v2767_v27  ;;  %v2486_v27 = vld [vmem:[#allocation12 + $0x368] sm:$0xff] }
 0x6c5   :  { %3718 = vmatprep.mubr.bf16.mxu1 %v5996_v61  ;;  %3524 = vmatprep.subr.bf16.mxu0 %v2774_v56  ;;  %v2798_v61 = vunpack.c.l.s8.bf16 %v2462_v6  ;;  %v2488_v56 = vld [vmem:[#allocation12 + $0x378] sm:$0xff]  ;;  %v2846_v30 = vunpack.c.l.s8.bf16 %v2486_v27  ;;  %v2854_v42 = vunpack.c.h.s8.bf16 %v2486_v27 }
 0x6c6   :  { %3688 = vmatprep.subr.bf16.mxu1 %v2776_v32  ;;  %v2839_v32 = vunpack.c.h.s8.bf16 %v2479_v26 }
 0x6c7   :  { %3525 = vmatpush1.bf16.msra.mxu0 %v2773_v17  ;;  %v2485_v17 = vld [vmem:[#allocation12 + $0x360] sm:$0xff] }
 0x6c8   :  { %3689 = vmatpush1.bf16.msra.mxu1 %v2775_v43  ;;  %3526 = vmatprep.subr.bf16.mxu0 %v2782_v28  ;;  %v2848_v43 = vunpack.c.l.s8.bf16 %v2488_v56  ;;  %v2487_v28 = vld [vmem:[#allocation12 + $0x370] sm:$0xff]  ;;  %v2845_v5 = vunpack.c.l.s8.bf16 %v2485_v17 }
 0x6c9   :  { %3690 = vmatprep.subr.bf16.mxu1 %v2784_v50  ;;  %v2847_v50 = vunpack.c.l.s8.bf16 %v2487_v28  ;;  %v2855_v6 = vunpack.c.h.s8.bf16 %v2487_v28 }
 0x6cb   :  { %3527 = vmatpush1.bf16.msra.mxu0 %v2781_v51  ;;  %v2856_v51 = vunpack.c.h.s8.bf16 %v2488_v56 }
 0x6cc   :  { %3691 = vmatpush1.bf16.msra.mxu1 %v2783_v22  ;;  %3528 = vmatprep.subr.bf16.mxu0 %v2790_v1  ;;  %v2494_v22 = vld [vmem:[#allocation12 + $0x3a8] sm:$0xff]  ;;  %v2496_v1 = vld [vmem:[#allocation12 + $0x3b8] sm:$0xff] }
 0x6cd   :  { %3692 = vmatprep.subr.bf16.mxu1 %v2792_v45  ;;  %v2853_v45 = vunpack.c.h.s8.bf16 %v2485_v17  ;;  %v2862_v4 = vunpack.c.l.s8.bf16 %v2494_v22  ;;  %v2870_v11 = vunpack.c.h.s8.bf16 %v2494_v22  ;;  %v2525_v22 = vld [vmem:[#allocation12 + $0x4a0] sm:$0xff] }
 0x6cf   :  { %3529 = vmatpush1.bf16.msra.mxu0 %v2789_v63  ;;  %v2493_v63 = vld [vmem:[#allocation12 + $0x3a0] sm:$0xff] }
 0x6d0   :  { %3693 = vmatpush1.bf16.msra.mxu1 %v2791_v53  ;;  %3530 = vmatprep.subr.bf16.mxu0 %v2798_v61  ;;  %v2864_v53 = vunpack.c.l.s8.bf16 %v2496_v1  ;;  %v2495_v61 = vld [vmem:[#allocation12 + $0x3b0] sm:$0xff]  ;;  %v2861_v3 = vunpack.c.l.s8.bf16 %v2493_v63 }
 0x6d1   :  { %3694 = vmatprep.subr.bf16.mxu1 %v2800_v10  ;;  %v2863_v10 = vunpack.c.l.s8.bf16 %v2495_v61  ;;  %v2871_v15 = vunpack.c.h.s8.bf16 %v2495_v61  ;;  %v2534_v61 = vld [vmem:[#allocation12 + $0x4e8] sm:$0xff] }
 0x6d3   :  { %3531 = vmatpush1.bf16.msra.mxu0 %v2797_v52  ;;  %v2872_v52 = vunpack.c.h.s8.bf16 %v2496_v1 }
 0x6d4   :  { %3695 = vmatpush1.bf16.msra.mxu1 %v2799_v37  ;;  %3532 = vmatprep.subr.bf16.mxu0 %v2806_v12  ;;  %v2502_v37 = vld [vmem:[#allocation12 + $0x3e8] sm:$0xff]  ;;  %v2504_v12 = vld [vmem:[#allocation12 + $0x3f8] sm:$0xff] }
 0x6d5   :  { %3696 = vmatprep.subr.bf16.mxu1 %v2808_v14  ;;  %v2869_v14 = vunpack.c.h.s8.bf16 %v2493_v63  ;;  %v2878_v16 = vunpack.c.l.s8.bf16 %v2502_v37  ;;  %v2886_v48 = vunpack.c.h.s8.bf16 %v2502_v37  ;;  %v2533_v37 = vld [vmem:[#allocation12 + $0x4e0] sm:$0xff] }
 0x6d7   :  { %3533 = vmatpush1.bf16.msra.mxu0 %v2805_v33  ;;  %v2501_v33 = vld [vmem:[#allocation12 + $0x3e0] sm:$0xff] }
 0x6d8   :  { %3697 = vmatpush1.bf16.msra.mxu1 %v2807_v44  ;;  %3534 = vmatprep.subr.bf16.mxu0 %v2814_v39  ;;  %v2880_v44 = vunpack.c.l.s8.bf16 %v2504_v12  ;;  %v2503_v39 = vld [vmem:[#allocation12 + $0x3f0] sm:$0xff]  ;;  %v2877_v46 = vunpack.c.l.s8.bf16 %v2501_v33 }
 0x6d9   :  { %3698 = vmatprep.subr.bf16.mxu1 %v2816_v47  ;;  %v2879_v47 = vunpack.c.l.s8.bf16 %v2503_v39  ;;  %v2887_v54 = vunpack.c.h.s8.bf16 %v2503_v39  ;;  %v2542_v39 = vld [vmem:[#allocation12 + $0x528] sm:$0xff] }
 0x6db   :  { %3535 = vmatpush1.bf16.msra.mxu0 %v2813_v7  ;;  %v2888_v7 = vunpack.c.h.s8.bf16 %v2504_v12 }
 0x6dc   :  { %3699 = vmatpush1.bf16.msra.mxu1 %v2815_v62  ;;  %3536 = vmatprep.subr.bf16.mxu0 %v2822_v9  ;;  %v2510_v62 = vld [vmem:[#allocation12 + $0x428] sm:$0xff]  ;;  %v2512_v9 = vld [vmem:[#allocation12 + $0x438] sm:$0xff] }
 0x6dd   :  { %3700 = vmatprep.subr.bf16.mxu1 %v2824_v29  ;;  %v2885_v29 = vunpack.c.h.s8.bf16 %v2501_v33  ;;  %v2894_v20 = vunpack.c.l.s8.bf16 %v2510_v62  ;;  %v2902_v26 = vunpack.c.h.s8.bf16 %v2510_v62  ;;  %v2950_v33 = vunpack.c.h.s8.bf16 %v2534_v61  ;;  %v2541_v62 = vld [vmem:[#allocation12 + $0x520] sm:$0xff] }
 0x6df   :  { %3537 = vmatpush1.bf16.msra.mxu0 %v2821_v13  ;;  %v2509_v13 = vld [vmem:[#allocation12 + $0x420] sm:$0xff] }
 0x6e0   :  { %3701 = vmatpush1.bf16.msra.mxu1 %v2823_v57  ;;  %3538 = vmatprep.subr.bf16.mxu0 %v2830_v41  ;;  %v2896_v57 = vunpack.c.l.s8.bf16 %v2512_v9  ;;  %v2511_v41 = vld [vmem:[#allocation12 + $0x430] sm:$0xff]  ;;  %v2893_v60 = vunpack.c.l.s8.bf16 %v2509_v13 }
 0x6e1   :  { %3702 = vmatprep.subr.bf16.mxu1 %v2832_v19  ;;  %v2895_v19 = vunpack.c.l.s8.bf16 %v2511_v41  ;;  %v2903_v27 = vunpack.c.h.s8.bf16 %v2511_v41  ;;  %v2550_v41 = vld [vmem:[#allocation12 + $0x568] sm:$0xff] }
 0x6e3   :  { %3539 = vmatpush1.bf16.msra.mxu0 %v2829_v38  ;;  %v2518_v38 = vld [vmem:[#allocation12 + $0x468] sm:$0xff] }
 0x6e4   :  { %3703 = vmatpush1.bf16.msra.mxu1 %v2831_v36  ;;  %3540 = vmatprep.subr.bf16.mxu0 %v2838_v18  ;;  %v2904_v36 = vunpack.c.h.s8.bf16 %v2512_v9  ;;  %v2520_v18 = vld [vmem:[#allocation12 + $0x478] sm:$0xff]  ;;  %v2910_v56 = vunpack.c.l.s8.bf16 %v2518_v38 }
 0x6e5   :  { %3704 = vmatprep.subr.bf16.mxu1 %v2840_v58  ;;  %v2901_v58 = vunpack.c.h.s8.bf16 %v2509_v13  ;;  %v2920_v28 = vunpack.c.h.s8.bf16 %v2520_v18  ;;  %v2966_v13 = vunpack.c.h.s8.bf16 %v2542_v39 }
 0x6e7   :  { %3541 = vmatpush1.bf16.msra.mxu0 %v2837_v31  ;;  %v2517_v31 = vld [vmem:[#allocation12 + $0x460] sm:$0xff] }
 0x6e8   :  { %3705 = vmatpush1.bf16.msra.mxu1 %v2839_v32  ;;  %3542 = vmatprep.subr.bf16.mxu0 %v2846_v30  ;;  %v2912_v32 = vunpack.c.l.s8.bf16 %v2520_v18  ;;  %v2519_v30 = vld [vmem:[#allocation12 + $0x470] sm:$0xff]  ;;  %v2909_v17 = vunpack.c.l.s8.bf16 %v2517_v31 }
 0x6e9   :  { %3706 = vmatprep.subr.bf16.mxu1 %v2848_v43  ;;  %v2911_v43 = vunpack.c.l.s8.bf16 %v2519_v30 }
 0x6eb   :  { %3543 = vmatpush1.bf16.msra.mxu0 %v2845_v5  ;;  %v2526_v5 = vld [vmem:[#allocation12 + $0x4a8] sm:$0xff] }
 0x6ec   :  { %3707 = vmatpush1.bf16.msra.mxu1 %v2847_v50  ;;  %3544 = vmatprep.subr.bf16.mxu0 %v2854_v42  ;;  %v2528_v50 = vld [vmem:[#allocation12 + $0x4b8] sm:$0xff]  ;;  %v2917_v42 = vunpack.c.h.s8.bf16 %v2517_v31  ;;  %v2934_v63 = vunpack.c.h.s8.bf16 %v2526_v5  ;;  %v2982_v31 = vunpack.c.h.s8.bf16 %v2550_v41 }
 0x6ed   :  { %3708 = vmatprep.subr.bf16.mxu1 %v2856_v51  ;;  %v2919_v51 = vunpack.c.h.s8.bf16 %v2519_v30  ;;  %v2928_v1 = vunpack.c.l.s8.bf16 %v2528_v50  ;;  %v2558_v30 = vld [vmem:[#allocation12 + $0x5a8] sm:$0xff] }
 0x6ef   :  { %3545 = vmatpush1.bf16.msra.mxu0 %v2853_v45  ;;  %v2527_v45 = vld [vmem:[#allocation12 + $0x4b0] sm:$0xff] }
 0x6f0   :  { %3709 = vmatpush1.bf16.msra.mxu1 %v2855_v6  ;;  %3546 = vmatprep.subr.bf16.mxu0 %v2862_v4  ;;  %v2925_v6 = vunpack.c.l.s8.bf16 %v2525_v22  ;;  %v2927_v4 = vunpack.c.l.s8.bf16 %v2527_v45 }
 0x6f1   :  { %3710 = vmatprep.subr.bf16.mxu1 %v2864_v53  ;;  %v2936_v53 = vunpack.c.h.s8.bf16 %v2528_v50 }
 0x6f3   :  { %3547 = vmatpush1.bf16.msra.mxu0 %v2861_v3  ;;  %v2536_v3 = vld [vmem:[#allocation12 + $0x4f8] sm:$0xff] }
 0x6f4   :  { %3711 = vmatpush1.bf16.msra.mxu1 %v2863_v10  ;;  %3548 = vmatprep.subr.bf16.mxu0 %v2870_v11  ;;  %v2933_v10 = vunpack.c.h.s8.bf16 %v2525_v22  ;;  %v2935_v11 = vunpack.c.h.s8.bf16 %v2527_v45  ;;  %v2944_v12 = vunpack.c.l.s8.bf16 %v2536_v3  ;;  %v2998_v22 = vunpack.c.h.s8.bf16 %v2558_v30  ;;  %v2566_v45 = vld [vmem:[#allocation12 + $0x5e8] sm:$0xff] }
 0x6f5   :  { %3712 = vmatprep.subr.bf16.mxu1 %v2872_v52  ;;  %v2942_v52 = vunpack.c.l.s8.bf16 %v2534_v61  ;;  %v2565_v61 = vld [vmem:[#allocation12 + $0x5e0] sm:$0xff] }
 0x6f7   :  { %3549 = vmatpush1.bf16.msra.mxu0 %v2869_v14  ;;  %v2535_v14 = vld [vmem:[#allocation12 + $0x4f0] sm:$0xff] }
 0x6f8   :  { %3713 = vmatpush1.bf16.msra.mxu1 %v2871_v15  ;;  %3550 = vmatprep.subr.bf16.mxu0 %v2878_v16  ;;  %v2941_v15 = vunpack.c.l.s8.bf16 %v2533_v37  ;;  %v2943_v16 = vunpack.c.l.s8.bf16 %v2535_v14 }
 0x6f9   :  { %3714 = vmatprep.subr.bf16.mxu1 %v2880_v44  ;;  %v2952_v44 = vunpack.c.h.s8.bf16 %v2536_v3 }
 0x6fb   :  { %3551 = vmatpush1.bf16.msra.mxu0 %v2877_v46  ;;  %v2544_v46 = vld [vmem:[#allocation12 + $0x538] sm:$0xff] }
 0x6fc   :  { %3715 = vmatpush1.bf16.msra.mxu1 %v2879_v47  ;;  %3552 = vmatprep.subr.bf16.mxu0 %v2886_v48  ;;  %v2949_v47 = vunpack.c.h.s8.bf16 %v2533_v37  ;;  %v2951_v48 = vunpack.c.h.s8.bf16 %v2535_v14  ;;  %v2960_v9 = vunpack.c.l.s8.bf16 %v2544_v46  ;;  %v3014_v37 = vunpack.c.h.s8.bf16 %v2566_v45  ;;  %v2574_v14 = vld [vmem:[#allocation12 + $0x628] sm:$0xff] }
 0x6fd   :  { %3716 = vmatprep.subr.bf16.mxu1 %v2888_v7  ;;  %v2958_v7 = vunpack.c.l.s8.bf16 %v2542_v39  ;;  %v2573_v39 = vld [vmem:[#allocation12 + $0x620] sm:$0xff] }
 0x6ff   :  { %3553 = vmatpush1.bf16.msra.mxu0 %v2885_v29  ;;  %v2543_v29 = vld [vmem:[#allocation12 + $0x530] sm:$0xff] }
 0x700   :  { %3717 = vmatpush1.bf16.msra.mxu1 %v2887_v54  ;;  %3563 = vmatprep.subr.bf16.mxu0 %v2894_v20  ;;  %v2957_v54 = vunpack.c.l.s8.bf16 %v2541_v62  ;;  %v2959_v20 = vunpack.c.l.s8.bf16 %v2543_v29 }
 0x701   :  { %3727 = vmatprep.subr.bf16.mxu1 %v2896_v57  ;;  %v2968_v57 = vunpack.c.h.s8.bf16 %v2544_v46 }
 0x702   :  { %3555 = vmatmul.mubr.bf16.vlgmr.msra.gmra.mrb[20].mxu0 %v6014_v0 }
 0x703   :  { %3719 = vmatmul.mubr.bf16.vlgmr.msra.gmra.mrb[20].mxu1 %v6014_v0  ;;  %3564 = vmatpush1.bf16.msra.mxu0 %v2893_v60  ;;  %v2918_v0 = vunpack.c.h.s8.bf16 %v2518_v38  ;;  %v2552_v60 = vld [vmem:[#allocation12 + $0x578] sm:$0xff]  ;;  %v2974_v38 = vunpack.c.l.s8.bf16 %v2550_v41  ;;  %v2581_v41 = vld [vmem:[#allocation12 + $0x660] sm:$0xff] }
 0x704   :  { %3595 = vmatprep.mubr.bf16.mxu0 %v6016_v8  ;;  %3728 = vmatpush1.bf16.msra.mxu1 %v2895_v19  ;;  %v2965_v19 = vunpack.c.h.s8.bf16 %v2541_v62  ;;  %v2976_v18 = vunpack.c.l.s8.bf16 %v2552_v60  ;;  %v3030_v62 = vunpack.c.h.s8.bf16 %v2574_v14 }
 0x705   :  { %3759 = vmatprep.mubr.bf16.mxu1 %v6016_v8  ;;  %3565 = vmatprep.subr.bf16.mxu0 %v2902_v26  ;;  %v2926_v8 = vunpack.c.l.s8.bf16 %v2526_v5  ;;  %v2967_v26 = vunpack.c.h.s8.bf16 %v2543_v29  ;;  %v2557_v5 = vld [vmem:[#allocation12 + $0x5a0] sm:$0xff] }
 0x706   :  { %3729 = vmatprep.subr.bf16.mxu1 %v2904_v36  ;;  %v2549_v36 = vld [vmem:[#allocation12 + $0x560] sm:$0xff] }
 0x707   :  { %3566 = vmatpush1.bf16.msra.mxu0 %v2901_v58  ;;  %v2551_v58 = vld [vmem:[#allocation12 + $0x570] sm:$0xff] }
 0x708   :  { %3730 = vmatpush1.bf16.msra.mxu1 %v2903_v27  ;;  %3567 = vmatprep.subr.bf16.mxu0 %v2910_v56  ;;  %v2973_v27 = vunpack.c.l.s8.bf16 %v2549_v36  ;;  %v2975_v56 = vunpack.c.l.s8.bf16 %v2551_v58 }
 0x709   :  { %3731 = vmatprep.subr.bf16.mxu1 %v2912_v32  ;;  %v2984_v32 = vunpack.c.h.s8.bf16 %v2552_v60 }
 0x70b   :  { %3568 = vmatpush1.bf16.msra.mxu0 %v2909_v17  ;;  %v2560_v17 = vld [vmem:[#allocation12 + $0x5b8] sm:$0xff] }
 0x70c   :  { %3732 = vmatpush1.bf16.msra.mxu1 %v2911_v43  ;;  %3569 = vmatprep.subr.bf16.mxu0 %v2918_v0  ;;  %v2981_v43 = vunpack.c.h.s8.bf16 %v2549_v36  ;;  %v2983_v0 = vunpack.c.h.s8.bf16 %v2551_v58  ;;  %v2992_v50 = vunpack.c.l.s8.bf16 %v2560_v17  ;;  %v2592_v58 = vld [vmem:[#allocation12 + $0x6b8] sm:$0xff] }
 0x70d   :  { %3733 = vmatprep.subr.bf16.mxu1 %v2920_v28  ;;  %v2990_v28 = vunpack.c.l.s8.bf16 %v2558_v30  ;;  %v2591_v30 = vld [vmem:[#allocation12 + $0x6b0] sm:$0xff] }
 0x70f   :  { %3570 = vmatpush1.bf16.msra.mxu0 %v2917_v42  ;;  %v2559_v42 = vld [vmem:[#allocation12 + $0x5b0] sm:$0xff] }
 0x710   :  { %3734 = vmatpush1.bf16.msra.mxu1 %v2919_v51  ;;  %3571 = vmatprep.subr.bf16.mxu0 %v2926_v8  ;;  %v2989_v51 = vunpack.c.l.s8.bf16 %v2557_v5  ;;  %v2991_v8 = vunpack.c.l.s8.bf16 %v2559_v42 }
 0x711   :  { %3735 = vmatprep.subr.bf16.mxu1 %v2928_v1  ;;  %v3000_v1 = vunpack.c.h.s8.bf16 %v2560_v17 }
 0x713   :  { %3572 = vmatpush1.bf16.msra.mxu0 %v2925_v6  ;;  %v2568_v6 = vld [vmem:[#allocation12 + $0x5f8] sm:$0xff] }
 0x714   :  { %3736 = vmatpush1.bf16.msra.mxu1 %v2927_v4  ;;  %3573 = vmatprep.subr.bf16.mxu0 %v2934_v63  ;;  %v2997_v4 = vunpack.c.h.s8.bf16 %v2557_v5  ;;  %v2999_v63 = vunpack.c.h.s8.bf16 %v2559_v42  ;;  %v3008_v3 = vunpack.c.l.s8.bf16 %v2568_v6  ;;  %v2598_v5 = vld [vmem:[#allocation12 + $0x6e8] sm:$0xff] }
 0x715   :  { %3737 = vmatprep.subr.bf16.mxu1 %v2936_v53  ;;  %v3006_v53 = vunpack.c.l.s8.bf16 %v2566_v45 }
 0x717   :  { %3574 = vmatpush1.bf16.msra.mxu0 %v2933_v10  ;;  %v2567_v10 = vld [vmem:[#allocation12 + $0x5f0] sm:$0xff] }
 0x718   :  { %3738 = vmatpush1.bf16.msra.mxu1 %v2935_v11  ;;  %3575 = vmatprep.subr.bf16.mxu0 %v2942_v52  ;;  %v3005_v11 = vunpack.c.l.s8.bf16 %v2565_v61  ;;  %v3007_v52 = vunpack.c.l.s8.bf16 %v2567_v10 }
 0x719   :  { %3739 = vmatprep.subr.bf16.mxu1 %v2944_v12  ;;  %v3016_v12 = vunpack.c.h.s8.bf16 %v2568_v6  ;;  %v2599_v6 = vld [vmem:[#allocation12 + $0x6f0] sm:$0xff] }
 0x71b   :  { %3576 = vmatpush1.bf16.msra.mxu0 %v2941_v15  ;;  %v2576_v15 = vld [vmem:[#allocation12 + $0x638] sm:$0xff] }
 0x71c   :  { %3740 = vmatpush1.bf16.msra.mxu1 %v2943_v16  ;;  %3577 = vmatprep.subr.bf16.mxu0 %v2950_v33  ;;  %v3013_v16 = vunpack.c.h.s8.bf16 %v2565_v61  ;;  %v3015_v33 = vunpack.c.h.s8.bf16 %v2567_v10  ;;  %v3024_v46 = vunpack.c.l.s8.bf16 %v2576_v15  ;;  %v3032_v29 = vunpack.c.h.s8.bf16 %v2576_v15  ;;  %v2606_v15 = vld [vmem:[#allocation12 + $0x728] sm:$0xff] }
 0x71d   :  { %3741 = vmatprep.subr.bf16.mxu1 %v2952_v44  ;;  %v3022_v44 = vunpack.c.l.s8.bf16 %v2574_v14 }
 0x71f   :  { %3578 = vmatpush1.bf16.msra.mxu0 %v2949_v47  ;;  %v2575_v47 = vld [vmem:[#allocation12 + $0x630] sm:$0xff] }
 0x720   :  { %3742 = vmatpush1.bf16.msra.mxu1 %v2951_v48  ;;  %3579 = vmatprep.subr.bf16.mxu0 %v2958_v7  ;;  %v3021_v48 = vunpack.c.l.s8.bf16 %v2573_v39  ;;  %v3023_v7 = vunpack.c.l.s8.bf16 %v2575_v47 }
 0x721   :  { %3743 = vmatprep.subr.bf16.mxu1 %v2960_v9  ;;  %v2582_v9 = vld [vmem:[#allocation12 + $0x668] sm:$0xff] }
 0x723   :  { %3580 = vmatpush1.bf16.msra.mxu0 %v2957_v54  ;;  %v2584_v54 = vld [vmem:[#allocation12 + $0x678] sm:$0xff] }
 0x724   :  { %3744 = vmatpush1.bf16.msra.mxu1 %v2959_v20  ;;  %3581 = vmatprep.subr.bf16.mxu0 %v2966_v13  ;;  %v3029_v20 = vunpack.c.h.s8.bf16 %v2573_v39  ;;  %v3031_v13 = vunpack.c.h.s8.bf16 %v2575_v47  ;;  %v3040_v60 = vunpack.c.l.s8.bf16 %v2584_v54  ;;  %v3048_v36 = vunpack.c.h.s8.bf16 %v2584_v54  ;;  %v2614_v54 = vld [vmem:[#allocation12 + $0x768] sm:$0xff] }
 0x725   :  { %3745 = vmatprep.subr.bf16.mxu1 %v2968_v57  ;;  %v3038_v57 = vunpack.c.l.s8.bf16 %v2582_v9  ;;  %v3086_v39 = vunpack.c.l.s8.bf16 %v2606_v15 }
 0x727   :  { %3582 = vmatpush1.bf16.msra.mxu0 %v2965_v19  ;;  %v2583_v19 = vld [vmem:[#allocation12 + $0x670] sm:$0xff] }
 0x728   :  { %3746 = vmatpush1.bf16.msra.mxu1 %v2967_v26  ;;  %3583 = vmatprep.subr.bf16.mxu0 %v2974_v38  ;;  %v3037_v26 = vunpack.c.l.s8.bf16 %v2581_v41  ;;  %v3039_v38 = vunpack.c.l.s8.bf16 %v2583_v19 }
 0x729   :  { %3747 = vmatprep.subr.bf16.mxu1 %v2976_v18  ;;  %v2590_v18 = vld [vmem:[#allocation12 + $0x6a8] sm:$0xff] }
 0x72b   :  { %3584 = vmatpush1.bf16.msra.mxu0 %v2973_v27  ;;  %v3045_v27 = vunpack.c.h.s8.bf16 %v2581_v41  ;;  %v3102_v41 = vunpack.c.l.s8.bf16 %v2614_v54 }
 0x72c   :  { %3748 = vmatpush1.bf16.msra.mxu1 %v2975_v56  ;;  %3585 = vmatprep.subr.bf16.mxu0 %v2982_v31  ;;  %v3047_v56 = vunpack.c.h.s8.bf16 %v2583_v19  ;;  %v2589_v31 = vld [vmem:[#allocation12 + $0x6a0] sm:$0xff] }
 0x72d   :  { %3749 = vmatprep.subr.bf16.mxu1 %v2984_v32  ;;  %v3056_v32 = vunpack.c.l.s8.bf16 %v2592_v58  ;;  %v3053_v17 = vunpack.c.l.s8.bf16 %v2589_v31  ;;  %v3061_v42 = vunpack.c.h.s8.bf16 %v2589_v31 }
 0x72f   :  { %3586 = vmatpush1.bf16.msra.mxu0 %v2981_v43  ;;  %v3055_v43 = vunpack.c.l.s8.bf16 %v2591_v30 }
 0x730   :  { %3750 = vmatpush1.bf16.msra.mxu1 %v2983_v0  ;;  %3587 = vmatprep.subr.bf16.mxu0 %v2990_v28  ;;  %v3062_v0 = vunpack.c.h.s8.bf16 %v2590_v18  ;;  %v3064_v28 = vunpack.c.h.s8.bf16 %v2592_v58  ;;  %v2622_v58 = vld [vmem:[#allocation12 + $0x7a8] sm:$0xff] }
 0x731   :  { %3751 = vmatprep.subr.bf16.mxu1 %v2992_v50  ;;  %v2600_v50 = vld [vmem:[#allocation12 + $0x6f8] sm:$0xff]  ;;  %v3118_v31 = vunpack.c.l.s8.bf16 %v2622_v58 }
 0x732   :  { %v3072_v45 = vunpack.c.l.s8.bf16 %v2600_v50  ;;  %v3080_v14 = vunpack.c.h.s8.bf16 %v2600_v50  ;;  %v2630_v50 = vld [vmem:[#allocation12 + $0x7e8] sm:$0xff] }
 0x733   :  { %3588 = vmatpush1.bf16.msra.mxu0 %v2989_v51  ;;  %v3063_v51 = vunpack.c.h.s8.bf16 %v2591_v30 }
 0x734   :  { %3752 = vmatpush1.bf16.msra.mxu1 %v2991_v8  ;;  %3589 = vmatprep.subr.bf16.mxu0 %v2998_v22  ;;  %v3070_v8 = vunpack.c.l.s8.bf16 %v2598_v5  ;;  %v2597_v22 = vld [vmem:[#allocation12 + $0x6e0] sm:$0xff] }
 0x735   :  { %3753 = vmatprep.subr.bf16.mxu1 %v3000_v1 }
 0x737   :  { %3590 = vmatpush1.bf16.msra.mxu0 %v2997_v4 }
 0x738   :  { %3754 = vmatpush1.bf16.msra.mxu1 %v2999_v63  ;;  %3591 = vmatprep.subr.bf16.mxu0 %v3006_v53 }
 0x739   :  { %3755 = vmatprep.subr.bf16.mxu1 %v3008_v3  ;;  %v3069_v3 = vunpack.c.l.s8.bf16 %v2597_v22 }
 0x73b   :  { %3592 = vmatpush1.bf16.msra.mxu0 %v3005_v11 }
 0x73c   :  { %3756 = vmatpush1.bf16.msra.mxu1 %v3007_v52  ;;  %3593 = vmatprep.subr.bf16.mxu0 %v3014_v37  ;;  %v3071_v52 = vunpack.c.l.s8.bf16 %v2599_v6  ;;  %v3078_v37 = vunpack.c.h.s8.bf16 %v2598_v5 }
 0x73d   :  { %3757 = vmatprep.subr.bf16.mxu1 %v3016_v12 }
 0x73f   :  { %3594 = vmatpush1.bf16.msra.mxu0 %v3013_v16  ;;  %v2608_v16 = vld [vmem:[#allocation12 + $0x738] sm:$0xff] }
 0x740   :  { %3758 = vmatpush1.bf16.msra.mxu1 %v3015_v33  ;;  %3604 = vmatprep.subr.bf16.mxu0 %v3022_v44  ;;  %v3077_v33 = vunpack.c.h.s8.bf16 %v2597_v22  ;;  %v3079_v44 = vunpack.c.h.s8.bf16 %v2599_v6  ;;  %v3088_v47 = vunpack.c.l.s8.bf16 %v2608_v16  ;;  %v3134_v22 = vunpack.c.l.s8.bf16 %v2630_v50 }
 0x741   :  { %3768 = vmatprep.subr.bf16.mxu1 %v3024_v46  ;;  %v2605_v46 = vld [vmem:[#allocation12 + $0x720] sm:$0xff] }
 0x742   :  { %3596 = vmatmul.mubr.bf16.vlgmr.msra.gmra.mrb[20].mxu0 %v6028_v59 }
 0x743   :  { %3760 = vmatmul.mubr.bf16.vlgmr.msra.gmra.mrb[20].mxu1 %v6028_v59  ;;  %3605 = vmatpush1.bf16.msra.mxu0 %v3021_v48  ;;  %v3046_v59 = vunpack.c.h.s8.bf16 %v2582_v9  ;;  %v2607_v48 = vld [vmem:[#allocation12 + $0x730] sm:$0xff]  ;;  %v3094_v9 = vunpack.c.h.s8.bf16 %v2606_v15  ;;  %v5067_v15 = vld [vmem:[#allocation18 + $0xc0] sm:$0xff]  }
 0x744   :  { %3636 = vmatprep.mubr.bf16.mxu0 %v6031_v2  ;;  %3769 = vmatpush1.bf16.msra.mxu1 %v3023_v7  ;;  %v3085_v7 = vunpack.c.l.s8.bf16 %v2605_v46 }
 0x745   :  { %3800 = vmatprep.mubr.bf16.mxu1 %v6031_v2  ;;  %3606 = vmatprep.subr.bf16.mxu0 %v3030_v62  ;;  %v3054_v2 = vunpack.c.l.s8.bf16 %v2590_v18  ;;  %v3087_v62 = vunpack.c.l.s8.bf16 %v2607_v48 }
 0x746   :  { %3770 = vmatprep.subr.bf16.mxu1 %v3032_v29  ;;  %v3096_v29 = vunpack.c.h.s8.bf16 %v2608_v16  ;;  %v5068_v16 = vld [vmem:[#allocation18] sm:$0xff]  }
 0x747   :  { %3607 = vmatpush1.bf16.msra.mxu0 %v3029_v20  ;;  %v2616_v20 = vld [vmem:[#allocation12 + $0x778] sm:$0xff] }
 0x748   :  { %3771 = vmatpush1.bf16.msra.mxu1 %v3031_v13  ;;  %3608 = vmatprep.subr.bf16.mxu0 %v3038_v57  ;;  %v3093_v13 = vunpack.c.h.s8.bf16 %v2605_v46  ;;  %v3095_v57 = vunpack.c.h.s8.bf16 %v2607_v48  ;;  %v3104_v19 = vunpack.c.l.s8.bf16 %v2616_v20  ;;  %v3112_v18 = vunpack.c.h.s8.bf16 %v2616_v20 }
 0x749   :  { %3772 = vmatprep.subr.bf16.mxu1 %v3040_v60  ;;  %v2613_v60 = vld [vmem:[#allocation12 + $0x760] sm:$0xff] }
 0x74b   :  { %3609 = vmatpush1.bf16.msra.mxu0 %v3037_v26  ;;  %v2615_v26 = vld [vmem:[#allocation12 + $0x770] sm:$0xff] }
 0x74c   :  { %3773 = vmatpush1.bf16.msra.mxu1 %v3039_v38  ;;  %3610 = vmatprep.subr.bf16.mxu0 %v3046_v59  ;;  %v3101_v38 = vunpack.c.l.s8.bf16 %v2613_v60  ;;  %v3103_v59 = vunpack.c.l.s8.bf16 %v2615_v26 }
 0x74d   :  { %3774 = vmatprep.subr.bf16.mxu1 %v3048_v36  ;;  %v3110_v36 = vunpack.c.h.s8.bf16 %v2614_v54 }
 0x74f   :  { %3611 = vmatpush1.bf16.msra.mxu0 %v3045_v27  ;;  %v2624_v27 = vld [vmem:[#allocation12 + $0x7b8] sm:$0xff] }
 0x750   :  { %3775 = vmatpush1.bf16.msra.mxu1 %v3047_v56  ;;  %3612 = vmatprep.subr.bf16.mxu0 %v3054_v2  ;;  %v3109_v56 = vunpack.c.h.s8.bf16 %v2613_v60  ;;  %v3111_v2 = vunpack.c.h.s8.bf16 %v2615_v26  ;;  %v3120_v30 = vunpack.c.l.s8.bf16 %v2624_v27  ;;  %v3128_v5 = vunpack.c.h.s8.bf16 %v2624_v27 }
 0x751   :  { %3776 = vmatprep.subr.bf16.mxu1 %v3056_v32  ;;  %v2621_v32 = vld [vmem:[#allocation12 + $0x7a0] sm:$0xff] }
 0x753   :  { %3613 = vmatpush1.bf16.msra.mxu0 %v3053_v17  ;;  %v2623_v17 = vld [vmem:[#allocation12 + $0x7b0] sm:$0xff] }
 0x754   :  { %3777 = vmatpush1.bf16.msra.mxu1 %v3055_v43  ;;  %3614 = vmatprep.subr.bf16.mxu0 %v3062_v0  ;;  %v3117_v43 = vunpack.c.l.s8.bf16 %v2621_v32  ;;  %v3119_v0 = vunpack.c.l.s8.bf16 %v2623_v17 }
 0x755   :  { %v6057_v1 = vpop.f32.mrb[16].mxu0  ;;  %3778 = vmatprep.subr.bf16.mxu1 %v3064_v28  ;;  %v3126_v28 = vunpack.c.h.s8.bf16 %v2622_v58 }
 0x756   :  { %v6059_v4 = vpop.f32.mrb[16].mxu1  ;;  %v6061_v63 = vpop.f32.mrb[17].mxu0 }
 0x757   :  { %v6063_v53 = vpop.f32.mrb[17].mxu1  ;;  %v3314_v61 = vpop.f32.mrb[18].mxu0  ;;  %3615 = vmatpush1.bf16.msra.mxu0 %v3061_v42  ;;  %v2632_v42 = vld [vmem:[#allocation12 + $0x7f8] sm:$0xff] }
 0x758   :  { %v3478_v10 = vpop.f32.mrb[18].mxu1  ;;  %3779 = vmatpush1.bf16.msra.mxu1 %v3063_v51  ;;  %v3315_v11 = vpop.f32.mrb[19].mxu0  ;;  %3616 = vmatprep.subr.bf16.mxu0 %v3070_v8  ;;  %v3125_v51 = vunpack.c.h.s8.bf16 %v2621_v32  ;;  %v3127_v8 = vunpack.c.h.s8.bf16 %v2623_v17  ;;  %v3136_v6 = vunpack.c.l.s8.bf16 %v2632_v42  ;;  %v2631_v61 = vld [vmem:[#allocation12 + $0x7f0] sm:$0xff] }
 0x759   :  { %v3479_v12 = vpop.f32.mrb[19].mxu1  ;;  %3780 = vmatprep.subr.bf16.mxu1 %v3072_v45  ;;  %v2629_v45 = vld [vmem:[#allocation12 + $0x7e0] sm:$0xff]  ;;  %v3135_v10 = vunpack.c.l.s8.bf16 %v2631_v61  ;;  %v3142_v11 = vunpack.c.h.s8.bf16 %v2630_v50 }
 0x75a   :  { %v3143_v12 = vunpack.c.h.s8.bf16 %v2631_v61 }
 0x75b   :  { %3617 = vmatpush1.bf16.msra.mxu0 %v3069_v3  ;;  %v3133_v3 = vunpack.c.l.s8.bf16 %v2629_v45 }
 0x75c   :  { %3781 = vmatpush1.bf16.msra.mxu1 %v3071_v52  ;;  %3618 = vmatprep.subr.bf16.mxu0 %v3078_v37  ;;  %v3144_v52 = vunpack.c.h.s8.bf16 %v2632_v42  ;;  %v3141_v37 = vunpack.c.h.s8.bf16 %v2629_v45 }
 0x75d   :  { %3782 = vmatprep.subr.bf16.mxu1 %v3080_v14  ;;  %v5066_v14 = vld [vmem:[#allocation18 + $0x40] sm:$0xff]  }
 0x75f   :  { %3619 = vmatpush1.bf16.msra.mxu0 %v3077_v33  ;;  %v5069_v33 = vld [vmem:[#allocation18 + $0x80] sm:$0xff]  }
 0x760   :  { %3783 = vmatpush1.bf16.msra.mxu1 %v3079_v44  ;;  %3620 = vmatprep.subr.bf16.mxu0 %v3086_v39  ;;  %v3809_v44 = vld [vmem:[%s6213_s11] sm:$0xff] }
 0x761   :  { %3784 = vmatprep.subr.bf16.mxu1 %v3088_v47  ;;  %v3814_v39 = vrot.slane %v3809_v44, %v5641_v21  ;;  %v3818_v46 = vrot.slane %v3809_v44, %v5643_v23  ;;  %v3859_v47 = vld [vmem:[#allocation13] sm:$0xff]  ;;  %v3826_v20 = vrot.slane %v3809_v44, %v5647_v25 }
 0x762   :  { %v3876_v60 = vrot.slane %v3859_v47, %v5647_v25  ;;  %v3880_v27 = vrot.slane %v3859_v47, %v5655_v34 }
 0x763   :  { %3621 = vmatpush1.bf16.msra.mxu0 %v3085_v7  ;;  %v3851_v48 = vmul.f32 %v3814_v39, %v6057_v1  ;;  %v3852_v7 = vmul.f32 %v3818_v46, %v6061_v63 }
 0x764   :  { %3785 = vmatpush1.bf16.msra.mxu1 %v3087_v62  ;;  %3622 = vmatprep.subr.bf16.mxu0 %v3094_v9  ;;  %v3868_v62 = vrot.slane %v3859_v47, %v5643_v23  ;;  %v3822_v9 = vrot.slane %v3809_v44, %v5645_v24 }
 0x765   :  { %3786 = vmatprep.subr.bf16.mxu1 %v3096_v29 }
 0x766   :  { %v6079_v54 = vadd.f32 %v3868_v62, %v3852_v7 }
 0x767   :  { %3623 = vmatpush1.bf16.msra.mxu0 %v3093_v13  ;;  %v3853_v13 = vmul.f32 %v3822_v9, %v6059_v4  ;;  %v3830_v4 = vrot.slane %v3809_v44, %v5655_v34  ;;  %v5070_v9 = vld [vmem:[#allocation18 + $0x48] sm:$0xff]  }
 0x768   :  { %3787 = vmatpush1.bf16.msra.mxu1 %v3095_v57  ;;  %3624 = vmatprep.subr.bf16.mxu0 %v3102_v41  ;;  %v3872_v57 = vrot.slane %v3859_v47, %v5645_v24  ;;  %v3922_v63 = vmul.f32 %v6079_v54, %v6079_v54  ;;  %v3854_v41 = vmul.f32 %v3826_v20, %v6063_v53  ;;  %v5071_v20 = vld [vmem:[#allocation18 + $0xc8] sm:$0xff]  }
 0x769   :  { %3788 = vmatprep.subr.bf16.mxu1 %v3104_v19 }
 0x76a   :  { %v6090_v19 = vadd.f32 %v3872_v57, %v3853_v13  ;;  %v5072_v13 = vld [vmem:[#allocation18 + $0x8] sm:$0xff]  }
 0x76b   :  { %3625 = vmatpush1.bf16.msra.mxu0 %v3101_v38  ;;  %v5073_v57 = vld [vmem:[#allocation18 + $0x88] sm:$0xff]  }
 0x76c   :  { %3789 = vmatpush1.bf16.msra.mxu1 %v3103_v59  ;;  %3626 = vmatprep.subr.bf16.mxu0 %v3110_v36  ;;  %v6095_v59 = vadd.f32 %v3876_v60, %v3854_v41  ;;  %v3838_v36 = vrot.slane %v3809_v44, %v5663_v40  ;;  %v3923_v58 = vmul.f32 %v6090_v19, %v6090_v19  ;;  %v5076_v41 = vld [vmem:[#allocation18 + $0x10] sm:$0xff]  }
 0x76d   :  { %3790 = vmatprep.subr.bf16.mxu1 %v3112_v18  ;;  %v3834_v18 = vrot.slane %v3809_v44, %v5657_v35  ;;  %v5077_v60 = vld [vmem:[#allocation18 + $0x90] sm:$0xff]  }
 0x76f   :  { %3627 = vmatpush1.bf16.msra.mxu0 %v3109_v56  ;;  %v3842_v56 = vrot.slane %v3809_v44, %v5681_v55 }
 0x770   :  { %3791 = vmatpush1.bf16.msra.mxu1 %v3111_v2  ;;  %3628 = vmatprep.subr.bf16.mxu0 %v3118_v31  ;;  %v3884_v31 = vrot.slane %v3859_v47, %v5657_v35 }
 0x771   :  { %3792 = vmatprep.subr.bf16.mxu1 %v3120_v30 }
 0x773   :  { %3629 = vmatpush1.bf16.msra.mxu0 %v3117_v43  ;;  %v3888_v43 = vrot.slane %v3859_v47, %v5663_v40 }
 0x774   :  { %3793 = vmatpush1.bf16.msra.mxu1 %v3119_v0  ;;  %3630 = vmatprep.subr.bf16.mxu0 %v3126_v28  ;;  %v3924_v28 = vmul.f32 %v6095_v59, %v6095_v59 }
 0x775   :  { %3794 = vmatprep.subr.bf16.mxu1 %v3128_v5 }
 0x777   :  { %3631 = vmatpush1.bf16.msra.mxu0 %v3125_v51 }
 0x778   :  { %3795 = vmatpush1.bf16.msra.mxu1 %v3127_v8  ;;  %3632 = vmatprep.subr.bf16.mxu0 %v3134_v22 }
 0x779   :  { %3796 = vmatprep.subr.bf16.mxu1 %v3136_v6  ;;  %v3892_v6 = vrot.slane %v3859_v47, %v5681_v55 }
 0x77b   :  { %3633 = vmatpush1.bf16.msra.mxu0 %v3133_v3 }
 0x77c   :  { %3797 = vmatpush1.bf16.msra.mxu1 %v3135_v10  ;;  %3634 = vmatprep.subr.bf16.mxu0 %v3142_v11 }
 0x77d   :  { %3798 = vmatprep.subr.bf16.mxu1 %v3144_v52 }
 0x77f   :  { %3635 = vmatpush1.bf16.msra.mxu0 %v3141_v37 }
 0x780   :  { %3799 = vmatpush1.bf16.msra.mxu1 %v3143_v12  ;;  %4865 = vmatprep.subr.bf16.mxu0 %v5066_v14 }
 0x781   :  { %4887 = vmatprep.subr.bf16.mxu1 %v5067_v15 }
 0x782   :  { %3637 = vmatmul.mubr.bf16.vlgmr.msra.gmra.mrb[20].mxu0 %v6039_v49 }
 0x783   :  { %3801 = vmatmul.mubr.bf16.vlgmr.msra.gmra.mrb[20].mxu1 %v6039_v49  ;;  %4866 = vmatpush3.bf16.msra.mxu0 %v5068_v16  ;;  %v3864_v49 = vrot.slane %v3859_v47, %v5641_v21 }
 0x784   :  { %4888 = vmatpush3.bf16.msra.mxu1 %v5069_v33  ;;  %4867 = vmatprep.subr.bf16.mxu0 %v5070_v9 }
 0x785   :  { %v6077_v29 = vadd.f32 %v3864_v49, %v3851_v48  ;;  %4889 = vmatprep.subr.bf16.mxu1 %v5071_v20 }
 0x787   :  { %v3921_v1 = vmul.f32 %v6077_v29, %v6077_v29  ;;  %v3911_v26 = vadd.f32 %v6079_v54, %v6077_v29  ;;  %4868 = vmatpush3.bf16.msra.mxu0 %v5072_v13 }
 0x788   :  { %4890 = vmatpush3.bf16.msra.mxu1 %v5073_v57 }
 0x789   :  { %v3929_v38 = vadd.f32 %v3922_v63, %v3921_v1  ;;  %v3912_v53 = vadd.f32 %v3911_v26, %v6090_v19  ;;  %v5074_v1 = vld [vmem:[#allocation18 + $0x50] sm:$0xff]   ;;  %v5078_v26 = vld [vmem:[#allocation18 + $0x58] sm:$0xff]  }
 0x78a   :  { %v5075_v63 = vld [vmem:[#allocation18 + $0xd0] sm:$0xff]   ;;  %4869 = vmatprep.subr.bf16.mxu0 %v5074_v1 }
 0x78b   :  { %v3930_v32 = vadd.f32 %v3929_v38, %v3923_v58  ;;  %v3913_v8 = vadd.f32 %v3912_v53, %v6095_v59  ;;  %4891 = vmatprep.subr.bf16.mxu1 %v5075_v63  ;;  %v5079_v38 = vld [vmem:[#allocation18 + $0xd8] sm:$0xff]   ;;  %4870 = vmatpush3.bf16.msra.mxu0 %v5076_v41  ;;  %v5083_v58 = vld [vmem:[#allocation18 + $0xe0] sm:$0xff]  }
 0x78c   :  { %4892 = vmatpush3.bf16.msra.mxu1 %v5077_v60  ;;  %4871 = vmatprep.subr.bf16.mxu0 %v5078_v26  ;;  %v5084_v53 = vld [vmem:[#allocation18 + $0x20] sm:$0xff]  }
 0x78d   :  { %v3931_v52 = vadd.f32 %v3930_v32, %v3924_v28  ;;  %4893 = vmatprep.subr.bf16.mxu1 %v5079_v38  ;;  %v5089_v32 = vld [vmem:[#allocation18 + $0xa8] sm:$0xff]   ;;  %v5094_v28 = vld [vmem:[#allocation18 + $0x78] sm:$0xff]  }
 0x855   :  { %v3638_v2 = vpop.f32.mrb[20].mxu0 }
 0x856   :  { %v3855_v30 = vmul.f32 %v3830_v4, %v3638_v2  ;;  %v3802_v17 = vpop.f32.mrb[20].mxu1  ;;  %v3640_v0 = vpop.f32.mrb[21].mxu0  ;;  %v5080_v4 = vld [vmem:[#allocation18 + $0x18] sm:$0xff]   ;;  %v5087_v2 = vld [vmem:[#allocation18 + $0xe8] sm:$0xff]  }
 0x857   :  { %v3857_v5 = vmul.f32 %v3838_v36, %v3802_v17  ;;  %v3856_v50 = vmul.f32 %v3834_v18, %v3640_v0  ;;  %v3804_v42 = vpop.f32.mrb[21].mxu1  ;;  %v3642_v51 = vpop.f32.mrb[22].mxu0  ;;  %v5081_v36 = vld [vmem:[#allocation18 + $0x98] sm:$0xff]   ;;  %v5082_v18 = vld [vmem:[#allocation18 + $0x60] sm:$0xff]   ;;  %4872 = vmatpush3.bf16.msra.mxu0 %v5080_v4  ;;  %v5091_v17 = vld [vmem:[#allocation18 + $0xf0] sm:$0xff]  }
 0x858   :  { %v6109_v22 = vadd.f32 %v3880_v27, %v3855_v30  ;;  %v3858_v45 = vmul.f32 %v3842_v56, %v3804_v42  ;;  %v3806_v61 = vpop.f32.mrb[22].mxu1  ;;  %v3643_v3 = vpop.f32.mrb[23].mxu0  ;;  %4894 = vmatpush3.bf16.msra.mxu1 %v5081_v36  ;;  %v5085_v27 = vld [vmem:[#allocation18 + $0xa0] sm:$0xff]   ;;  %4873 = vmatprep.subr.bf16.mxu0 %v5082_v18  ;;  %v5086_v56 = vld [vmem:[#allocation18 + $0x68] sm:$0xff]   ;;  %v5090_v30 = vld [vmem:[#allocation18 + $0x70] sm:$0xff]  }
 0x859   :  { %v6112_v10 = vadd.f32 %v3884_v31, %v3856_v50  ;;  %v3807_v11 = vpop.f32.mrb[23].mxu1  ;;  %v6117_v14 = vadd.f32 %v3888_v43, %v3857_v5  ;;  %4895 = vmatprep.subr.bf16.mxu1 %v5083_v58  ;;  %v5088_v31 = vld [vmem:[#allocation18 + $0x28] sm:$0xff]   ;;  %v5092_v43 = vld [vmem:[#allocation18 + $0x30] sm:$0xff]   ;;  %v5095_v5 = vld [vmem:[#allocation18 + $0xf8] sm:$0xff]  }
 0x85a   :  { %v3914_v37 = vadd.f32 %v3913_v8, %v6109_v22  ;;  %v3925_v12 = vmul.f32 %v6109_v22, %v6109_v22  ;;  %v6121_v16 = vadd.f32 %v3892_v6, %v3858_v45  ;;  %v5093_v0 = vld [vmem:[#allocation18 + $0xb0] sm:$0xff]   ;;  %v5096_v50 = vld [vmem:[#allocation18 + $0x38] sm:$0xff]   ;;  %v5098_v51 = vld [vmem:[#allocation18 + $0x140] sm:$0xff]  }
 0x85b   :  { %v3926_v15 = vmul.f32 %v6112_v10, %v6112_v10  ;;  %v3927_v46 = vmul.f32 %v6117_v14, %v6117_v14  ;;  %4874 = vmatpush3.bf16.msra.mxu0 %v5084_v53  ;;  %v5097_v42 = vld [vmem:[#allocation18 + $0xb8] sm:$0xff]   ;;  %v5099_v8 = vld [vmem:[#allocation18 + $0x1c0] sm:$0xff]  }
 0x85c   :  { %v3915_v33 = vadd.f32 %v3914_v37, %v6112_v10  ;;  %v3932_v44 = vadd.f32 %v3931_v52, %v3925_v12  ;;  %v3928_v49 = vmul.f32 %v6121_v16, %v6121_v16  ;;  %4896 = vmatpush3.bf16.msra.mxu1 %v5085_v27  ;;  %4875 = vmatprep.subr.bf16.mxu0 %v5086_v56  ;;  %v6134_v12 = vld [vmem:[#allocation15] sm:$0xff] }
 0x85d   :  { %4897 = vmatprep.subr.bf16.mxu1 %v5087_v2 }
 0x85e   :  { %v3916_v39 = vadd.f32 %v3915_v33, %v6117_v14  ;;  %v3933_v47 = vadd.f32 %v3932_v44, %v3926_v15  ;;  %v6136_v15 = vld [vmem:[#allocation16] sm:$0xff]  ;;  %v3967_v33 = vrot.slane %v6134_v12, %v5643_v23 }
 0x85f   :  { %4876 = vmatpush3.bf16.msra.mxu0 %v5088_v31  ;;  %v4016_v44 = vrot.slane %v6136_v15, %v5643_v23 }
 0x860   :  { %v3917_v48 = vadd.f32 %v3916_v39, %v6121_v16  ;;  %v3934_v7 = vadd.f32 %v3933_v47, %v3927_v46  ;;  %4898 = vmatpush3.bf16.msra.mxu1 %v5089_v32  ;;  %4877 = vmatprep.subr.bf16.mxu0 %v5090_v30  ;;  %v3975_v39 = vrot.slane %v6134_v12, %v5647_v25 }
 0x861   :  { %4899 = vmatprep.subr.bf16.mxu1 %v5091_v17  ;;  %v4024_v46 = vrot.slane %v6136_v15, %v5647_v25  ;;  %v3963_v47 = vrot.slane %v6134_v12, %v5641_v21 }
 0x862   :  { %3918 = vadd.xlane.f32.xlu0 %v3917_v48  ;;  %v3935_v62 = vadd.f32 %v3934_v7, %v3928_v49  ;;  %v4012_v48 = vrot.slane %v6136_v15, %v5641_v21  ;;  %v3971_v49 = vrot.slane %v6134_v12, %v5645_v24  ;;  %v4020_v7 = vrot.slane %v6136_v15, %v5645_v24 }
 0x863   :  { %4878 = vmatpush3.bf16.msra.mxu0 %v5092_v43  ;;  %v3983_v24 = vrot.slane %v6134_v12, %v5657_v35 }
 0x864   :  { %3936 = vadd.xlane.f32.xlu1 %v3935_v62  ;;  %4900 = vmatpush3.bf16.msra.mxu1 %v5093_v0 }
 0x865   :  { %4879 = vmatprep.subr.bf16.mxu0 %v5094_v28  ;;  %4901 = vmatprep.subr.bf16.mxu1 %v5095_v5 }
 0x867   :  { %4880 = vmatpush3.bf16.msra.mxu0 %v5096_v50 }
 0x868   :  { %4902 = vmatpush3.bf16.msra.mxu1 %v5097_v42  ;;  %4909 = vmatprep.subr.bf16.mxu0 %v5098_v51  ;;  %v5100_v42 = vld [vmem:[#allocation18 + $0x100] sm:$0xff]  }
 0x869   :  { %4931 = vmatprep.subr.bf16.mxu1 %v5099_v8  ;;  %v5101_v51 = vld [vmem:[#allocation18 + $0x180] sm:$0xff]  }
 0x8ef   :  { %v3919_v45 = vpop.xlane.xlu0 %3918 }
 0x8f0   :  { %v6130_v6 = vmul.f32 0.0009765625, %v3919_v45 }
 0x8f1   :  { %v3937_v61 = vpop.xlane.xlu1 %3936 }
 0x8f2   :  { %v3938_v3 = vmul.f32 0.0009765625, %v3937_v61  ;;  %v3939_v11 = vmul.f32 %v6130_v6, %v6130_v6  ;;  %v3942_v23 = vsub.f32 %v6079_v54, %v6130_v6  ;;  %v3944_v62 = vsub.f32 %v6095_v59, %v6130_v6 }
 0x8f3   :  { %v3941_v25 = vsub.f32 %v6077_v29, %v6130_v6  ;;  %v3943_v9 = vsub.f32 %v6090_v19, %v6130_v6  ;;  %v3946_v21 = vsub.f32 %v6112_v10, %v6130_v6  ;;  %v3948_v54 = vsub.f32 %v6121_v16, %v6130_v6 }
 0x8f4   :  { %v3940_v52 = vsub.f32 %v3938_v3, %v3939_v11  ;;  %v3991_v59 = vrot.slane %v6134_v12, %v5681_v55  ;;  %v4032_v10 = vrot.slane %v6136_v15, %v5657_v35  ;;  %v4040_v16 = vrot.slane %v6136_v15, %v5681_v55  ;;  %v5102_v3 = vld [vmem:[#allocation18 + $0x148] sm:$0xff]  }
 0x8f6   :  { %v3949_v37 = vadd.f32 1e-05, %v3940_v52  ;;  %v5103_v52 = vld [vmem:[#allocation18 + $0x1c8] sm:$0xff]  }
 0x8f8   :  { %5134 = vrsqrt.f32 %v3949_v37 }
 0x902   :  { %v6162_v20 = vpop.eup %5134 }
 0x903   :  { %v3952_v13 = vmul.f32 %v6162_v20, %v3942_v23  ;;  %v3954_v29 = vmul.f32 %v6162_v20, %v3944_v62  ;;  %v3951_v19 = vmul.f32 %v6162_v20, %v3941_v25  ;;  %v3953_v57 = vmul.f32 %v6162_v20, %v3943_v9  ;;  %v5110_v23 = vld [vmem:[#allocation18 + $0x158] sm:$0xff]  }
 0x904   :  { %v3956_v1 = vmul.f32 %v6162_v20, %v3946_v21  ;;  %v3958_v63 = vmul.f32 %v6162_v20, %v3948_v54  ;;  %v5111_v62 = vld [vmem:[#allocation18 + $0x1d8] sm:$0xff]   ;;  %v3945_v21 = vsub.f32 %v6109_v22, %v6130_v6  ;;  %v5114_v54 = vld [vmem:[#allocation18 + $0x160] sm:$0xff]  }
 0x905   :  { %v4001_v41 = vmul.f32 %v3967_v33, %v3952_v13  ;;  %v4003_v60 = vmul.f32 %v3975_v39, %v3954_v29  ;;  %v4000_v26 = vmul.f32 %v3963_v47, %v3951_v19  ;;  %v4002_v38 = vmul.f32 %v3971_v49, %v3953_v57  ;;  %v5105_v39 = vld [vmem:[#allocation18 + $0x188] sm:$0xff]   ;;  %v5106_v47 = vld [vmem:[#allocation18 + $0x150] sm:$0xff]   ;;  %v5112_v25 = vld [vmem:[#allocation18 + $0x118] sm:$0xff]  }
 0x906   :  { %v4005_v4 = vmul.f32 %v3983_v24, %v3956_v1  ;;  %v4007_v36 = vmul.f32 %v3991_v59, %v3958_v63  ;;  %v5108_v49 = vld [vmem:[#allocation18 + $0x110] sm:$0xff]   ;;  %v5113_v9 = vld [vmem:[#allocation18 + $0x198] sm:$0xff]   ;;  %v3947_v24 = vsub.f32 %v6117_v14, %v6130_v6  ;;  %v5115_v59 = vld [vmem:[#allocation18 + $0x1e0] sm:$0xff]   ;;  %v3955_v13 = vmul.f32 %v6162_v20, %v3945_v21 }
 0x907   :  { %v4050_v18 = vadd.f32 %v4016_v44, %v4001_v41  ;;  %v4052_v58 = vadd.f32 %v4024_v46, %v4003_v60  ;;  %v4049_v53 = vadd.f32 %v4012_v48, %v4000_v26  ;;  %v4051_v27 = vadd.f32 %v4020_v7, %v4002_v38  ;;  %v5104_v44 = vld [vmem:[#allocation18 + $0x108] sm:$0xff]   ;;  %v5107_v48 = vld [vmem:[#allocation18 + $0x1d0] sm:$0xff]   ;;  %v5116_v22 = vld [vmem:[#allocation18 + $0x120] sm:$0xff]  }
 0x908   :  { %v4054_v56 = vadd.f32 %v4032_v10, %v4005_v4  ;;  %v4056_v2 = vadd.f32 %v4040_v16, %v4007_v36  ;;  %v5109_v7 = vld [vmem:[#allocation18 + $0x190] sm:$0xff]   ;;  %v3979_v29 = vrot.slane %v6134_v12, %v5655_v34  ;;  %v3957_v19 = vmul.f32 %v6162_v20, %v3947_v24  ;;  %v5117_v1 = vld [vmem:[#allocation18 + $0x1a0] sm:$0xff]   ;;  %v5118_v14 = vld [vmem:[#allocation18 + $0x168] sm:$0xff]  }
 0x909   :  { %vm4058_vm1 = vcmp.gt.f32.partialorder %v4050_v18, 0.0  ;;  %v4066_v31 = vmul.f32 0.01, %v4050_v18  ;;  %vm4060_vm2 = vcmp.gt.f32.partialorder %v4052_v58, 0.0  ;;  %v4068_v35 = vmul.f32 0.01, %v4052_v58 }
 0x90a   :  { %vm4057_vm3 = vcmp.gt.f32.partialorder %v4049_v53, 0.0  ;;  %v4065_v32 = vmul.f32 0.01, %v4049_v53  ;;  %vm4059_vm4 = vcmp.gt.f32.partialorder %v4051_v27, 0.0  ;;  %v4067_v55 = vmul.f32 0.01, %v4051_v27 }
 0x90b   :  { %v4074_v30 = vsel %vm4058_vm1, %v4050_v18, %v4066_v31  ;;  %v4076_v17 = vsel %vm4060_vm2, %v4052_v58, %v4068_v35  ;;  %vm4062_vm5 = vcmp.gt.f32.partialorder %v4054_v56, 0.0  ;;  %v4070_v43 = vmul.f32 0.01, %v4054_v56  ;;  %v5119_v6 = vld [vmem:[#allocation18 + $0x1e8] sm:$0xff]   ;;  %v5122_v60 = vld [vmem:[#allocation18 + $0x170] sm:$0xff]   ;;  %v5127_v58 = vld [vmem:[#allocation18 + $0x1f8] sm:$0xff]  }
 0x90c   :  { %v4082_v0 = vpack.c.bf16 %v4074_v30, %v4074_v30  ;;  %v4084_v28 = vpack.c.bf16 %v4076_v17, %v4076_v17  ;;  %v4073_v5 = vsel %vm4057_vm3, %v4049_v53, %v4065_v32  ;;  %v4075_v50 = vsel %vm4059_vm4, %v4051_v27, %v4067_v55  ;;  %v5120_v20 = vld [vmem:[#allocation18 + $0x128] sm:$0xff]   ;;  %v5123_v26 = vld [vmem:[#allocation18 + $0x1f0] sm:$0xff]   ;;  %v5129_v27 = vld [vmem:[#allocation18 + $0x1b8] sm:$0xff]  }
 0x90d   :  { %v4081_v8 = vpack.c.bf16 %v4073_v5, %v4073_v5  ;;  %v4083_v45 = vpack.c.bf16 %v4075_v50, %v4075_v50  ;;  %v4078_v61 = vsel %vm4062_vm5, %v4054_v56, %v4070_v43  ;;  %vm4064_vm6 = vcmp.gt.f32.partialorder %v4056_v2, 0.0  ;;  %v5124_v36 = vld [vmem:[#allocation18 + $0x130] sm:$0xff]   ;;  %v4800_v30 = vld [vmem:[%s6218_s16] ss:$0 sm:$0xff] }
 0x90e   :  { %4640 = vmatprep.mubr.bf16.mxu0 %v4082_v0  ;;  %4680 = vmatprep.mubr.bf16.mxu1 %v4084_v28  ;;  %v4072_v11 = vmul.f32 0.01, %v4056_v2  ;;  %v4086_v37 = vpack.c.bf16 %v4078_v61, %v4078_v61  ;;  %v3987_v57 = vrot.slane %v6134_v12, %v5663_v40  ;;  %v4004_v10 = vmul.f32 %v3979_v29, %v3955_v13  ;;  %v5121_v12 = vld [vmem:[#allocation18 + $0x1a8] sm:$0xff]   ;;  %v5125_v18 = vld [vmem:[#allocation18 + $0x1b0] sm:$0xff]  }
 0x90f   :  { %4641 = vmatmul.mubr.bf16.vlgmr.msra.gmra.mrb[24].mxu0 %v4081_v8  ;;  %4681 = vmatmul.mubr.bf16.vlgmr.msra.gmra.mrb[24].mxu1 %v4083_v45  ;;  %v4028_v63 = vrot.slane %v6136_v15, %v5655_v34  ;;  %v4036_v41 = vrot.slane %v6136_v15, %v5663_v40  ;;  %v5126_v34 = vld [vmem:[#allocation18 + $0x178] sm:$0xff]  }
 0x910   :  { %4910 = vmatpush3.bf16.msra.mxu0 %v5100_v42  ;;  %4932 = vmatpush3.bf16.msra.mxu1 %v5101_v51  ;;  %v4080_v33 = vsel %vm4064_vm6, %v4056_v2, %v4072_v11  ;;  %v4006_v16 = vmul.f32 %v3987_v57, %v3957_v19  ;;  %v5128_v15 = vld [vmem:[#allocation18 + $0x138] sm:$0xff]  }
 0x911   :  { %4720 = vmatprep.mubr.bf16.mxu0 %v4086_v37  ;;  %v4088_v46 = vpack.c.bf16 %v4080_v33, %v4080_v33  ;;  %4911 = vmatprep.subr.bf16.mxu0 %v5102_v3  ;;  %v4053_v38 = vadd.f32 %v4028_v63, %v4004_v10 }
 0x912   :  { %4933 = vmatprep.subr.bf16.mxu1 %v5103_v52  ;;  %v4055_v4 = vadd.f32 %v4036_v41, %v4006_v16 }
 0x913   :  { %4760 = vmatprep.mubr.bf16.mxu1 %v4088_v46  ;;  %v4069_v53 = vmul.f32 0.01, %v4053_v38  ;;  %vm4061_vm7 = vcmp.gt.f32.partialorder %v4053_v38, 0.0 }
 0x914   :  { %4912 = vmatpush3.bf16.msra.mxu0 %v5104_v44  ;;  %4934 = vmatpush3.bf16.msra.mxu1 %v5105_v39  ;;  %v4071_v40 = vmul.f32 0.01, %v4055_v4  ;;  %vm4063_vm8 = vcmp.gt.f32.partialorder %v4055_v4, 0.0 }
 0x915   :  { %4913 = vmatprep.subr.bf16.mxu0 %v5106_v47  ;;  %4935 = vmatprep.subr.bf16.mxu1 %v5107_v48  ;;  %v4077_v56 = vsel %vm4061_vm7, %v4053_v38, %v4069_v53 }
 0x916   :  { %v4079_v2 = vsel %vm4063_vm8, %v4055_v4, %v4071_v40  ;;  %v4085_v31 = vpack.c.bf16 %v4077_v56, %v4077_v56 }
 0x917   :  { %v4087_v35 = vpack.c.bf16 %v4079_v2, %v4079_v2 }
 0x918   :  { %4914 = vmatpush3.bf16.msra.mxu0 %v5108_v49  ;;  %4936 = vmatpush3.bf16.msra.mxu1 %v5109_v7 }
 0x919   :  { %4915 = vmatprep.subr.bf16.mxu0 %v5110_v23  ;;  %4937 = vmatprep.subr.bf16.mxu1 %v5111_v62 }
 0x91c   :  { %4916 = vmatpush3.bf16.msra.mxu0 %v5112_v25  ;;  %4938 = vmatpush3.bf16.msra.mxu1 %v5113_v9 }
 0x91d   :  { %4917 = vmatprep.subr.bf16.mxu0 %v5114_v54  ;;  %4939 = vmatprep.subr.bf16.mxu1 %v5115_v59 }
 0x920   :  { %4918 = vmatpush3.bf16.msra.mxu0 %v5116_v22  ;;  %4940 = vmatpush3.bf16.msra.mxu1 %v5117_v1 }
 0x921   :  { %4919 = vmatprep.subr.bf16.mxu0 %v5118_v14  ;;  %4941 = vmatprep.subr.bf16.mxu1 %v5119_v6 }
 0x924   :  { %4920 = vmatpush3.bf16.msra.mxu0 %v5120_v20  ;;  %4942 = vmatpush3.bf16.msra.mxu1 %v5121_v12 }
 0x925   :  { %4921 = vmatprep.subr.bf16.mxu0 %v5122_v60  ;;  %4943 = vmatprep.subr.bf16.mxu1 %v5123_v26 }
 0x928   :  { %4922 = vmatpush3.bf16.msra.mxu0 %v5124_v36  ;;  %4944 = vmatpush3.bf16.msra.mxu1 %v5125_v18 }
 0x929   :  { %4923 = vmatprep.subr.bf16.mxu0 %v5126_v34  ;;  %4945 = vmatprep.subr.bf16.mxu1 %v5127_v58 }
 0x92c   :  { %4924 = vmatpush3.bf16.msra.mxu0 %v5128_v15  ;;  %4946 = vmatpush3.bf16.msra.mxu1 %v5129_v27 }
 0x92f   :  { %4721 = vmatmul.mubr.bf16.vlgmr.msra.gmra.mrb[28].mxu0 %v4085_v31  ;;  %4761 = vmatmul.mubr.bf16.vlgmr.msra.gmra.mrb[28].mxu1 %v4087_v35 }
 0x9e2   :  { %v4881_v32 = vpop.f32.mrb[24].mxu0  ;;  %v4903_v55 = vpop.f32.mrb[24].mxu1 }
 0x9e3   :  { %v4882_v17 = vpop.f32.mrb[25].mxu0  ;;  %v4904_v43 = vpop.f32.mrb[25].mxu1 }
 0x9e4   :  { %v4883_v0 = vadd.f32 %v4882_v17, %v4881_v32  ;;  %v4905_v28 = vadd.f32 %v4904_v43, %v4903_v55  ;;  %v4884_v5 = vpop.f32.mrb[26].mxu0  ;;  %v4906_v50 = vpop.f32.mrb[26].mxu1 }
 0x9e5   :  { %v4885_v42 = vpop.f32.mrb[27].mxu0  ;;  %v4907_v51 = vpop.f32.mrb[27].mxu1 }
 0x9e6   :  { %v4643_v8 = vadd.f32 %v4883_v0, %v4800_v30 }
 0x9e8   :  { %v4683_v45 = vadd.f32 %v4905_v28, %v4643_v8 }
 0xa02   :  { %v4925_v61 = vpop.f32.mrb[28].mxu0  ;;  %v4947_v3 = vpop.f32.mrb[28].mxu1 }
 0xa03   :  { %v4926_v11 = vpop.f32.mrb[29].mxu0  ;;  %v4948_v52 = vpop.f32.mrb[29].mxu1 }
 0xa04   :  { %v4927_v37 = vadd.f32 %v4926_v11, %v4925_v61  ;;  %v4949_v33 = vadd.f32 %v4948_v52, %v4947_v3  ;;  %v4928_v44 = vpop.f32.mrb[30].mxu0  ;;  %v4950_v39 = vpop.f32.mrb[30].mxu1 }
 0xa05   :  { %v4929_v46 = vpop.f32.mrb[31].mxu0  ;;  %v4951_v47 = vpop.f32.mrb[31].mxu1 }
 0xa06   :  { %v4723_v48 = vadd.f32 %v4927_v37, %v4683_v45 }
 0xa08   :  { %v4763_v49 = vadd.f32 %v4949_v33, %v4723_v48 }
 0xa0a   :  { %v4768_v7 = vpack.c.bf16 %v4763_v49, %v4763_v49 }
 0xa0c   :  { %4769 = vst [vmem:[%s6227_s18] sm:$0xf] %v4768_v7 }
 0xa0d   :  { %4774 = vsyncpa [#allocation3], 1 }
 0xa0e   :  { %4775 = vsyncpa [#allocation5], 1 }
 0xa0f   :  { %4776 = vsyncpa [#allocation8], 1 }
 0xa10   :  { %4777 = vsyncpa [#allocation11], 1 }
 0xa11   :  { %4778 = vsyncpa [#allocation14], 1 }
 0xa12   :  { %4779 = vsyncpa [#allocation17], 1 }

</bundles_post_ra>
